<compile_context>
chip_gen: v5e
topology: v5e:2x2
jax: 0.10.0
libtpu: 0.0.40
codegen_flags: <defaults>
</compile_context>

<pallas_src>
import functools

import jax
import jax.numpy as jnp
from jax.experimental import pallas as pl
from jax.experimental.pallas import tpu as pltpu


# ----------------------------- in-kernel helpers --------------------------- #

def _bf16_dot(x_f32, w_bf16):
    """MXU matmul: bf16 operands, f32 accumulation."""
    return jnp.dot(x_f32.astype(jnp.bfloat16), w_bf16,
                   preferred_element_type=jnp.float32)


def _mha_heads(q, k, v, n_heads):
    """Multi-head softmax attention for one batch element; heads split in-kernel.

    q: (Lq, D); k, v: (Lk, D); returns (Lq, D) f32.
    # TODO(synk): original EnhancedAutoformer uses FFT-based AutoCorrelation; softmax
    # attention is used as the in-kernel attention core (no clean in-kernel FFT on TPU).
    """
    lq, d = q.shape
    dh = d // n_heads
    scale = 1.0 / float(dh) ** 0.5
    outs = []
    for h in range(n_heads):
        sl = slice(h * dh, (h + 1) * dh)
        qh = q[:, sl].astype(jnp.bfloat16)
        kh = k[:, sl].astype(jnp.bfloat16)
        vh = v[:, sl].astype(jnp.bfloat16)
        s = jnp.einsum("qd,kd->qk", qh, kh,
                       preferred_element_type=jnp.float32) * scale
        m = jnp.max(s, axis=-1, keepdims=True)
        e = jnp.exp(s - m)
        denom = jnp.sum(e, axis=-1, keepdims=True)
        p = e * pl.reciprocal(denom, approx=True)          # EUP reciprocal (free slot)
        outs.append(jnp.dot(p.astype(jnp.bfloat16), vh,
                            preferred_element_type=jnp.float32))
    return jnp.concatenate(outs, axis=-1)


def _series_decomp(x, k):
    """series_decomp: AvgPool1d(k, stride=1) with replicate pad. x: (L, D) f32 (odd k)."""
    L = x.shape[0]
    p = (k - 1) // 2
    xpad = jnp.concatenate([x[0:1]] * p + [x] + [x[L - 1:L]] * p, axis=0)
    acc = xpad[0:L]
    for i in range(1, k):   # TODO(synk): switch to cumsum formulation for large moving_avg
        acc = acc + xpad[i:i + L]
    trend = acc * (1.0 / k)
    return x - trend, trend


def _circular_conv3(x, taps, act):
    """Conv1d(Cin, Cout, k=3, padding=1, circular, bias=False). x: (L, Cin) f32.

    taps: (3, Cin, Cout) bf16 (tap t multiplies x[(l + t - 1) mod L]).
    """
    L = x.shape[0]
    xm1 = jnp.concatenate([x[L - 1:L], x[:L - 1]], axis=0)   # x[(l-1) mod L]
    xp1 = jnp.concatenate([x[1:], x[0:1]], axis=0)           # x[(l+1) mod L]
    y = _bf16_dot(xm1, taps[0]) + _bf16_dot(x, taps[1]) + _bf16_dot(xp1, taps[2])
    if act == "gelu":
        # TODO(synk): PyTorch F.gelu defaults to exact erf; tanh approximation used here.
        y = jax.nn.gelu(y)
    return y


# ------------------------- fused per-layer kernel --------------------------- #

def _layer_kernel(x_ref, cross_ref, rsum_ref,
                  sa_wqkv, sa_bqkv, sa_wo, sa_bo,
                  ca_wq, ca_bq, ca_wkv, ca_bkv, ca_wo, ca_bo,
                  ff_w1, ff_w2, pc1, pc2,
                  xo_ref, ro_ref,
                  *, n_heads, moving_avg):
    x = x_ref[0].astype(jnp.float32)          # (L, D)
    cross = cross_ref[0].astype(jnp.float32)  # (Lc, D)
    d = x.shape[-1]

    # --- self attention (fused QKV projection: one matmul) ---
    qkv = _bf16_dot(x, sa_wqkv[...]) + sa_bqkv[...]
    attn = _mha_heads(qkv[:, :d], qkv[:, d:2 * d], qkv[:, 2 * d:], n_heads)
    x = x + _bf16_dot(attn, sa_wo[...]) + sa_bo[...]
    x, t1 = _series_decomp(x, moving_avg)

    # --- cross attention (fused KV projection) ---
    q = _bf16_dot(x, ca_wq[...]) + ca_bq[...]
    kv = _bf16_dot(cross, ca_wkv[...]) + ca_bkv[...]
    attn = _mha_heads(q, kv[:, :d], kv[:, d:], n_heads)
    x = x + _bf16_dot(attn, ca_wo[...]) + ca_bo[...]
    x, t2 = _series_decomp(x, moving_avg)

    # --- FFN: Conv1d(D,d_ff,1,bias=False) -> ReLU -> Conv1d(d_ff,D,1,bias=False) ---
    h = jnp.maximum(_bf16_dot(x, ff_w1[...]), 0.0)
    y = _bf16_dot(h, ff_w2[...])
    x, t3 = _series_decomp(x + y, moving_avg)

    # --- trend projection: Conv1d(D,D,3,circ) -> GELU -> Conv1d(D,c_out,3,circ) ---
    residual_trend = t1 + t2 + t3
    residual_trend = _circular_conv3(residual_trend, pc1[...], act="gelu")
    residual_trend = _circular_conv3(residual_trend, pc2[...], act="none")

    xo_ref[0] = x.astype(xo_ref.dtype)
    ro_ref[0] = (rsum_ref[0].astype(jnp.float32) + residual_trend).astype(ro_ref.dtype)


# ----------------------- fused decoder-tail kernel -------------------------- #

def _final_kernel(x_ref, trend_ref, rsum_ref,
                  norm_g, norm_b, proj_w, proj_b,
                  ti_w1, ti_b1, ti_w2, ti_b2,
                  xo_ref, to_ref, *, num_layers, eps):
    x = x_ref[0].astype(jnp.float32)          # (L, D)
    trend = trend_ref[0].astype(jnp.float32)  # (L, c_out)
    rsum = rsum_ref[0].astype(jnp.float32)    # sum of residual trends over layers

    # trend accumulation: trend_in + sum_i residual_trend_i
    trend = trend + rsum

    # trend_integration (only applied when more than one layer, as in PyTorch)
    if num_layers > 1:
        integrated = rsum * (1.0 / num_layers)            # mean over stacked trends
        h = jnp.maximum(_bf16_dot(integrated, ti_w1[...]) + ti_b1[...], 0.0)
        trend = trend + _bf16_dot(h, ti_w2[...]) + ti_b2[...]

    # my_Layernorm: LayerNorm over channels, then subtract per-series seq mean
    mu = jnp.mean(x, axis=-1, keepdims=True)
    var = jnp.mean(jnp.square(x - mu), axis=-1, keepdims=True)
    xh = (x - mu) * jax.lax.rsqrt(var + eps) * norm_g[...] + norm_b[...]
    xh = xh - jnp.mean(xh, axis=0, keepdims=True)

    # projection = Linear(d_model, c_out)
    xo_ref[0] = (_bf16_dot(xh, proj_w[...]) + proj_b[...]).astype(xo_ref.dtype)
    to_ref[0] = trend.astype(to_ref.dtype)


# ----------------------------- pallas_call wrappers ------------------------- #

def _row_spec(a):
    """One batch element per grid step, full extent elsewhere."""
    nd = a.ndim
    return pl.BlockSpec((1,) + tuple(a.shape[1:]),
                        lambda b, nd=nd: (b,) + (0,) * (nd - 1))


def _weight_spec(a):
    """Full array, constant index_map -> stays VMEM-resident across grid steps."""
    nd = a.ndim
    return pl.BlockSpec(tuple(a.shape), lambda b, nd=nd: (0,) * nd)


def _layer_call(lp, x, cross, rsum, *, moving_avg, n_heads):
    B, L, D = x.shape
    c_out = rsum.shape[-1]
    inputs = (x, cross, rsum,
              lp["sa_wqkv"], lp["sa_bqkv"], lp["sa_wo"], lp["sa_bo"],
              lp["ca_wq"], lp["ca_bq"], lp["ca_wkv"], lp["ca_bkv"], lp["ca_wo"], lp["ca_bo"],
              lp["ff_w1"], lp["ff_w2"], lp["pc1"], lp["pc2"])
    in_specs = ([_row_spec(x), _row_spec(cross), _row_spec(rsum)]
                + [_weight_spec(a) for a in inputs[3:]])
    out_shape = (jax.ShapeDtypeStruct((B, L, D), x.dtype),
                 jax.ShapeDtypeStruct((B, L, c_out), rsum.dtype))
    out_specs = (_row_spec(x), _row_spec(rsum))
    return pl.pallas_call(
        functools.partial(_layer_kernel, n_heads=n_heads, moving_avg=moving_avg),
        grid=(B,),
        in_specs=in_specs,
        out_specs=out_specs,
        out_shape=out_shape,
        compiler_params=pltpu.CompilerParams(dimension_semantics=("parallel",)),
    )(*inputs)


def _final_call(pp, x, trend, rsum, *, num_layers):
    B, L, D = x.shape
    c_out = trend.shape[-1]
    inputs = (x, trend, rsum,
              pp["norm_g"], pp["norm_b"], pp["proj_w"], pp["proj_b"],
              pp["ti_w1"], pp["ti_b1"], pp["ti_w2"], pp["ti_b2"])
    in_specs = ([_row_spec(x), _row_spec(trend), _row_spec(rsum)]
                + [_weight_spec(a) for a in inputs[3:]])
    out_shape = (jax.ShapeDtypeStruct((B, L, c_out), x.dtype),
                 jax.ShapeDtypeStruct((B, L, c_out), trend.dtype))
    out_specs = (pl.BlockSpec((1, L, c_out), lambda b: (b, 0, 0)),
                 pl.BlockSpec((1, L, c_out), lambda b: (b, 0, 0)))
    return pl.pallas_call(
        functools.partial(_final_kernel, num_layers=num_layers, eps=1e-5),
        grid=(B,),
        in_specs=in_specs,
        out_specs=out_specs,
        out_shape=out_shape,
        compiler_params=pltpu.CompilerParams(dimension_semantics=("parallel",)),
    )(*inputs)


def enhanced_decoder_forward(pp, x, cross, trend, *, moving_avg, n_heads):
    rsum = jnp.zeros_like(trend)     # running sum of residual trends
    for lp in pp["layers"]:
        x, rsum = _layer_call(lp, x, cross, rsum, moving_avg=moving_avg, n_heads=n_heads)
    return _final_call(pp, x, trend, rsum, num_layers=len(pp["layers"]))


# ------------------------------ parameter handling --------------------------- #

def init_params(key, *, d_model, d_ff, c_out, n_heads, num_layers):
    keys = iter(jax.random.split(key, 256))

    def w(shape, scale=0.02):
        return scale * jax.random.normal(next(keys), shape, jnp.float32)

    def zeros(n):
        return jnp.zeros((n,), jnp.float32)

    def attn_params():
        return dict(wq=w((d_model, d_model)), bq=zeros(d_model),
                    wk=w((d_model, d_model)), bk=zeros(d_model),
                    wv=w((d_model, d_model)), bv=zeros(d_model),
                    wo=w((d_model, d_model)), bo=zeros(d_model))

    layers = []
    for _ in range(num_layers):
        layers.append(dict(
            self_attn=attn_params(),
            cross_attn=attn_params(),
            w_ff1=w((d_model, d_ff)),                 # Conv1d 1x1, bias=False
            w_ff2=w((d_ff, d_model)),                 # Conv1d 1x1, bias=False
            proj_conv1_w=w((d_model, d_model, 3)),    # Conv1d layout (Cout, Cin, 3)
            proj_conv2_w=w((c_out, d_model, 3)),
        ))

    return dict(
        layers=layers,
        ti_w1=w((c_out, c_out)), ti_b1=zeros(c_out),
        ti_w2=w((c_out, c_out)), ti_b2=zeros(c_out),
        norm_g=jnp.ones((d_model,), jnp.float32), norm_b=zeros(d_model),
        proj_w=w((d_model, c_out)), proj_b=zeros(c_out),
    )


def prepare_params(p, wdtype=jnp.bfloat16):
    """Host-side repack: fuse QKV / KV, conv-tap matrices, bf16 matmul weights."""
    def wc(a):
        return a.astype(wdtype)

    layers = []
    for lp in p["layers"]:
        sa, ca = lp["self_attn"], lp["cross_attn"]
        layers.append(dict(
            sa_wqkv=wc(jnp.concatenate([sa["wq"], sa["wk"], sa["wv"]], axis=1)),
            sa_bqkv=jnp.concatenate([sa["bq"], sa["bk"], sa["bv"]]).reshape(1, -1),
            sa_wo=wc(sa["wo"]), sa_bo=sa["bo"].reshape(1, -1),
            ca_wq=wc(ca["wq"]), ca_bq=ca["bq"].reshape(1, -1),
            ca_wkv=wc(jnp.concatenate([ca["wk"], ca["wv"]], axis=1)),
            ca_bkv=jnp.concatenate([ca["bk"], ca["bv"]]).reshape(1, -1),
            ca_wo=wc(ca["wo"]), ca_bo=ca["bo"].reshape(1, -1),
            ff_w1=wc(lp["w_ff1"]), ff_w2=wc(lp["w_ff2"]),
            pc1=wc(jnp.stack([lp["proj_conv1_w"][:, :, t].T for t in range(3)], axis=0)),
            pc2=wc(jnp.stack([lp["proj_conv2_w"][:, :, t].T for t in range(3)], axis=0)),
        ))
    return dict(
        layers=layers,
        norm_g=p["norm_g"].reshape(1, -1), norm_b=p["norm_b"].reshape(1, -1),
        proj_w=wc(p["proj_w"]), proj_b=p["proj_b"].reshape(1, -1),
        ti_w1=wc(p["ti_w1"]), ti_b1=p["ti_b1"].reshape(1, -1),
        ti_w2=wc(p["ti_w2"]), ti_b2=p["ti_b2"].reshape(1, -1),
    )


# ----------------------------------- main ----------------------------------- #

if __name__ == "__main__":
    B, L, L_cross = 2, 8, 12
    d_model, d_ff, c_out, n_heads = 32, 64, 16, 4
    num_layers, moving_avg = 2, 5

    key = jax.random.PRNGKey(0)
    kx, kc, kt, kp = jax.random.split(key, 4)
    x = jax.random.normal(kx, (B, L, d_model), jnp.float32)
    cross = jax.random.normal(kc, (B, L_cross, d_model), jnp.float32)
    trend = jax.random.normal(kt, (B, L, c_out), jnp.float32)

    params = init_params(kp, d_model=d_model, d_ff=d_ff, c_out=c_out,
                         n_heads=n_heads, num_layers=num_layers)
    prepared = prepare_params(params)

    fwd = jax.jit(functools.partial(enhanced_decoder_forward,
                                    moving_avg=moving_avg, n_heads=n_heads))
    out_x, out_trend = fwd(prepared, x, cross, trend)
    jax.block_until_ready((out_x, out_trend))

    assert out_x.shape == (B, L, c_out), out_x.shape
    assert out_trend.shape == (B, L, c_out), out_trend.shape
    assert jnp.all(jnp.isfinite(out_x)) and jnp.all(jnp.isfinite(out_trend))
    print("KERNEL_OK")
</pallas_src>

<mosaic_0001>
module attributes {stable_mosaic.version = 11 : i64} {
  func.func @_final_kernel(%arg0: i32, %arg1: memref<1x8x32xf32, #tpu.memory_space<vmem>>, %arg2: memref<1x8x16xf32, #tpu.memory_space<vmem>>, %arg3: memref<1x8x16xf32, #tpu.memory_space<vmem>>, %arg4: memref<1x32xf32, #tpu.memory_space<vmem>>, %arg5: memref<1x32xf32, #tpu.memory_space<vmem>>, %arg6: memref<32x16xbf16, #tpu.memory_space<vmem>>, %arg7: memref<1x16xf32, #tpu.memory_space<vmem>>, %arg8: memref<16x16xbf16, #tpu.memory_space<vmem>>, %arg9: memref<1x16xf32, #tpu.memory_space<vmem>>, %arg10: memref<16x16xbf16, #tpu.memory_space<vmem>>, %arg11: memref<1x16xf32, #tpu.memory_space<vmem>>, %arg12: memref<1x8x16xf32, #tpu.memory_space<vmem>>, %arg13: memref<1x8x16xf32, #tpu.memory_space<vmem>>) attributes {dimension_semantics = [#tpu.dimension_semantics<parallel>], iteration_bounds = array<i64: 2>, scalar_prefetch = 0 : i64, scratch_operands = 0 : i64, tpu.core_type = #tpu.core_type<tc>, window_params = [{transform_indices = @transform_0, window_bounds = array<i64: 1, 8, 32>}, {transform_indices = @transform_1, window_bounds = array<i64: 1, 8, 16>}, {transform_indices = @transform_2, window_bounds = array<i64: 1, 8, 16>}, {pipeline_mode = #tpu.pipeline_mode<synchronous>, transform_indices = @transform_3, window_bounds = array<i64: 1, 32>}, {pipeline_mode = #tpu.pipeline_mode<synchronous>, transform_indices = @transform_4, window_bounds = array<i64: 1, 32>}, {pipeline_mode = #tpu.pipeline_mode<synchronous>, transform_indices = @transform_5, window_bounds = array<i64: 32, 16>}, {pipeline_mode = #tpu.pipeline_mode<synchronous>, transform_indices = @transform_6, window_bounds = array<i64: 1, 16>}, {pipeline_mode = #tpu.pipeline_mode<synchronous>, transform_indices = @transform_7, window_bounds = array<i64: 16, 16>}, {pipeline_mode = #tpu.pipeline_mode<synchronous>, transform_indices = @transform_8, window_bounds = array<i64: 1, 16>}, {pipeline_mode = #tpu.pipeline_mode<synchronous>, transform_indices = @transform_9, window_bounds = array<i64: 16, 16>}, {pipeline_mode = #tpu.pipeline_mode<synchronous>, transform_indices = @transform_10, window_bounds = array<i64: 1, 16>}, {transform_indices = @transform_11, window_bounds = array<i64: 1, 8, 16>}, {transform_indices = @transform_12, window_bounds = array<i64: 1, 8, 16>}]} {
    %c0 = arith.constant 0 : index
    %c0_0 = arith.constant 0 : index
    %c0_1 = arith.constant 0 : index
    %0 = vector.load %arg1[%c0, %c0_0, %c0_1] : memref<1x8x32xf32, #tpu.memory_space<vmem>>, vector<1x8x32xf32>
    %1 = vector.shape_cast %0 : vector<1x8x32xf32> to vector<8x32xf32>
    %c0_2 = arith.constant 0 : index
    %c0_3 = arith.constant 0 : index
    %c0_4 = arith.constant 0 : index
    %2 = vector.load %arg2[%c0_2, %c0_3, %c0_4] : memref<1x8x16xf32, #tpu.memory_space<vmem>>, vector<1x8x16xf32>
    %3 = vector.shape_cast %2 : vector<1x8x16xf32> to vector<8x16xf32>
    %c0_5 = arith.constant 0 : index
    %c0_6 = arith.constant 0 : index
    %c0_7 = arith.constant 0 : index
    %4 = vector.load %arg3[%c0_5, %c0_6, %c0_7] : memref<1x8x16xf32, #tpu.memory_space<vmem>>, vector<1x8x16xf32>
    %5 = vector.shape_cast %4 : vector<1x8x16xf32> to vector<8x16xf32>
    %6 = arith.addf %3, %5 : vector<8x16xf32>
    %cst = arith.constant 5.000000e-01 : f32
    %7 = vector.broadcast %cst : f32 to vector<8x16xf32>
    %8 = arith.mulf %5, %7 : vector<8x16xf32>
    %c0_8 = arith.constant 0 : index
    %c0_9 = arith.constant 0 : index
    %9 = vector.load %arg8[%c0_8, %c0_9] : memref<16x16xbf16, #tpu.memory_space<vmem>>, vector<16x16xbf16>
    %10 = arith.truncf %8 : vector<8x16xf32> to vector<8x16xbf16>
    %cst_10 = arith.constant dense<0.000000e+00> : vector<8x16xf32>
    %11 = tpu.matmul %10, %9, %cst_10 {dimension_numbers = #tpu.dot_dimension_numbers<[1], [0], [0], [1], [0, 0, 1, 1], [], []>} : vector<8x16xbf16>, vector<16x16xbf16>, vector<8x16xf32> -> vector<8x16xf32>
    %c0_11 = arith.constant 0 : index
    %c0_12 = arith.constant 0 : index
    %12 = vector.load %arg9[%c0_11, %c0_12] : memref<1x16xf32, #tpu.memory_space<vmem>>, vector<1x16xf32>
    %13 = vector.broadcast %12 : vector<1x16xf32> to vector<8x16xf32>
    %14 = arith.addf %11, %13 : vector<8x16xf32>
    %cst_13 = arith.constant 0.000000e+00 : f32
    %15 = vector.broadcast %cst_13 : f32 to vector<8x16xf32>
    %16 = arith.maximumf %14, %15 : vector<8x16xf32>
    %c0_14 = arith.constant 0 : index
    %c0_15 = arith.constant 0 : index
    %17 = vector.load %arg10[%c0_14, %c0_15] : memref<16x16xbf16, #tpu.memory_space<vmem>>, vector<16x16xbf16>
    %18 = arith.truncf %16 : vector<8x16xf32> to vector<8x16xbf16>
    %cst_16 = arith.constant dense<0.000000e+00> : vector<8x16xf32>
    %19 = tpu.matmul %18, %17, %cst_16 {dimension_numbers = #tpu.dot_dimension_numbers<[1], [0], [0], [1], [0, 0, 1, 1], [], []>} : vector<8x16xbf16>, vector<16x16xbf16>, vector<8x16xf32> -> vector<8x16xf32>
    %20 = arith.addf %6, %19 : vector<8x16xf32>
    %c0_17 = arith.constant 0 : index
    %c0_18 = arith.constant 0 : index
    %21 = vector.load %arg11[%c0_17, %c0_18] : memref<1x16xf32, #tpu.memory_space<vmem>>, vector<1x16xf32>
    %22 = vector.broadcast %21 : vector<1x16xf32> to vector<8x16xf32>
    %23 = arith.addf %20, %22 : vector<8x16xf32>
    %cst_19 = arith.constant dense<0.000000e+00> : vector<8xf32>
    %24 = vector.multi_reduction <add>, %1, %cst_19 [1] : vector<8x32xf32> to vector<8xf32>
    %25 = vector.shape_cast %24 : vector<8xf32> to vector<8x1xf32>
    %cst_20 = arith.constant 3.200000e+01 : f32
    %26 = vector.broadcast %cst_20 : f32 to vector<8x1xf32>
    %27 = arith.divf %25, %26 : vector<8x1xf32>
    %28 = vector.broadcast %27 : vector<8x1xf32> to vector<8x32xf32>
    %29 = arith.subf %1, %28 : vector<8x32xf32>
    %30 = arith.mulf %29, %29 : vector<8x32xf32>
    %cst_21 = arith.constant dense<0.000000e+00> : vector<8xf32>
    %31 = vector.multi_reduction <add>, %30, %cst_21 [1] : vector<8x32xf32> to vector<8xf32>
    %32 = vector.shape_cast %31 : vector<8xf32> to vector<8x1xf32>
    %cst_22 = arith.constant 3.200000e+01 : f32
    %33 = vector.broadcast %cst_22 : f32 to vector<8x1xf32>
    %34 = arith.divf %32, %33 : vector<8x1xf32>
    %35 = vector.broadcast %27 : vector<8x1xf32> to vector<8x32xf32>
    %36 = arith.subf %1, %35 : vector<8x32xf32>
    %cst_23 = arith.constant 9.99999974E-6 : f32
    %37 = vector.broadcast %cst_23 : f32 to vector<8x1xf32>
    %38 = arith.addf %34, %37 : vector<8x1xf32>
    %39 = math.rsqrt %38 : vector<8x1xf32>
    %40 = vector.broadcast %39 : vector<8x1xf32> to vector<8x32xf32>
    %41 = arith.mulf %36, %40 : vector<8x32xf32>
    %c0_24 = arith.constant 0 : index
    %c0_25 = arith.constant 0 : index
    %42 = vector.load %arg4[%c0_24, %c0_25] : memref<1x32xf32, #tpu.memory_space<vmem>>, vector<1x32xf32>
    %43 = vector.broadcast %42 : vector<1x32xf32> to vector<8x32xf32>
    %44 = arith.mulf %41, %43 : vector<8x32xf32>
    %c0_26 = arith.constant 0 : index
    %c0_27 = arith.constant 0 : index
    %45 = vector.load %arg5[%c0_26, %c0_27] : memref<1x32xf32, #tpu.memory_space<vmem>>, vector<1x32xf32>
    %46 = vector.broadcast %45 : vector<1x32xf32> to vector<8x32xf32>
    %47 = arith.addf %44, %46 : vector<8x32xf32>
    %cst_28 = arith.constant dense<0.000000e+00> : vector<32xf32>
    %48 = vector.multi_reduction <add>, %47, %cst_28 [0] : vector<8x32xf32> to vector<32xf32>
    %49 = vector.shape_cast %48 : vector<32xf32> to vector<1x32xf32>
    %cst_29 = arith.constant 8.000000e+00 : f32
    %50 = vector.broadcast %cst_29 : f32 to vector<1x32xf32>
    %51 = arith.divf %49, %50 : vector<1x32xf32>
    %52 = vector.broadcast %51 : vector<1x32xf32> to vector<8x32xf32>
    %53 = arith.subf %47, %52 : vector<8x32xf32>
    %c0_30 = arith.constant 0 : index
    %c0_31 = arith.constant 0 : index
    %54 = vector.load %arg6[%c0_30, %c0_31] : memref<32x16xbf16, #tpu.memory_space<vmem>>, vector<32x16xbf16>
    %55 = arith.truncf %53 : vector<8x32xf32> to vector<8x32xbf16>
    %cst_32 = arith.constant dense<0.000000e+00> : vector<8x16xf32>
    %56 = tpu.matmul %55, %54, %cst_32 {dimension_numbers = #tpu.dot_dimension_numbers<[1], [0], [0], [1], [0, 0, 1, 1], [], []>} : vector<8x32xbf16>, vector<32x16xbf16>, vector<8x16xf32> -> vector<8x16xf32>
    %c0_33 = arith.constant 0 : index
    %c0_34 = arith.constant 0 : index
    %57 = vector.load %arg7[%c0_33, %c0_34] : memref<1x16xf32, #tpu.memory_space<vmem>>, vector<1x16xf32>
    %58 = vector.broadcast %57 : vector<1x16xf32> to vector<8x16xf32>
    %59 = arith.addf %56, %58 : vector<8x16xf32>
    %c0_35 = arith.constant 0 : index
    %c0_36 = arith.constant 0 : index
    %c0_37 = arith.constant 0 : index
    %60 = vector.load %arg12[%c0_35, %c0_36, %c0_37] : memref<1x8x16xf32, #tpu.memory_space<vmem>>, vector<1x8x16xf32>
    %61 = vector.shape_cast %60 : vector<1x8x16xf32> to vector<8x16xf32>
    %62 = vector.shape_cast %59 : vector<8x16xf32> to vector<1x8x16xf32>
    tpu.vector_store %arg12[%c0_35, %c0_36, %c0_37], %62 {strides = array<i32>} : memref<1x8x16xf32, #tpu.memory_space<vmem>>, vector<1x8x16xf32>,
    %c0_38 = arith.constant 0 : index
    %c0_39 = arith.constant 0 : index
    %c0_40 = arith.constant 0 : index
    %63 = vector.load %arg13[%c0_38, %c0_39, %c0_40] : memref<1x8x16xf32, #tpu.memory_space<vmem>>, vector<1x8x16xf32>
    %64 = vector.shape_cast %63 : vector<1x8x16xf32> to vector<8x16xf32>
    %65 = vector.shape_cast %23 : vector<8x16xf32> to vector<1x8x16xf32>
    tpu.vector_store %arg13[%c0_38, %c0_39, %c0_40], %65 {strides = array<i32>} : memref<1x8x16xf32, #tpu.memory_space<vmem>>, vector<1x8x16xf32>,
    return
  }
  func.func @transform_0(%arg0: i32) -> (i32, i32, i32) {
    %c0_i32 = arith.constant 0 : i32
    %c0_i32_0 = arith.constant 0 : i32
    %c0_i32_1 = arith.constant 0 : i32
    return %arg0, %c0_i32, %c0_i32_0 : i32, i32, i32
  }
  func.func @transform_1(%arg0: i32) -> (i32, i32, i32) {
    %c0_i32 = arith.constant 0 : i32
    %c0_i32_0 = arith.constant 0 : i32
    %c0_i32_1 = arith.constant 0 : i32
    return %arg0, %c0_i32, %c0_i32_0 : i32, i32, i32
  }
  func.func @transform_2(%arg0: i32) -> (i32, i32, i32) {
    %c0_i32 = arith.constant 0 : i32
    %c0_i32_0 = arith.constant 0 : i32
    %c0_i32_1 = arith.constant 0 : i32
    return %arg0, %c0_i32, %c0_i32_0 : i32, i32, i32
  }
  func.func @transform_3(%arg0: i32) -> (i32, i32) {
    %c0_i32 = arith.constant 0 : i32
    %c0_i32_0 = arith.constant 0 : i32
    %c0_i32_1 = arith.constant 0 : i32
    return %c0_i32, %c0_i32_0 : i32, i32
  }
  func.func @transform_4(%arg0: i32) -> (i32, i32) {
    %c0_i32 = arith.constant 0 : i32
    %c0_i32_0 = arith.constant 0 : i32
    %c0_i32_1 = arith.constant 0 : i32
    return %c0_i32, %c0_i32_0 : i32, i32
  }
  func.func @transform_5(%arg0: i32) -> (i32, i32) {
    %c0_i32 = arith.constant 0 : i32
    %c0_i32_0 = arith.constant 0 : i32
    %c0_i32_1 = arith.constant 0 : i32
    return %c0_i32, %c0_i32_0 : i32, i32
  }
  func.func @transform_6(%arg0: i32) -> (i32, i32) {
    %c0_i32 = arith.constant 0 : i32
    %c0_i32_0 = arith.constant 0 : i32
    %c0_i32_1 = arith.constant 0 : i32
    return %c0_i32, %c0_i32_0 : i32, i32
  }
  func.func @transform_7(%arg0: i32) -> (i32, i32) {
    %c0_i32 = arith.constant 0 : i32
    %c0_i32_0 = arith.constant 0 : i32
    %c0_i32_1 = arith.constant 0 : i32
    return %c0_i32, %c0_i32_0 : i32, i32
  }
  func.func @transform_8(%arg0: i32) -> (i32, i32) {
    %c0_i32 = arith.constant 0 : i32
    %c0_i32_0 = arith.constant 0 : i32
    %c0_i32_1 = arith.constant 0 : i32
    return %c0_i32, %c0_i32_0 : i32, i32
  }
  func.func @transform_9(%arg0: i32) -> (i32, i32) {
    %c0_i32 = arith.constant 0 : i32
    %c0_i32_0 = arith.constant 0 : i32
    %c0_i32_1 = arith.constant 0 : i32
    return %c0_i32, %c0_i32_0 : i32, i32
  }
  func.func @transform_10(%arg0: i32) -> (i32, i32) {
    %c0_i32 = arith.constant 0 : i32
    %c0_i32_0 = arith.constant 0 : i32
    %c0_i32_1 = arith.constant 0 : i32
    return %c0_i32, %c0_i32_0 : i32, i32
  }
  func.func @transform_11(%arg0: i32) -> (i32, i32, i32) {
    %c0_i32 = arith.constant 0 : i32
    %c0_i32_0 = arith.constant 0 : i32
    %c0_i32_1 = arith.constant 0 : i32
    return %arg0, %c0_i32, %c0_i32_0 : i32, i32, i32
  }
  func.func @transform_12(%arg0: i32) -> (i32, i32, i32) {
    %c0_i32 = arith.constant 0 : i32
    %c0_i32_0 = arith.constant 0 : i32
    %c0_i32_1 = arith.constant 0 : i32
    return %arg0, %c0_i32, %c0_i32_0 : i32, i32, i32
  }
}

module attributes {stable_mosaic.version = 11 : i64} {
  func.func @_layer_kernel(%arg0: i32, %arg1: memref<1x8x32xf32, #tpu.memory_space<vmem>>, %arg2: memref<1x12x32xf32, #tpu.memory_space<vmem>>, %arg3: memref<1x8x16xf32, #tpu.memory_space<vmem>>, %arg4: memref<32x96xbf16, #tpu.memory_space<vmem>>, %arg5: memref<1x96xf32, #tpu.memory_space<vmem>>, %arg6: memref<32x32xbf16, #tpu.memory_space<vmem>>, %arg7: memref<1x32xf32, #tpu.memory_space<vmem>>, %arg8: memref<32x32xbf16, #tpu.memory_space<vmem>>, %arg9: memref<1x32xf32, #tpu.memory_space<vmem>>, %arg10: memref<32x64xbf16, #tpu.memory_space<vmem>>, %arg11: memref<1x64xf32, #tpu.memory_space<vmem>>, %arg12: memref<32x32xbf16, #tpu.memory_space<vmem>>, %arg13: memref<1x32xf32, #tpu.memory_space<vmem>>, %arg14: memref<32x64xbf16, #tpu.memory_space<vmem>>, %arg15: memref<64x32xbf16, #tpu.memory_space<vmem>>, %arg16: memref<3x32x32xbf16, #tpu.memory_space<vmem>>, %arg17: memref<3x32x16xbf16, #tpu.memory_space<vmem>>, %arg18: memref<1x8x32xf32, #tpu.memory_space<vmem>>, %arg19: memref<1x8x16xf32, #tpu.memory_space<vmem>>) attributes {dimension_semantics = [#tpu.dimension_semantics<parallel>], iteration_bounds = array<i64: 2>, scalar_prefetch = 0 : i64, scratch_operands = 0 : i64, tpu.core_type = #tpu.core_type<tc>, window_params = [{transform_indices = @transform_0, window_bounds = array<i64: 1, 8, 32>}, {transform_indices = @transform_1, window_bounds = array<i64: 1, 12, 32>}, {transform_indices = @transform_2, window_bounds = array<i64: 1, 8, 16>}, {pipeline_mode = #tpu.pipeline_mode<synchronous>, transform_indices = @transform_3, window_bounds = array<i64: 32, 96>}, {pipeline_mode = #tpu.pipeline_mode<synchronous>, transform_indices = @transform_4, window_bounds = array<i64: 1, 96>}, {pipeline_mode = #tpu.pipeline_mode<synchronous>, transform_indices = @transform_5, window_bounds = array<i64: 32, 32>}, {pipeline_mode = #tpu.pipeline_mode<synchronous>, transform_indices = @transform_6, window_bounds = array<i64: 1, 32>}, {pipeline_mode = #tpu.pipeline_mode<synchronous>, transform_indices = @transform_7, window_bounds = array<i64: 32, 32>}, {pipeline_mode = #tpu.pipeline_mode<synchronous>, transform_indices = @transform_8, window_bounds = array<i64: 1, 32>}, {pipeline_mode = #tpu.pipeline_mode<synchronous>, transform_indices = @transform_9, window_bounds = array<i64: 32, 64>}, {pipeline_mode = #tpu.pipeline_mode<synchronous>, transform_indices = @transform_10, window_bounds = array<i64: 1, 64>}, {pipeline_mode = #tpu.pipeline_mode<synchronous>, transform_indices = @transform_11, window_bounds = array<i64: 32, 32>}, {pipeline_mode = #tpu.pipeline_mode<synchronous>, transform_indices = @transform_12, window_bounds = array<i64: 1, 32>}, {pipeline_mode = #tpu.pipeline_mode<synchronous>, transform_indices = @transform_13, window_bounds = array<i64: 32, 64>}, {pipeline_mode = #tpu.pipeline_mode<synchronous>, transform_indices = @transform_14, window_bounds = array<i64: 64, 32>}, {pipeline_mode = #tpu.pipeline_mode<synchronous>, transform_indices = @transform_15, window_bounds = array<i64: 3, 32, 32>}, {pipeline_mode = #tpu.pipeline_mode<synchronous>, transform_indices = @transform_16, window_bounds = array<i64: 3, 32, 16>}, {transform_indices = @transform_17, window_bounds = array<i64: 1, 8, 32>}, {transform_indices = @transform_18, window_bounds = array<i64: 1, 8, 16>}]} {
    %c0 = arith.constant 0 : index
    %c0_0 = arith.constant 0 : index
    %c0_1 = arith.constant 0 : index
    %0 = vector.load %arg1[%c0, %c0_0, %c0_1] : memref<1x8x32xf32, #tpu.memory_space<vmem>>, vector<1x8x32xf32>
    %1 = vector.shape_cast %0 : vector<1x8x32xf32> to vector<8x32xf32>
    %c0_2 = arith.constant 0 : index
    %c0_3 = arith.constant 0 : index
    %c0_4 = arith.constant 0 : index
    %2 = vector.load %arg2[%c0_2, %c0_3, %c0_4] : memref<1x12x32xf32, #tpu.memory_space<vmem>>, vector<1x12x32xf32>
    %3 = vector.shape_cast %2 : vector<1x12x32xf32> to vector<12x32xf32>
    %c0_5 = arith.constant 0 : index
    %c0_6 = arith.constant 0 : index
    %4 = vector.load %arg4[%c0_5, %c0_6] : memref<32x96xbf16, #tpu.memory_space<vmem>>, vector<32x96xbf16>
    %5 = arith.truncf %1 : vector<8x32xf32> to vector<8x32xbf16>
    %cst = arith.constant dense<0.000000e+00> : vector<8x96xf32>
    %6 = tpu.matmul %5, %4, %cst {dimension_numbers = #tpu.dot_dimension_numbers<[1], [0], [0], [1], [0, 0, 1, 1], [], []>} : vector<8x32xbf16>, vector<32x96xbf16>, vector<8x96xf32> -> vector<8x96xf32>
    %c0_7 = arith.constant 0 : index
    %c0_8 = arith.constant 0 : index
    %7 = vector.load %arg5[%c0_7, %c0_8] : memref<1x96xf32, #tpu.memory_space<vmem>>, vector<1x96xf32>
    %8 = vector.broadcast %7 : vector<1x96xf32> to vector<8x96xf32>
    %9 = arith.addf %6, %8 : vector<8x96xf32>
    %10 = vector.extract_strided_slice %9 {offsets = [0, 0], sizes = [8, 32], strides = [1, 1]} : vector<8x96xf32> to vector<8x32xf32>
    %11 = vector.extract_strided_slice %9 {offsets = [0, 32], sizes = [8, 32], strides = [1, 1]} : vector<8x96xf32> to vector<8x32xf32>
    %12 = vector.extract_strided_slice %9 {offsets = [0, 64], sizes = [8, 32], strides = [1, 1]} : vector<8x96xf32> to vector<8x32xf32>
    %13 = vector.extract_strided_slice %10 {offsets = [0, 0], sizes = [8, 8], strides = [1, 1]} : vector<8x32xf32> to vector<8x8xf32>
    %14 = arith.truncf %13 : vector<8x8xf32> to vector<8x8xbf16>
    %15 = vector.extract_strided_slice %11 {offsets = [0, 0], sizes = [8, 8], strides = [1, 1]} : vector<8x32xf32> to vector<8x8xf32>
    %16 = arith.truncf %15 : vector<8x8xf32> to vector<8x8xbf16>
    %17 = vector.extract_strided_slice %12 {offsets = [0, 0], sizes = [8, 8], strides = [1, 1]} : vector<8x32xf32> to vector<8x8xf32>
    %18 = arith.truncf %17 : vector<8x8xf32> to vector<8x8xbf16>
    "tpu.trace_start"() <{level = 10 : i32, message = "qd,kd->qk"}> : () -> ()
    %cst_9 = arith.constant dense<0.000000e+00> : vector<8x8xf32>
    %19 = tpu.matmul %14, %16, %cst_9 {dimension_numbers = #tpu.dot_dimension_numbers<[1], [1], [0], [0], [0, 0, 1, 0], [], []>} : vector<8x8xbf16>, vector<8x8xbf16>, vector<8x8xf32> -> vector<8x8xf32>
    "tpu.trace_stop"() : () -> ()
    %cst_10 = arith.constant 0.353553385 : f32
    %20 = vector.broadcast %cst_10 : f32 to vector<8x8xf32>
    %21 = arith.mulf %19, %20 : vector<8x8xf32>
    %cst_11 = arith.constant dense<0xFF800000> : vector<8xf32>
    %22 = vector.multi_reduction <maximumf>, %21, %cst_11 [1] : vector<8x8xf32> to vector<8xf32>
    %23 = vector.shape_cast %22 : vector<8xf32> to vector<8x1xf32>
    %24 = vector.broadcast %23 : vector<8x1xf32> to vector<8x8xf32>
    %25 = arith.subf %21, %24 : vector<8x8xf32>
    %26 = math.exp %25 : vector<8x8xf32>
    %cst_12 = arith.constant dense<0.000000e+00> : vector<8xf32>
    %27 = vector.multi_reduction <add>, %26, %cst_12 [1] : vector<8x8xf32> to vector<8xf32>
    %28 = vector.shape_cast %27 : vector<8xf32> to vector<8x1xf32>
    %29 = tpu.reciprocal %28 {approx = true} : vector<8x1xf32> -> vector<8x1xf32>
    %30 = vector.broadcast %29 : vector<8x1xf32> to vector<8x8xf32>
    %31 = arith.mulf %26, %30 : vector<8x8xf32>
    %32 = arith.truncf %31 : vector<8x8xf32> to vector<8x8xbf16>
    %cst_13 = arith.constant dense<0.000000e+00> : vector<8x8xf32>
    %33 = tpu.matmul %32, %18, %cst_13 {dimension_numbers = #tpu.dot_dimension_numbers<[1], [0], [0], [1], [0, 0, 1, 1], [], []>} : vector<8x8xbf16>, vector<8x8xbf16>, vector<8x8xf32> -> vector<8x8xf32>
    %34 = vector.extract_strided_slice %10 {offsets = [0, 8], sizes = [8, 8], strides = [1, 1]} : vector<8x32xf32> to vector<8x8xf32>
    %35 = arith.truncf %34 : vector<8x8xf32> to vector<8x8xbf16>
    %36 = vector.extract_strided_slice %11 {offsets = [0, 8], sizes = [8, 8], strides = [1, 1]} : vector<8x32xf32> to vector<8x8xf32>
    %37 = arith.truncf %36 : vector<8x8xf32> to vector<8x8xbf16>
    %38 = vector.extract_strided_slice %12 {offsets = [0, 8], sizes = [8, 8], strides = [1, 1]} : vector<8x32xf32> to vector<8x8xf32>
    %39 = arith.truncf %38 : vector<8x8xf32> to vector<8x8xbf16>
    "tpu.trace_start"() <{level = 10 : i32, message = "qd,kd->qk"}> : () -> ()
    %cst_14 = arith.constant dense<0.000000e+00> : vector<8x8xf32>
    %40 = tpu.matmul %35, %37, %cst_14 {dimension_numbers = #tpu.dot_dimension_numbers<[1], [1], [0], [0], [0, 0, 1, 0], [], []>} : vector<8x8xbf16>, vector<8x8xbf16>, vector<8x8xf32> -> vector<8x8xf32>
    "tpu.trace_stop"() : () -> ()
    %cst_15 = arith.constant 0.353553385 : f32
    %41 = vector.broadcast %cst_15 : f32 to vector<8x8xf32>
    %42 = arith.mulf %40, %41 : vector<8x8xf32>
    %cst_16 = arith.constant dense<0xFF800000> : vector<8xf32>
    %43 = vector.multi_reduction <maximumf>, %42, %cst_16 [1] : vector<8x8xf32> to vector<8xf32>
    %44 = vector.shape_cast %43 : vector<8xf32> to vector<8x1xf32>
    %45 = vector.broadcast %44 : vector<8x1xf32> to vector<8x8xf32>
    %46 = arith.subf %42, %45 : vector<8x8xf32>
    %47 = math.exp %46 : vector<8x8xf32>
    %cst_17 = arith.constant dense<0.000000e+00> : vector<8xf32>
    %48 = vector.multi_reduction <add>, %47, %cst_17 [1] : vector<8x8xf32> to vector<8xf32>
    %49 = vector.shape_cast %48 : vector<8xf32> to vector<8x1xf32>
    %50 = tpu.reciprocal %49 {approx = true} : vector<8x1xf32> -> vector<8x1xf32>
    %51 = vector.broadcast %50 : vector<8x1xf32> to vector<8x8xf32>
    %52 = arith.mulf %47, %51 : vector<8x8xf32>
    %53 = arith.truncf %52 : vector<8x8xf32> to vector<8x8xbf16>
    %cst_18 = arith.constant dense<0.000000e+00> : vector<8x8xf32>
    %54 = tpu.matmul %53, %39, %cst_18 {dimension_numbers = #tpu.dot_dimension_numbers<[1], [0], [0], [1], [0, 0, 1, 1], [], []>} : vector<8x8xbf16>, vector<8x8xbf16>, vector<8x8xf32> -> vector<8x8xf32>
    %55 = vector.extract_strided_slice %10 {offsets = [0, 16], sizes = [8, 8], strides = [1, 1]} : vector<8x32xf32> to vector<8x8xf32>
    %56 = arith.truncf %55 : vector<8x8xf32> to vector<8x8xbf16>
    %57 = vector.extract_strided_slice %11 {offsets = [0, 16], sizes = [8, 8], strides = [1, 1]} : vector<8x32xf32> to vector<8x8xf32>
    %58 = arith.truncf %57 : vector<8x8xf32> to vector<8x8xbf16>
    %59 = vector.extract_strided_slice %12 {offsets = [0, 16], sizes = [8, 8], strides = [1, 1]} : vector<8x32xf32> to vector<8x8xf32>
    %60 = arith.truncf %59 : vector<8x8xf32> to vector<8x8xbf16>
    "tpu.trace_start"() <{level = 10 : i32, message = "qd,kd->qk"}> : () -> ()
    %cst_19 = arith.constant dense<0.000000e+00> : vector<8x8xf32>
    %61 = tpu.matmul %56, %58, %cst_19 {dimension_numbers = #tpu.dot_dimension_numbers<[1], [1], [0], [0], [0, 0, 1, 0], [], []>} : vector<8x8xbf16>, vector<8x8xbf16>, vector<8x8xf32> -> vector<8x8xf32>
    "tpu.trace_stop"() : () -> ()
    %cst_20 = arith.constant 0.353553385 : f32
    %62 = vector.broadcast %cst_20 : f32 to vector<8x8xf32>
    %63 = arith.mulf %61, %62 : vector<8x8xf32>
    %cst_21 = arith.constant dense<0xFF800000> : vector<8xf32>
    %64 = vector.multi_reduction <maximumf>, %63, %cst_21 [1] : vector<8x8xf32> to vector<8xf32>
    %65 = vector.shape_cast %64 : vector<8xf32> to vector<8x1xf32>
    %66 = vector.broadcast %65 : vector<8x1xf32> to vector<8x8xf32>
    %67 = arith.subf %63, %66 : vector<8x8xf32>
    %68 = math.exp %67 : vector<8x8xf32>
    %cst_22 = arith.constant dense<0.000000e+00> : vector<8xf32>
    %69 = vector.multi_reduction <add>, %68, %cst_22 [1] : vector<8x8xf32> to vector<8xf32>
    %70 = vector.shape_cast %69 : vector<8xf32> to vector<8x1xf32>
    %71 = tpu.reciprocal %70 {approx = true} : vector<8x1xf32> -> vector<8x1xf32>
    %72 = vector.broadcast %71 : vector<8x1xf32> to vector<8x8xf32>
    %73 = arith.mulf %68, %72 : vector<8x8xf32>
    %74 = arith.truncf %73 : vector<8x8xf32> to vector<8x8xbf16>
    %cst_23 = arith.constant dense<0.000000e+00> : vector<8x8xf32>
    %75 = tpu.matmul %74, %60, %cst_23 {dimension_numbers = #tpu.dot_dimension_numbers<[1], [0], [0], [1], [0, 0, 1, 1], [], []>} : vector<8x8xbf16>, vector<8x8xbf16>, vector<8x8xf32> -> vector<8x8xf32>
    %76 = vector.extract_strided_slice %10 {offsets = [0, 24], sizes = [8, 8], strides = [1, 1]} : vector<8x32xf32> to vector<8x8xf32>
    %77 = arith.truncf %76 : vector<8x8xf32> to vector<8x8xbf16>
    %78 = vector.extract_strided_slice %11 {offsets = [0, 24], sizes = [8, 8], strides = [1, 1]} : vector<8x32xf32> to vector<8x8xf32>
    %79 = arith.truncf %78 : vector<8x8xf32> to vector<8x8xbf16>
    %80 = vector.extract_strided_slice %12 {offsets = [0, 24], sizes = [8, 8], strides = [1, 1]} : vector<8x32xf32> to vector<8x8xf32>
    %81 = arith.truncf %80 : vector<8x8xf32> to vector<8x8xbf16>
    "tpu.trace_start"() <{level = 10 : i32, message = "qd,kd->qk"}> : () -> ()
    %cst_24 = arith.constant dense<0.000000e+00> : vector<8x8xf32>
    %82 = tpu.matmul %77, %79, %cst_24 {dimension_numbers = #tpu.dot_dimension_numbers<[1], [1], [0], [0], [0, 0, 1, 0], [], []>} : vector<8x8xbf16>, vector<8x8xbf16>, vector<8x8xf32> -> vector<8x8xf32>
    "tpu.trace_stop"() : () -> ()
    %cst_25 = arith.constant 0.353553385 : f32
    %83 = vector.broadcast %cst_25 : f32 to vector<8x8xf32>
    %84 = arith.mulf %82, %83 : vector<8x8xf32>
    %cst_26 = arith.constant dense<0xFF800000> : vector<8xf32>
    %85 = vector.multi_reduction <maximumf>, %84, %cst_26 [1] : vector<8x8xf32> to vector<8xf32>
    %86 = vector.shape_cast %85 : vector<8xf32> to vector<8x1xf32>
    %87 = vector.broadcast %86 : vector<8x1xf32> to vector<8x8xf32>
    %88 = arith.subf %84, %87 : vector<8x8xf32>
    %89 = math.exp %88 : vector<8x8xf32>
    %cst_27 = arith.constant dense<0.000000e+00> : vector<8xf32>
    %90 = vector.multi_reduction <add>, %89, %cst_27 [1] : vector<8x8xf32> to vector<8xf32>
    %91 = vector.shape_cast %90 : vector<8xf32> to vector<8x1xf32>
    %92 = tpu.reciprocal %91 {approx = true} : vector<8x1xf32> -> vector<8x1xf32>
    %93 = vector.broadcast %92 : vector<8x1xf32> to vector<8x8xf32>
    %94 = arith.mulf %89, %93 : vector<8x8xf32>
    %95 = arith.truncf %94 : vector<8x8xf32> to vector<8x8xbf16>
    %cst_28 = arith.constant dense<0.000000e+00> : vector<8x8xf32>
    %96 = tpu.matmul %95, %81, %cst_28 {dimension_numbers = #tpu.dot_dimension_numbers<[1], [0], [0], [1], [0, 0, 1, 1], [], []>} : vector<8x8xbf16>, vector<8x8xbf16>, vector<8x8xf32> -> vector<8x8xf32>
    %97 = tpu.concatenate %33, %54, %75, %96 in 1 : vector<8x8xf32>, vector<8x8xf32>, vector<8x8xf32>, vector<8x8xf32> -> vector<8x32xf32>
    %c0_29 = arith.constant 0 : index
    %c0_30 = arith.constant 0 : index
    %98 = vector.load %arg6[%c0_29, %c0_30] : memref<32x32xbf16, #tpu.memory_space<vmem>>, vector<32x32xbf16>
    %99 = arith.truncf %97 : vector<8x32xf32> to vector<8x32xbf16>
    %cst_31 = arith.constant dense<0.000000e+00> : vector<8x32xf32>
    %100 = tpu.matmul %99, %98, %cst_31 {dimension_numbers = #tpu.dot_dimension_numbers<[1], [0], [0], [1], [0, 0, 1, 1], [], []>} : vector<8x32xbf16>, vector<32x32xbf16>, vector<8x32xf32> -> vector<8x32xf32>
    %101 = arith.addf %1, %100 : vector<8x32xf32>
    %c0_32 = arith.constant 0 : index
    %c0_33 = arith.constant 0 : index
    %102 = vector.load %arg7[%c0_32, %c0_33] : memref<1x32xf32, #tpu.memory_space<vmem>>, vector<1x32xf32>
    %103 = vector.broadcast %102 : vector<1x32xf32> to vector<8x32xf32>
    %104 = arith.addf %101, %103 : vector<8x32xf32>
    %105 = vector.extract_strided_slice %104 {offsets = [0, 0], sizes = [1, 32], strides = [1, 1]} : vector<8x32xf32> to vector<1x32xf32>
    %106 = vector.extract_strided_slice %104 {offsets = [7, 0], sizes = [1, 32], strides = [1, 1]} : vector<8x32xf32> to vector<1x32xf32>
    %107 = tpu.concatenate %105, %105, %104, %106, %106 in 0 : vector<1x32xf32>, vector<1x32xf32>, vector<8x32xf32>, vector<1x32xf32>, vector<1x32xf32> -> vector<12x32xf32>
    %108 = vector.extract_strided_slice %107 {offsets = [0, 0], sizes = [8, 32], strides = [1, 1]} : vector<12x32xf32> to vector<8x32xf32>
    %109 = vector.extract_strided_slice %107 {offsets = [1, 0], sizes = [8, 32], strides = [1, 1]} : vector<12x32xf32> to vector<8x32xf32>
    %110 = arith.addf %108, %109 : vector<8x32xf32>
    %111 = vector.extract_strided_slice %107 {offsets = [2, 0], sizes = [8, 32], strides = [1, 1]} : vector<12x32xf32> to vector<8x32xf32>
    %112 = arith.addf %110, %111 : vector<8x32xf32>
    %113 = vector.extract_strided_slice %107 {offsets = [3, 0], sizes = [8, 32], strides = [1, 1]} : vector<12x32xf32> to vector<8x32xf32>
    %114 = arith.addf %112, %113 : vector<8x32xf32>
    %115 = vector.extract_strided_slice %107 {offsets = [4, 0], sizes = [8, 32], strides = [1, 1]} : vector<12x32xf32> to vector<8x32xf32>
    %116 = arith.addf %114, %115 : vector<8x32xf32>
    %cst_34 = arith.constant 2.000000e-01 : f32
    %117 = vector.broadcast %cst_34 : f32 to vector<8x32xf32>
    %118 = arith.mulf %116, %117 : vector<8x32xf32>
    %119 = arith.subf %104, %118 : vector<8x32xf32>
    %c0_35 = arith.constant 0 : index
    %c0_36 = arith.constant 0 : index
    %120 = vector.load %arg8[%c0_35, %c0_36] : memref<32x32xbf16, #tpu.memory_space<vmem>>, vector<32x32xbf16>
    %121 = arith.truncf %119 : vector<8x32xf32> to vector<8x32xbf16>
    %cst_37 = arith.constant dense<0.000000e+00> : vector<8x32xf32>
    %122 = tpu.matmul %121, %120, %cst_37 {dimension_numbers = #tpu.dot_dimension_numbers<[1], [0], [0], [1], [0, 0, 1, 1], [], []>} : vector<8x32xbf16>, vector<32x32xbf16>, vector<8x32xf32> -> vector<8x32xf32>
    %c0_38 = arith.constant 0 : index
    %c0_39 = arith.constant 0 : index
    %123 = vector.load %arg9[%c0_38, %c0_39] : memref<1x32xf32, #tpu.memory_space<vmem>>, vector<1x32xf32>
    %124 = vector.broadcast %123 : vector<1x32xf32> to vector<8x32xf32>
    %125 = arith.addf %122, %124 : vector<8x32xf32>
    %c0_40 = arith.constant 0 : index
    %c0_41 = arith.constant 0 : index
    %126 = vector.load %arg10[%c0_40, %c0_41] : memref<32x64xbf16, #tpu.memory_space<vmem>>, vector<32x64xbf16>
    %127 = arith.truncf %3 : vector<12x32xf32> to vector<12x32xbf16>
    %cst_42 = arith.constant dense<0.000000e+00> : vector<12x64xf32>
    %128 = tpu.matmul %127, %126, %cst_42 {dimension_numbers = #tpu.dot_dimension_numbers<[1], [0], [0], [1], [0, 0, 1, 1], [], []>} : vector<12x32xbf16>, vector<32x64xbf16>, vector<12x64xf32> -> vector<12x64xf32>
    %c0_43 = arith.constant 0 : index
    %c0_44 = arith.constant 0 : index
    %129 = vector.load %arg11[%c0_43, %c0_44] : memref<1x64xf32, #tpu.memory_space<vmem>>, vector<1x64xf32>
    %130 = vector.broadcast %129 : vector<1x64xf32> to vector<12x64xf32>
    %131 = arith.addf %128, %130 : vector<12x64xf32>
    %132 = vector.extract_strided_slice %131 {offsets = [0, 0], sizes = [12, 32], strides = [1, 1]} : vector<12x64xf32> to vector<12x32xf32>
    %133 = vector.extract_strided_slice %131 {offsets = [0, 32], sizes = [12, 32], strides = [1, 1]} : vector<12x64xf32> to vector<12x32xf32>
    %134 = vector.extract_strided_slice %125 {offsets = [0, 0], sizes = [8, 8], strides = [1, 1]} : vector<8x32xf32> to vector<8x8xf32>
    %135 = arith.truncf %134 : vector<8x8xf32> to vector<8x8xbf16>
    %136 = vector.extract_strided_slice %132 {offsets = [0, 0], sizes = [12, 8], strides = [1, 1]} : vector<12x32xf32> to vector<12x8xf32>
    %137 = arith.truncf %136 : vector<12x8xf32> to vector<12x8xbf16>
    %138 = vector.extract_strided_slice %133 {offsets = [0, 0], sizes = [12, 8], strides = [1, 1]} : vector<12x32xf32> to vector<12x8xf32>
    %139 = arith.truncf %138 : vector<12x8xf32> to vector<12x8xbf16>
    "tpu.trace_start"() <{level = 10 : i32, message = "qd,kd->qk"}> : () -> ()
    %cst_45 = arith.constant dense<0.000000e+00> : vector<8x12xf32>
    %140 = tpu.matmul %135, %137, %cst_45 {dimension_numbers = #tpu.dot_dimension_numbers<[1], [1], [0], [0], [0, 0, 1, 0], [], []>} : vector<8x8xbf16>, vector<12x8xbf16>, vector<8x12xf32> -> vector<8x12xf32>
    "tpu.trace_stop"() : () -> ()
    %cst_46 = arith.constant 0.353553385 : f32
    %141 = vector.broadcast %cst_46 : f32 to vector<8x12xf32>
    %142 = arith.mulf %140, %141 : vector<8x12xf32>
    %cst_47 = arith.constant dense<0xFF800000> : vector<8xf32>
    %143 = vector.multi_reduction <maximumf>, %142, %cst_47 [1] : vector<8x12xf32> to vector<8xf32>
    %144 = vector.shape_cast %143 : vector<8xf32> to vector<8x1xf32>
    %145 = vector.broadcast %144 : vector<8x1xf32> to vector<8x12xf32>
    %146 = arith.subf %142, %145 : vector<8x12xf32>
    %147 = math.exp %146 : vector<8x12xf32>
    %cst_48 = arith.constant dense<0.000000e+00> : vector<8xf32>
    %148 = vector.multi_reduction <add>, %147, %cst_48 [1] : vector<8x12xf32> to vector<8xf32>
    %149 = vector.shape_cast %148 : vector<8xf32> to vector<8x1xf32>
    %150 = tpu.reciprocal %149 {approx = true} : vector<8x1xf32> -> vector<8x1xf32>
    %151 = vector.broadcast %150 : vector<8x1xf32> to vector<8x12xf32>
    %152 = arith.mulf %147, %151 : vector<8x12xf32>
    %153 = arith.truncf %152 : vector<8x12xf32> to vector<8x12xbf16>
    %cst_49 = arith.constant dense<0.000000e+00> : vector<8x8xf32>
    %154 = tpu.matmul %153, %139, %cst_49 {dimension_numbers = #tpu.dot_dimension_numbers<[1], [0], [0], [1], [0, 0, 1, 1], [], []>} : vector<8x12xbf16>, vector<12x8xbf16>, vector<8x8xf32> -> vector<8x8xf32>
    %155 = vector.extract_strided_slice %125 {offsets = [0, 8], sizes = [8, 8], strides = [1, 1]} : vector<8x32xf32> to vector<8x8xf32>
    %156 = arith.truncf %155 : vector<8x8xf32> to vector<8x8xbf16>
    %157 = vector.extract_strided_slice %132 {offsets = [0, 8], sizes = [12, 8], strides = [1, 1]} : vector<12x32xf32> to vector<12x8xf32>
    %158 = arith.truncf %157 : vector<12x8xf32> to vector<12x8xbf16>
    %159 = vector.extract_strided_slice %133 {offsets = [0, 8], sizes = [12, 8], strides = [1, 1]} : vector<12x32xf32> to vector<12x8xf32>
    %160 = arith.truncf %159 : vector<12x8xf32> to vector<12x8xbf16>
    "tpu.trace_start"() <{level = 10 : i32, message = "qd,kd->qk"}> : () -> ()
    %cst_50 = arith.constant dense<0.000000e+00> : vector<8x12xf32>
    %161 = tpu.matmul %156, %158, %cst_50 {dimension_numbers = #tpu.dot_dimension_numbers<[1], [1], [0], [0], [0, 0, 1, 0], [], []>} : vector<8x8xbf16>, vector<12x8xbf16>, vector<8x12xf32> -> vector<8x12xf32>
    "tpu.trace_stop"() : () -> ()
    %cst_51 = arith.constant 0.353553385 : f32
    %162 = vector.broadcast %cst_51 : f32 to vector<8x12xf32>
    %163 = arith.mulf %161, %162 : vector<8x12xf32>
    %cst_52 = arith.constant dense<0xFF800000> : vector<8xf32>
    %164 = vector.multi_reduction <maximumf>, %163, %cst_52 [1] : vector<8x12xf32> to vector<8xf32>
    %165 = vector.shape_cast %164 : vector<8xf32> to vector<8x1xf32>
    %166 = vector.broadcast %165 : vector<8x1xf32> to vector<8x12xf32>
    %167 = arith.subf %163, %166 : vector<8x12xf32>
    %168 = math.exp %167 : vector<8x12xf32>
    %cst_53 = arith.constant dense<0.000000e+00> : vector<8xf32>
    %169 = vector.multi_reduction <add>, %168, %cst_53 [1] : vector<8x12xf32> to vector<8xf32>
    %170 = vector.shape_cast %169 : vector<8xf32> to vector<8x1xf32>
    %171 = tpu.reciprocal %170 {approx = true} : vector<8x1xf32> -> vector<8x1xf32>
    %172 = vector.broadcast %171 : vector<8x1xf32> to vector<8x12xf32>
    %173 = arith.mulf %168, %172 : vector<8x12xf32>
    %174 = arith.truncf %173 : vector<8x12xf32> to vector<8x12xbf16>
    %cst_54 = arith.constant dense<0.000000e+00> : vector<8x8xf32>
    %175 = tpu.matmul %174, %160, %cst_54 {dimension_numbers = #tpu.dot_dimension_numbers<[1], [0], [0], [1], [0, 0, 1, 1], [], []>} : vector<8x12xbf16>, vector<12x8xbf16>, vector<8x8xf32> -> vector<8x8xf32>
    %176 = vector.extract_strided_slice %125 {offsets = [0, 16], sizes = [8, 8], strides = [1, 1]} : vector<8x32xf32> to vector<8x8xf32>
    %177 = arith.truncf %176 : vector<8x8xf32> to vector<8x8xbf16>
    %178 = vector.extract_strided_slice %132 {offsets = [0, 16], sizes = [12, 8], strides = [1, 1]} : vector<12x32xf32> to vector<12x8xf32>
    %179 = arith.truncf %178 : vector<12x8xf32> to vector<12x8xbf16>
    %180 = vector.extract_strided_slice %133 {offsets = [0, 16], sizes = [12, 8], strides = [1, 1]} : vector<12x32xf32> to vector<12x8xf32>
    %181 = arith.truncf %180 : vector<12x8xf32> to vector<12x8xbf16>
    "tpu.trace_start"() <{level = 10 : i32, message = "qd,kd->qk"}> : () -> ()
    %cst_55 = arith.constant dense<0.000000e+00> : vector<8x12xf32>
    %182 = tpu.matmul %177, %179, %cst_55 {dimension_numbers = #tpu.dot_dimension_numbers<[1], [1], [0], [0], [0, 0, 1, 0], [], []>} : vector<8x8xbf16>, vector<12x8xbf16>, vector<8x12xf32> -> vector<8x12xf32>
    "tpu.trace_stop"() : () -> ()
    %cst_56 = arith.constant 0.353553385 : f32
    %183 = vector.broadcast %cst_56 : f32 to vector<8x12xf32>
    %184 = arith.mulf %182, %183 : vector<8x12xf32>
    %cst_57 = arith.constant dense<0xFF800000> : vector<8xf32>
    %185 = vector.multi_reduction <maximumf>, %184, %cst_57 [1] : vector<8x12xf32> to vector<8xf32>
    %186 = vector.shape_cast %185 : vector<8xf32> to vector<8x1xf32>
    %187 = vector.broadcast %186 : vector<8x1xf32> to vector<8x12xf32>
    %188 = arith.subf %184, %187 : vector<8x12xf32>
    %189 = math.exp %188 : vector<8x12xf32>
    %cst_58 = arith.constant dense<0.000000e+00> : vector<8xf32>
    %190 = vector.multi_reduction <add>, %189, %cst_58 [1] : vector<8x12xf32> to vector<8xf32>
    %191 = vector.shape_cast %190 : vector<8xf32> to vector<8x1xf32>
    %192 = tpu.reciprocal %191 {approx = true} : vector<8x1xf32> -> vector<8x1xf32>
    %193 = vector.broadcast %192 : vector<8x1xf32> to vector<8x12xf32>
    %194 = arith.mulf %189, %193 : vector<8x12xf32>
    %195 = arith.truncf %194 : vector<8x12xf32> to vector<8x12xbf16>
    %cst_59 = arith.constant dense<0.000000e+00> : vector<8x8xf32>
    %196 = tpu.matmul %195, %181, %cst_59 {dimension_numbers = #tpu.dot_dimension_numbers<[1], [0], [0], [1], [0, 0, 1, 1], [], []>} : vector<8x12xbf16>, vector<12x8xbf16>, vector<8x8xf32> -> vector<8x8xf32>
    %197 = vector.extract_strided_slice %125 {offsets = [0, 24], sizes = [8, 8], strides = [1, 1]} : vector<8x32xf32> to vector<8x8xf32>
    %198 = arith.truncf %197 : vector<8x8xf32> to vector<8x8xbf16>
    %199 = vector.extract_strided_slice %132 {offsets = [0, 24], sizes = [12, 8], strides = [1, 1]} : vector<12x32xf32> to vector<12x8xf32>
    %200 = arith.truncf %199 : vector<12x8xf32> to vector<12x8xbf16>
    %201 = vector.extract_strided_slice %133 {offsets = [0, 24], sizes = [12, 8], strides = [1, 1]} : vector<12x32xf32> to vector<12x8xf32>
    %202 = arith.truncf %201 : vector<12x8xf32> to vector<12x8xbf16>
    "tpu.trace_start"() <{level = 10 : i32, message = "qd,kd->qk"}> : () -> ()
    %cst_60 = arith.constant dense<0.000000e+00> : vector<8x12xf32>
    %203 = tpu.matmul %198, %200, %cst_60 {dimension_numbers = #tpu.dot_dimension_numbers<[1], [1], [0], [0], [0, 0, 1, 0], [], []>} : vector<8x8xbf16>, vector<12x8xbf16>, vector<8x12xf32> -> vector<8x12xf32>
    "tpu.trace_stop"() : () -> ()
    %cst_61 = arith.constant 0.353553385 : f32
    %204 = vector.broadcast %cst_61 : f32 to vector<8x12xf32>
    %205 = arith.mulf %203, %204 : vector<8x12xf32>
    %cst_62 = arith.constant dense<0xFF800000> : vector<8xf32>
    %206 = vector.multi_reduction <maximumf>, %205, %cst_62 [1] : vector<8x12xf32> to vector<8xf32>
    %207 = vector.shape_cast %206 : vector<8xf32> to vector<8x1xf32>
    %208 = vector.broadcast %207 : vector<8x1xf32> to vector<8x12xf32>
    %209 = arith.subf %205, %208 : vector<8x12xf32>
    %210 = math.exp %209 : vector<8x12xf32>
    %cst_63 = arith.constant dense<0.000000e+00> : vector<8xf32>
    %211 = vector.multi_reduction <add>, %210, %cst_63 [1] : vector<8x12xf32> to vector<8xf32>
    %212 = vector.shape_cast %211 : vector<8xf32> to vector<8x1xf32>
    %213 = tpu.reciprocal %212 {approx = true} : vector<8x1xf32> -> vector<8x1xf32>
    %214 = vector.broadcast %213 : vector<8x1xf32> to vector<8x12xf32>
    %215 = arith.mulf %210, %214 : vector<8x12xf32>
    %216 = arith.truncf %215 : vector<8x12xf32> to vector<8x12xbf16>
    %cst_64 = arith.constant dense<0.000000e+00> : vector<8x8xf32>
    %217 = tpu.matmul %216, %202, %cst_64 {dimension_numbers = #tpu.dot_dimension_numbers<[1], [0], [0], [1], [0, 0, 1, 1], [], []>} : vector<8x12xbf16>, vector<12x8xbf16>, vector<8x8xf32> -> vector<8x8xf32>
    %218 = tpu.concatenate %154, %175, %196, %217 in 1 : vector<8x8xf32>, vector<8x8xf32>, vector<8x8xf32>, vector<8x8xf32> -> vector<8x32xf32>
    %c0_65 = arith.constant 0 : index
    %c0_66 = arith.constant 0 : index
    %219 = vector.load %arg12[%c0_65, %c0_66] : memref<32x32xbf16, #tpu.memory_space<vmem>>, vector<32x32xbf16>
    %220 = arith.truncf %218 : vector<8x32xf32> to vector<8x32xbf16>
    %cst_67 = arith.constant dense<0.000000e+00> : vector<8x32xf32>
    %221 = tpu.matmul %220, %219, %cst_67 {dimension_numbers = #tpu.dot_dimension_numbers<[1], [0], [0], [1], [0, 0, 1, 1], [], []>} : vector<8x32xbf16>, vector<32x32xbf16>, vector<8x32xf32> -> vector<8x32xf32>
    %222 = arith.addf %119, %221 : vector<8x32xf32>
    %c0_68 = arith.constant 0 : index
    %c0_69 = arith.constant 0 : index
    %223 = vector.load %arg13[%c0_68, %c0_69] : memref<1x32xf32, #tpu.memory_space<vmem>>, vector<1x32xf32>
    %224 = vector.broadcast %223 : vector<1x32xf32> to vector<8x32xf32>
    %225 = arith.addf %222, %224 : vector<8x32xf32>
    %226 = vector.extract_strided_slice %225 {offsets = [0, 0], sizes = [1, 32], strides = [1, 1]} : vector<8x32xf32> to vector<1x32xf32>
    %227 = vector.extract_strided_slice %225 {offsets = [7, 0], sizes = [1, 32], strides = [1, 1]} : vector<8x32xf32> to vector<1x32xf32>
    %228 = tpu.concatenate %226, %226, %225, %227, %227 in 0 : vector<1x32xf32>, vector<1x32xf32>, vector<8x32xf32>, vector<1x32xf32>, vector<1x32xf32> -> vector<12x32xf32>
    %229 = vector.extract_strided_slice %228 {offsets = [0, 0], sizes = [8, 32], strides = [1, 1]} : vector<12x32xf32> to vector<8x32xf32>
    %230 = vector.extract_strided_slice %228 {offsets = [1, 0], sizes = [8, 32], strides = [1, 1]} : vector<12x32xf32> to vector<8x32xf32>
    %231 = arith.addf %229, %230 : vector<8x32xf32>
    %232 = vector.extract_strided_slice %228 {offsets = [2, 0], sizes = [8, 32], strides = [1, 1]} : vector<12x32xf32> to vector<8x32xf32>
    %233 = arith.addf %231, %232 : vector<8x32xf32>
    %234 = vector.extract_strided_slice %228 {offsets = [3, 0], sizes = [8, 32], strides = [1, 1]} : vector<12x32xf32> to vector<8x32xf32>
    %235 = arith.addf %233, %234 : vector<8x32xf32>
    %236 = vector.extract_strided_slice %228 {offsets = [4, 0], sizes = [8, 32], strides = [1, 1]} : vector<12x32xf32> to vector<8x32xf32>
    %237 = arith.addf %235, %236 : vector<8x32xf32>
    %cst_70 = arith.constant 2.000000e-01 : f32
    %238 = vector.broadcast %cst_70 : f32 to vector<8x32xf32>
    %239 = arith.mulf %237, %238 : vector<8x32xf32>
    %240 = arith.subf %225, %239 : vector<8x32xf32>
    %c0_71 = arith.constant 0 : index
    %c0_72 = arith.constant 0 : index
    %241 = vector.load %arg14[%c0_71, %c0_72] : memref<32x64xbf16, #tpu.memory_space<vmem>>, vector<32x64xbf16>
    %242 = arith.truncf %240 : vector<8x32xf32> to vector<8x32xbf16>
    %cst_73 = arith.constant dense<0.000000e+00> : vector<8x64xf32>
    %243 = tpu.matmul %242, %241, %cst_73 {dimension_numbers = #tpu.dot_dimension_numbers<[1], [0], [0], [1], [0, 0, 1, 1], [], []>} : vector<8x32xbf16>, vector<32x64xbf16>, vector<8x64xf32> -> vector<8x64xf32>
    %cst_74 = arith.constant 0.000000e+00 : f32
    %244 = vector.broadcast %cst_74 : f32 to vector<8x64xf32>
    %245 = arith.maximumf %243, %244 : vector<8x64xf32>
    %c0_75 = arith.constant 0 : index
    %c0_76 = arith.constant 0 : index
    %246 = vector.load %arg15[%c0_75, %c0_76] : memref<64x32xbf16, #tpu.memory_space<vmem>>, vector<64x32xbf16>
    %247 = arith.truncf %245 : vector<8x64xf32> to vector<8x64xbf16>
    %cst_77 = arith.constant dense<0.000000e+00> : vector<8x32xf32>
    %248 = tpu.matmul %247, %246, %cst_77 {dimension_numbers = #tpu.dot_dimension_numbers<[1], [0], [0], [1], [0, 0, 1, 1], [], []>} : vector<8x64xbf16>, vector<64x32xbf16>, vector<8x32xf32> -> vector<8x32xf32>
    %249 = arith.addf %240, %248 : vector<8x32xf32>
    %250 = vector.extract_strided_slice %249 {offsets = [0, 0], sizes = [1, 32], strides = [1, 1]} : vector<8x32xf32> to vector<1x32xf32>
    %251 = vector.extract_strided_slice %249 {offsets = [7, 0], sizes = [1, 32], strides = [1, 1]} : vector<8x32xf32> to vector<1x32xf32>
    %252 = tpu.concatenate %250, %250, %249, %251, %251 in 0 : vector<1x32xf32>, vector<1x32xf32>, vector<8x32xf32>, vector<1x32xf32>, vector<1x32xf32> -> vector<12x32xf32>
    %253 = vector.extract_strided_slice %252 {offsets = [0, 0], sizes = [8, 32], strides = [1, 1]} : vector<12x32xf32> to vector<8x32xf32>
    %254 = vector.extract_strided_slice %252 {offsets = [1, 0], sizes = [8, 32], strides = [1, 1]} : vector<12x32xf32> to vector<8x32xf32>
    %255 = arith.addf %253, %254 : vector<8x32xf32>
    %256 = vector.extract_strided_slice %252 {offsets = [2, 0], sizes = [8, 32], strides = [1, 1]} : vector<12x32xf32> to vector<8x32xf32>
    %257 = arith.addf %255, %256 : vector<8x32xf32>
    %258 = vector.extract_strided_slice %252 {offsets = [3, 0], sizes = [8, 32], strides = [1, 1]} : vector<12x32xf32> to vector<8x32xf32>
    %259 = arith.addf %257, %258 : vector<8x32xf32>
    %260 = vector.extract_strided_slice %252 {offsets = [4, 0], sizes = [8, 32], strides = [1, 1]} : vector<12x32xf32> to vector<8x32xf32>
    %261 = arith.addf %259, %260 : vector<8x32xf32>
    %cst_78 = arith.constant 2.000000e-01 : f32
    %262 = vector.broadcast %cst_78 : f32 to vector<8x32xf32>
    %263 = arith.mulf %261, %262 : vector<8x32xf32>
    %264 = arith.subf %249, %263 : vector<8x32xf32>
    %265 = arith.addf %118, %239 : vector<8x32xf32>
    %266 = arith.addf %265, %263 : vector<8x32xf32>
    %c0_79 = arith.constant 0 : index
    %c0_80 = arith.constant 0 : index
    %c0_81 = arith.constant 0 : index
    %267 = vector.load %arg16[%c0_79, %c0_80, %c0_81] : memref<3x32x32xbf16, #tpu.memory_space<vmem>>, vector<3x32x32xbf16>
    %268 = vector.extract_strided_slice %266 {offsets = [7, 0], sizes = [1, 32], strides = [1, 1]} : vector<8x32xf32> to vector<1x32xf32>
    %269 = vector.extract_strided_slice %266 {offsets = [0, 0], sizes = [7, 32], strides = [1, 1]} : vector<8x32xf32> to vector<7x32xf32>
    %270 = tpu.concatenate %268, %269 in 0 : vector<1x32xf32>, vector<7x32xf32> -> vector<8x32xf32>
    %271 = vector.extract_strided_slice %266 {offsets = [1, 0], sizes = [7, 32], strides = [1, 1]} : vector<8x32xf32> to vector<7x32xf32>
    %272 = vector.extract_strided_slice %266 {offsets = [0, 0], sizes = [1, 32], strides = [1, 1]} : vector<8x32xf32> to vector<1x32xf32>
    %273 = tpu.concatenate %271, %272 in 0 : vector<7x32xf32>, vector<1x32xf32> -> vector<8x32xf32>
    %274 = vector.extract_strided_slice %267 {offsets = [0, 0, 0], sizes = [1, 32, 32], strides = [1, 1, 1]} : vector<3x32x32xbf16> to vector<1x32x32xbf16>
    %275 = vector.shape_cast %274 : vector<1x32x32xbf16> to vector<32x32xbf16>
    %276 = arith.truncf %270 : vector<8x32xf32> to vector<8x32xbf16>
    %cst_82 = arith.constant dense<0.000000e+00> : vector<8x32xf32>
    %277 = tpu.matmul %276, %275, %cst_82 {dimension_numbers = #tpu.dot_dimension_numbers<[1], [0], [0], [1], [0, 0, 1, 1], [], []>} : vector<8x32xbf16>, vector<32x32xbf16>, vector<8x32xf32> -> vector<8x32xf32>
    %278 = vector.extract_strided_slice %267 {offsets = [1, 0, 0], sizes = [1, 32, 32], strides = [1, 1, 1]} : vector<3x32x32xbf16> to vector<1x32x32xbf16>
    %279 = vector.shape_cast %278 : vector<1x32x32xbf16> to vector<32x32xbf16>
    %280 = arith.truncf %266 : vector<8x32xf32> to vector<8x32xbf16>
    %cst_83 = arith.constant dense<0.000000e+00> : vector<8x32xf32>
    %281 = tpu.matmul %280, %279, %cst_83 {dimension_numbers = #tpu.dot_dimension_numbers<[1], [0], [0], [1], [0, 0, 1, 1], [], []>} : vector<8x32xbf16>, vector<32x32xbf16>, vector<8x32xf32> -> vector<8x32xf32>
    %282 = arith.addf %277, %281 : vector<8x32xf32>
    %283 = vector.extract_strided_slice %267 {offsets = [2, 0, 0], sizes = [1, 32, 32], strides = [1, 1, 1]} : vector<3x32x32xbf16> to vector<1x32x32xbf16>
    %284 = vector.shape_cast %283 : vector<1x32x32xbf16> to vector<32x32xbf16>
    %285 = arith.truncf %273 : vector<8x32xf32> to vector<8x32xbf16>
    %cst_84 = arith.constant dense<0.000000e+00> : vector<8x32xf32>
    %286 = tpu.matmul %285, %284, %cst_84 {dimension_numbers = #tpu.dot_dimension_numbers<[1], [0], [0], [1], [0, 0, 1, 1], [], []>} : vector<8x32xbf16>, vector<32x32xbf16>, vector<8x32xf32> -> vector<8x32xf32>
    %287 = arith.addf %282, %286 : vector<8x32xf32>
    %288 = arith.mulf %287, %287 : vector<8x32xf32>
    %289 = arith.mulf %287, %288 : vector<8x32xf32>
    %cst_85 = arith.constant 4.471500e-02 : f32
    %290 = vector.broadcast %cst_85 : f32 to vector<8x32xf32>
    %291 = arith.mulf %290, %289 : vector<8x32xf32>
    %292 = arith.addf %287, %291 : vector<8x32xf32>
    %cst_86 = arith.constant 0.797884583 : f32
    %293 = vector.broadcast %cst_86 : f32 to vector<8x32xf32>
    %294 = arith.mulf %293, %292 : vector<8x32xf32>
    %295 = math.tanh %294 : vector<8x32xf32>
    %cst_87 = arith.constant 1.000000e+00 : f32
    %296 = vector.broadcast %cst_87 : f32 to vector<8x32xf32>
    %297 = arith.addf %296, %295 : vector<8x32xf32>
    %cst_88 = arith.constant 5.000000e-01 : f32
    %298 = vector.broadcast %cst_88 : f32 to vector<8x32xf32>
    %299 = arith.mulf %298, %297 : vector<8x32xf32>
    %300 = arith.mulf %287, %299 : vector<8x32xf32>
    %c0_89 = arith.constant 0 : index
    %c0_90 = arith.constant 0 : index
    %c0_91 = arith.constant 0 : index
    %301 = vector.load %arg17[%c0_89, %c0_90, %c0_91] : memref<3x32x16xbf16, #tpu.memory_space<vmem>>, vector<3x32x16xbf16>
    %302 = vector.extract_strided_slice %300 {offsets = [7, 0], sizes = [1, 32], strides = [1, 1]} : vector<8x32xf32> to vector<1x32xf32>
    %303 = vector.extract_strided_slice %300 {offsets = [0, 0], sizes = [7, 32], strides = [1, 1]} : vector<8x32xf32> to vector<7x32xf32>
    %304 = tpu.concatenate %302, %303 in 0 : vector<1x32xf32>, vector<7x32xf32> -> vector<8x32xf32>
    %305 = vector.extract_strided_slice %300 {offsets = [1, 0], sizes = [7, 32], strides = [1, 1]} : vector<8x32xf32> to vector<7x32xf32>
    %306 = vector.extract_strided_slice %300 {offsets = [0, 0], sizes = [1, 32], strides = [1, 1]} : vector<8x32xf32> to vector<1x32xf32>
    %307 = tpu.concatenate %305, %306 in 0 : vector<7x32xf32>, vector<1x32xf32> -> vector<8x32xf32>
    %308 = vector.extract_strided_slice %301 {offsets = [0, 0, 0], sizes = [1, 32, 16], strides = [1, 1, 1]} : vector<3x32x16xbf16> to vector<1x32x16xbf16>
    %309 = vector.shape_cast %308 : vector<1x32x16xbf16> to vector<32x16xbf16>
    %310 = arith.truncf %304 : vector<8x32xf32> to vector<8x32xbf16>
    %cst_92 = arith.constant dense<0.000000e+00> : vector<8x16xf32>
    %311 = tpu.matmul %310, %309, %cst_92 {dimension_numbers = #tpu.dot_dimension_numbers<[1], [0], [0], [1], [0, 0, 1, 1], [], []>} : vector<8x32xbf16>, vector<32x16xbf16>, vector<8x16xf32> -> vector<8x16xf32>
    %312 = vector.extract_strided_slice %301 {offsets = [1, 0, 0], sizes = [1, 32, 16], strides = [1, 1, 1]} : vector<3x32x16xbf16> to vector<1x32x16xbf16>
    %313 = vector.shape_cast %312 : vector<1x32x16xbf16> to vector<32x16xbf16>
    %314 = arith.truncf %300 : vector<8x32xf32> to vector<8x32xbf16>
    %cst_93 = arith.constant dense<0.000000e+00> : vector<8x16xf32>
    %315 = tpu.matmul %314, %313, %cst_93 {dimension_numbers = #tpu.dot_dimension_numbers<[1], [0], [0], [1], [0, 0, 1, 1], [], []>} : vector<8x32xbf16>, vector<32x16xbf16>, vector<8x16xf32> -> vector<8x16xf32>
    %316 = arith.addf %311, %315 : vector<8x16xf32>
    %317 = vector.extract_strided_slice %301 {offsets = [2, 0, 0], sizes = [1, 32, 16], strides = [1, 1, 1]} : vector<3x32x16xbf16> to vector<1x32x16xbf16>
    %318 = vector.shape_cast %317 : vector<1x32x16xbf16> to vector<32x16xbf16>
    %319 = arith.truncf %307 : vector<8x32xf32> to vector<8x32xbf16>
    %cst_94 = arith.constant dense<0.000000e+00> : vector<8x16xf32>
    %320 = tpu.matmul %319, %318, %cst_94 {dimension_numbers = #tpu.dot_dimension_numbers<[1], [0], [0], [1], [0, 0, 1, 1], [], []>} : vector<8x32xbf16>, vector<32x16xbf16>, vector<8x16xf32> -> vector<8x16xf32>
    %321 = arith.addf %316, %320 : vector<8x16xf32>
    %c0_95 = arith.constant 0 : index
    %c0_96 = arith.constant 0 : index
    %c0_97 = arith.constant 0 : index
    %322 = vector.load %arg18[%c0_95, %c0_96, %c0_97] : memref<1x8x32xf32, #tpu.memory_space<vmem>>, vector<1x8x32xf32>
    %323 = vector.shape_cast %322 : vector<1x8x32xf32> to vector<8x32xf32>
    %324 = vector.shape_cast %264 : vector<8x32xf32> to vector<1x8x32xf32>
    tpu.vector_store %arg18[%c0_95, %c0_96, %c0_97], %324 {strides = array<i32>} : memref<1x8x32xf32, #tpu.memory_space<vmem>>, vector<1x8x32xf32>,
    %c0_98 = arith.constant 0 : index
    %c0_99 = arith.constant 0 : index
    %c0_100 = arith.constant 0 : index
    %325 = vector.load %arg3[%c0_98, %c0_99, %c0_100] : memref<1x8x16xf32, #tpu.memory_space<vmem>>, vector<1x8x16xf32>
    %326 = vector.shape_cast %325 : vector<1x8x16xf32> to vector<8x16xf32>
    %327 = arith.addf %326, %321 : vector<8x16xf32>
    %c0_101 = arith.constant 0 : index
    %c0_102 = arith.constant 0 : index
    %c0_103 = arith.constant 0 : index
    %328 = vector.load %arg19[%c0_101, %c0_102, %c0_103] : memref<1x8x16xf32, #tpu.memory_space<vmem>>, vector<1x8x16xf32>
    %329 = vector.shape_cast %328 : vector<1x8x16xf32> to vector<8x16xf32>
    %330 = vector.shape_cast %327 : vector<8x16xf32> to vector<1x8x16xf32>
    tpu.vector_store %arg19[%c0_101, %c0_102, %c0_103], %330 {strides = array<i32>} : memref<1x8x16xf32, #tpu.memory_space<vmem>>, vector<1x8x16xf32>,
    return
  }
  func.func @transform_0(%arg0: i32) -> (i32, i32, i32) {
    %c0_i32 = arith.constant 0 : i32
    %c0_i32_0 = arith.constant 0 : i32
    %c0_i32_1 = arith.constant 0 : i32
    return %arg0, %c0_i32, %c0_i32_0 : i32, i32, i32
  }
  func.func @transform_1(%arg0: i32) -> (i32, i32, i32) {
    %c0_i32 = arith.constant 0 : i32
    %c0_i32_0 = arith.constant 0 : i32
    %c0_i32_1 = arith.constant 0 : i32
    return %arg0, %c0_i32, %c0_i32_0 : i32, i32, i32
  }
  func.func @transform_2(%arg0: i32) -> (i32, i32, i32) {
    %c0_i32 = arith.constant 0 : i32
    %c0_i32_0 = arith.constant 0 : i32
    %c0_i32_1 = arith.constant 0 : i32
    return %arg0, %c0_i32, %c0_i32_0 : i32, i32, i32
  }
  func.func @transform_3(%arg0: i32) -> (i32, i32) {
    %c0_i32 = arith.constant 0 : i32
    %c0_i32_0 = arith.constant 0 : i32
    %c0_i32_1 = arith.constant 0 : i32
    return %c0_i32, %c0_i32_0 : i32, i32
  }
  func.func @transform_4(%arg0: i32) -> (i32, i32) {
    %c0_i32 = arith.constant 0 : i32
    %c0_i32_0 = arith.constant 0 : i32
    %c0_i32_1 = arith.constant 0 : i32
    return %c0_i32, %c0_i32_0 : i32, i32
  }
  func.func @transform_5(%arg0: i32) -> (i32, i32) {
    %c0_i32 = arith.constant 0 : i32
    %c0_i32_0 = arith.constant 0 : i32
    %c0_i32_1 = arith.constant 0 : i32
    return %c0_i32, %c0_i32_0 : i32, i32
  }
  func.func @transform_6(%arg0: i32) -> (i32, i32) {
    %c0_i32 = arith.constant 0 : i32
    %c0_i32_0 = arith.constant 0 : i32
    %c0_i32_1 = arith.constant 0 : i32
    return %c0_i32, %c0_i32_0 : i32, i32
  }
  func.func @transform_7(%arg0: i32) -> (i32, i32) {
    %c0_i32 = arith.constant 0 : i32
    %c0_i32_0 = arith.constant 0 : i32
    %c0_i32_1 = arith.constant 0 : i32
    return %c0_i32, %c0_i32_0 : i32, i32
  }
  func.func @transform_8(%arg0: i32) -> (i32, i32) {
    %c0_i32 = arith.constant 0 : i32
    %c0_i32_0 = arith.constant 0 : i32
    %c0_i32_1 = arith.constant 0 : i32
    return %c0_i32, %c0_i32_0 : i32, i32
  }
  func.func @transform_9(%arg0: i32) -> (i32, i32) {
    %c0_i32 = arith.constant 0 : i32
    %c0_i32_0 = arith.constant 0 : i32
    %c0_i32_1 = arith.constant 0 : i32
    return %c0_i32, %c0_i32_0 : i32, i32
  }
  func.func @transform_10(%arg0: i32) -> (i32, i32) {
    %c0_i32 = arith.constant 0 : i32
    %c0_i32_0 = arith.constant 0 : i32
    %c0_i32_1 = arith.constant 0 : i32
    return %c0_i32, %c0_i32_0 : i32, i32
  }
  func.func @transform_11(%arg0: i32) -> (i32, i32) {
    %c0_i32 = arith.constant 0 : i32
    %c0_i32_0 = arith.constant 0 : i32
    %c0_i32_1 = arith.constant 0 : i32
    return %c0_i32, %c0_i32_0 : i32, i32
  }
  func.func @transform_12(%arg0: i32) -> (i32, i32) {
    %c0_i32 = arith.constant 0 : i32
    %c0_i32_0 = arith.constant 0 : i32
    %c0_i32_1 = arith.constant 0 : i32
    return %c0_i32, %c0_i32_0 : i32, i32
  }
  func.func @transform_13(%arg0: i32) -> (i32, i32) {
    %c0_i32 = arith.constant 0 : i32
    %c0_i32_0 = arith.constant 0 : i32
    %c0_i32_1 = arith.constant 0 : i32
    return %c0_i32, %c0_i32_0 : i32, i32
  }
  func.func @transform_14(%arg0: i32) -> (i32, i32) {
    %c0_i32 = arith.constant 0 : i32
    %c0_i32_0 = arith.constant 0 : i32
    %c0_i32_1 = arith.constant 0 : i32
    return %c0_i32, %c0_i32_0 : i32, i32
  }
  func.func @transform_15(%arg0: i32) -> (i32, i32, i32) {
    %c0_i32 = arith.constant 0 : i32
    %c0_i32_0 = arith.constant 0 : i32
    %c0_i32_1 = arith.constant 0 : i32
    %c0_i32_2 = arith.constant 0 : i32
    return %c0_i32, %c0_i32_0, %c0_i32_1 : i32, i32, i32
  }
  func.func @transform_16(%arg0: i32) -> (i32, i32, i32) {
    %c0_i32 = arith.constant 0 : i32
    %c0_i32_0 = arith.constant 0 : i32
    %c0_i32_1 = arith.constant 0 : i32
    %c0_i32_2 = arith.constant 0 : i32
    return %c0_i32, %c0_i32_0, %c0_i32_1 : i32, i32, i32
  }
  func.func @transform_17(%arg0: i32) -> (i32, i32, i32) {
    %c0_i32 = arith.constant 0 : i32
    %c0_i32_0 = arith.constant 0 : i32
    %c0_i32_1 = arith.constant 0 : i32
    return %arg0, %c0_i32, %c0_i32_0 : i32, i32, i32
  }
  func.func @transform_18(%arg0: i32) -> (i32, i32, i32) {
    %c0_i32 = arith.constant 0 : i32
    %c0_i32_0 = arith.constant 0 : i32
    %c0_i32_1 = arith.constant 0 : i32
    return %arg0, %c0_i32, %c0_i32_0 : i32, i32, i32
  }
}

module attributes {stable_mosaic.version = 11 : i64} {
  func.func @_layer_kernel(%arg0: i32, %arg1: memref<1x8x32xf32, #tpu.memory_space<vmem>>, %arg2: memref<1x12x32xf32, #tpu.memory_space<vmem>>, %arg3: memref<1x8x16xf32, #tpu.memory_space<vmem>>, %arg4: memref<32x96xbf16, #tpu.memory_space<vmem>>, %arg5: memref<1x96xf32, #tpu.memory_space<vmem>>, %arg6: memref<32x32xbf16, #tpu.memory_space<vmem>>, %arg7: memref<1x32xf32, #tpu.memory_space<vmem>>, %arg8: memref<32x32xbf16, #tpu.memory_space<vmem>>, %arg9: memref<1x32xf32, #tpu.memory_space<vmem>>, %arg10: memref<32x64xbf16, #tpu.memory_space<vmem>>, %arg11: memref<1x64xf32, #tpu.memory_space<vmem>>, %arg12: memref<32x32xbf16, #tpu.memory_space<vmem>>, %arg13: memref<1x32xf32, #tpu.memory_space<vmem>>, %arg14: memref<32x64xbf16, #tpu.memory_space<vmem>>, %arg15: memref<64x32xbf16, #tpu.memory_space<vmem>>, %arg16: memref<3x32x32xbf16, #tpu.memory_space<vmem>>, %arg17: memref<3x32x16xbf16, #tpu.memory_space<vmem>>, %arg18: memref<1x8x32xf32, #tpu.memory_space<vmem>>, %arg19: memref<1x8x16xf32, #tpu.memory_space<vmem>>) attributes {dimension_semantics = [#tpu.dimension_semantics<parallel>], iteration_bounds = array<i64: 2>, scalar_prefetch = 0 : i64, scratch_operands = 0 : i64, tpu.core_type = #tpu.core_type<tc>, window_params = [{transform_indices = @transform_0, window_bounds = array<i64: 1, 8, 32>}, {transform_indices = @transform_1, window_bounds = array<i64: 1, 12, 32>}, {transform_indices = @transform_2, window_bounds = array<i64: 1, 8, 16>}, {pipeline_mode = #tpu.pipeline_mode<synchronous>, transform_indices = @transform_3, window_bounds = array<i64: 32, 96>}, {pipeline_mode = #tpu.pipeline_mode<synchronous>, transform_indices = @transform_4, window_bounds = array<i64: 1, 96>}, {pipeline_mode = #tpu.pipeline_mode<synchronous>, transform_indices = @transform_5, window_bounds = array<i64: 32, 32>}, {pipeline_mode = #tpu.pipeline_mode<synchronous>, transform_indices = @transform_6, window_bounds = array<i64: 1, 32>}, {pipeline_mode = #tpu.pipeline_mode<synchronous>, transform_indices = @transform_7, window_bounds = array<i64: 32, 32>}, {pipeline_mode = #tpu.pipeline_mode<synchronous>, transform_indices = @transform_8, window_bounds = array<i64: 1, 32>}, {pipeline_mode = #tpu.pipeline_mode<synchronous>, transform_indices = @transform_9, window_bounds = array<i64: 32, 64>}, {pipeline_mode = #tpu.pipeline_mode<synchronous>, transform_indices = @transform_10, window_bounds = array<i64: 1, 64>}, {pipeline_mode = #tpu.pipeline_mode<synchronous>, transform_indices = @transform_11, window_bounds = array<i64: 32, 32>}, {pipeline_mode = #tpu.pipeline_mode<synchronous>, transform_indices = @transform_12, window_bounds = array<i64: 1, 32>}, {pipeline_mode = #tpu.pipeline_mode<synchronous>, transform_indices = @transform_13, window_bounds = array<i64: 32, 64>}, {pipeline_mode = #tpu.pipeline_mode<synchronous>, transform_indices = @transform_14, window_bounds = array<i64: 64, 32>}, {pipeline_mode = #tpu.pipeline_mode<synchronous>, transform_indices = @transform_15, window_bounds = array<i64: 3, 32, 32>}, {pipeline_mode = #tpu.pipeline_mode<synchronous>, transform_indices = @transform_16, window_bounds = array<i64: 3, 32, 16>}, {transform_indices = @transform_17, window_bounds = array<i64: 1, 8, 32>}, {transform_indices = @transform_18, window_bounds = array<i64: 1, 8, 16>}]} {
    %c0 = arith.constant 0 : index
    %c0_0 = arith.constant 0 : index
    %c0_1 = arith.constant 0 : index
    %0 = vector.load %arg1[%c0, %c0_0, %c0_1] : memref<1x8x32xf32, #tpu.memory_space<vmem>>, vector<1x8x32xf32>
    %1 = vector.shape_cast %0 : vector<1x8x32xf32> to vector<8x32xf32>
    %c0_2 = arith.constant 0 : index
    %c0_3 = arith.constant 0 : index
    %c0_4 = arith.constant 0 : index
    %2 = vector.load %arg2[%c0_2, %c0_3, %c0_4] : memref<1x12x32xf32, #tpu.memory_space<vmem>>, vector<1x12x32xf32>
    %3 = vector.shape_cast %2 : vector<1x12x32xf32> to vector<12x32xf32>
    %c0_5 = arith.constant 0 : index
    %c0_6 = arith.constant 0 : index
    %4 = vector.load %arg4[%c0_5, %c0_6] : memref<32x96xbf16, #tpu.memory_space<vmem>>, vector<32x96xbf16>
    %5 = arith.truncf %1 : vector<8x32xf32> to vector<8x32xbf16>
    %cst = arith.constant dense<0.000000e+00> : vector<8x96xf32>
    %6 = tpu.matmul %5, %4, %cst {dimension_numbers = #tpu.dot_dimension_numbers<[1], [0], [0], [1], [0, 0, 1, 1], [], []>} : vector<8x32xbf16>, vector<32x96xbf16>, vector<8x96xf32> -> vector<8x96xf32>
    %c0_7 = arith.constant 0 : index
    %c0_8 = arith.constant 0 : index
    %7 = vector.load %arg5[%c0_7, %c0_8] : memref<1x96xf32, #tpu.memory_space<vmem>>, vector<1x96xf32>
    %8 = vector.broadcast %7 : vector<1x96xf32> to vector<8x96xf32>
    %9 = arith.addf %6, %8 : vector<8x96xf32>
    %10 = vector.extract_strided_slice %9 {offsets = [0, 0], sizes = [8, 32], strides = [1, 1]} : vector<8x96xf32> to vector<8x32xf32>
    %11 = vector.extract_strided_slice %9 {offsets = [0, 32], sizes = [8, 32], strides = [1, 1]} : vector<8x96xf32> to vector<8x32xf32>
    %12 = vector.extract_strided_slice %9 {offsets = [0, 64], sizes = [8, 32], strides = [1, 1]} : vector<8x96xf32> to vector<8x32xf32>
    %13 = vector.extract_strided_slice %10 {offsets = [0, 0], sizes = [8, 8], strides = [1, 1]} : vector<8x32xf32> to vector<8x8xf32>
    %14 = arith.truncf %13 : vector<8x8xf32> to vector<8x8xbf16>
    %15 = vector.extract_strided_slice %11 {offsets = [0, 0], sizes = [8, 8], strides = [1, 1]} : vector<8x32xf32> to vector<8x8xf32>
    %16 = arith.truncf %15 : vector<8x8xf32> to vector<8x8xbf16>
    %17 = vector.extract_strided_slice %12 {offsets = [0, 0], sizes = [8, 8], strides = [1, 1]} : vector<8x32xf32> to vector<8x8xf32>
    %18 = arith.truncf %17 : vector<8x8xf32> to vector<8x8xbf16>
    "tpu.trace_start"() <{level = 10 : i32, message = "qd,kd->qk"}> : () -> ()
    %cst_9 = arith.constant dense<0.000000e+00> : vector<8x8xf32>
    %19 = tpu.matmul %14, %16, %cst_9 {dimension_numbers = #tpu.dot_dimension_numbers<[1], [1], [0], [0], [0, 0, 1, 0], [], []>} : vector<8x8xbf16>, vector<8x8xbf16>, vector<8x8xf32> -> vector<8x8xf32>
    "tpu.trace_stop"() : () -> ()
    %cst_10 = arith.constant 0.353553385 : f32
    %20 = vector.broadcast %cst_10 : f32 to vector<8x8xf32>
    %21 = arith.mulf %19, %20 : vector<8x8xf32>
    %cst_11 = arith.constant dense<0xFF800000> : vector<8xf32>
    %22 = vector.multi_reduction <maximumf>, %21, %cst_11 [1] : vector<8x8xf32> to vector<8xf32>
    %23 = vector.shape_cast %22 : vector<8xf32> to vector<8x1xf32>
    %24 = vector.broadcast %23 : vector<8x1xf32> to vector<8x8xf32>
    %25 = arith.subf %21, %24 : vector<8x8xf32>
    %26 = math.exp %25 : vector<8x8xf32>
    %cst_12 = arith.constant dense<0.000000e+00> : vector<8xf32>
    %27 = vector.multi_reduction <add>, %26, %cst_12 [1] : vector<8x8xf32> to vector<8xf32>
    %28 = vector.shape_cast %27 : vector<8xf32> to vector<8x1xf32>
    %29 = tpu.reciprocal %28 {approx = true} : vector<8x1xf32> -> vector<8x1xf32>
    %30 = vector.broadcast %29 : vector<8x1xf32> to vector<8x8xf32>
    %31 = arith.mulf %26, %30 : vector<8x8xf32>
    %32 = arith.truncf %31 : vector<8x8xf32> to vector<8x8xbf16>
    %cst_13 = arith.constant dense<0.000000e+00> : vector<8x8xf32>
    %33 = tpu.matmul %32, %18, %cst_13 {dimension_numbers = #tpu.dot_dimension_numbers<[1], [0], [0], [1], [0, 0, 1, 1], [], []>} : vector<8x8xbf16>, vector<8x8xbf16>, vector<8x8xf32> -> vector<8x8xf32>
    %34 = vector.extract_strided_slice %10 {offsets = [0, 8], sizes = [8, 8], strides = [1, 1]} : vector<8x32xf32> to vector<8x8xf32>
    %35 = arith.truncf %34 : vector<8x8xf32> to vector<8x8xbf16>
    %36 = vector.extract_strided_slice %11 {offsets = [0, 8], sizes = [8, 8], strides = [1, 1]} : vector<8x32xf32> to vector<8x8xf32>
    %37 = arith.truncf %36 : vector<8x8xf32> to vector<8x8xbf16>
    %38 = vector.extract_strided_slice %12 {offsets = [0, 8], sizes = [8, 8], strides = [1, 1]} : vector<8x32xf32> to vector<8x8xf32>
    %39 = arith.truncf %38 : vector<8x8xf32> to vector<8x8xbf16>
    "tpu.trace_start"() <{level = 10 : i32, message = "qd,kd->qk"}> : () -> ()
    %cst_14 = arith.constant dense<0.000000e+00> : vector<8x8xf32>
    %40 = tpu.matmul %35, %37, %cst_14 {dimension_numbers = #tpu.dot_dimension_numbers<[1], [1], [0], [0], [0, 0, 1, 0], [], []>} : vector<8x8xbf16>, vector<8x8xbf16>, vector<8x8xf32> -> vector<8x8xf32>
    "tpu.trace_stop"() : () -> ()
    %cst_15 = arith.constant 0.353553385 : f32
    %41 = vector.broadcast %cst_15 : f32 to vector<8x8xf32>
    %42 = arith.mulf %40, %41 : vector<8x8xf32>
    %cst_16 = arith.constant dense<0xFF800000> : vector<8xf32>
    %43 = vector.multi_reduction <maximumf>, %42, %cst_16 [1] : vector<8x8xf32> to vector<8xf32>
    %44 = vector.shape_cast %43 : vector<8xf32> to vector<8x1xf32>
    %45 = vector.broadcast %44 : vector<8x1xf32> to vector<8x8xf32>
    %46 = arith.subf %42, %45 : vector<8x8xf32>
    %47 = math.exp %46 : vector<8x8xf32>
    %cst_17 = arith.constant dense<0.000000e+00> : vector<8xf32>
    %48 = vector.multi_reduction <add>, %47, %cst_17 [1] : vector<8x8xf32> to vector<8xf32>
    %49 = vector.shape_cast %48 : vector<8xf32> to vector<8x1xf32>
    %50 = tpu.reciprocal %49 {approx = true} : vector<8x1xf32> -> vector<8x1xf32>
    %51 = vector.broadcast %50 : vector<8x1xf32> to vector<8x8xf32>
    %52 = arith.mulf %47, %51 : vector<8x8xf32>
    %53 = arith.truncf %52 : vector<8x8xf32> to vector<8x8xbf16>
    %cst_18 = arith.constant dense<0.000000e+00> : vector<8x8xf32>
    %54 = tpu.matmul %53, %39, %cst_18 {dimension_numbers = #tpu.dot_dimension_numbers<[1], [0], [0], [1], [0, 0, 1, 1], [], []>} : vector<8x8xbf16>, vector<8x8xbf16>, vector<8x8xf32> -> vector<8x8xf32>
    %55 = vector.extract_strided_slice %10 {offsets = [0, 16], sizes = [8, 8], strides = [1, 1]} : vector<8x32xf32> to vector<8x8xf32>
    %56 = arith.truncf %55 : vector<8x8xf32> to vector<8x8xbf16>
    %57 = vector.extract_strided_slice %11 {offsets = [0, 16], sizes = [8, 8], strides = [1, 1]} : vector<8x32xf32> to vector<8x8xf32>
    %58 = arith.truncf %57 : vector<8x8xf32> to vector<8x8xbf16>
    %59 = vector.extract_strided_slice %12 {offsets = [0, 16], sizes = [8, 8], strides = [1, 1]} : vector<8x32xf32> to vector<8x8xf32>
    %60 = arith.truncf %59 : vector<8x8xf32> to vector<8x8xbf16>
    "tpu.trace_start"() <{level = 10 : i32, message = "qd,kd->qk"}> : () -> ()
    %cst_19 = arith.constant dense<0.000000e+00> : vector<8x8xf32>
    %61 = tpu.matmul %56, %58, %cst_19 {dimension_numbers = #tpu.dot_dimension_numbers<[1], [1], [0], [0], [0, 0, 1, 0], [], []>} : vector<8x8xbf16>, vector<8x8xbf16>, vector<8x8xf32> -> vector<8x8xf32>
    "tpu.trace_stop"() : () -> ()
    %cst_20 = arith.constant 0.353553385 : f32
    %62 = vector.broadcast %cst_20 : f32 to vector<8x8xf32>
    %63 = arith.mulf %61, %62 : vector<8x8xf32>
    %cst_21 = arith.constant dense<0xFF800000> : vector<8xf32>
    %64 = vector.multi_reduction <maximumf>, %63, %cst_21 [1] : vector<8x8xf32> to vector<8xf32>
    %65 = vector.shape_cast %64 : vector<8xf32> to vector<8x1xf32>
    %66 = vector.broadcast %65 : vector<8x1xf32> to vector<8x8xf32>
    %67 = arith.subf %63, %66 : vector<8x8xf32>
    %68 = math.exp %67 : vector<8x8xf32>
    %cst_22 = arith.constant dense<0.000000e+00> : vector<8xf32>
    %69 = vector.multi_reduction <add>, %68, %cst_22 [1] : vector<8x8xf32> to vector<8xf32>
    %70 = vector.shape_cast %69 : vector<8xf32> to vector<8x1xf32>
    %71 = tpu.reciprocal %70 {approx = true} : vector<8x1xf32> -> vector<8x1xf32>
    %72 = vector.broadcast %71 : vector<8x1xf32> to vector<8x8xf32>
    %73 = arith.mulf %68, %72 : vector<8x8xf32>
    %74 = arith.truncf %73 : vector<8x8xf32> to vector<8x8xbf16>
    %cst_23 = arith.constant dense<0.000000e+00> : vector<8x8xf32>
    %75 = tpu.matmul %74, %60, %cst_23 {dimension_numbers = #tpu.dot_dimension_numbers<[1], [0], [0], [1], [0, 0, 1, 1], [], []>} : vector<8x8xbf16>, vector<8x8xbf16>, vector<8x8xf32> -> vector<8x8xf32>
    %76 = vector.extract_strided_slice %10 {offsets = [0, 24], sizes = [8, 8], strides = [1, 1]} : vector<8x32xf32> to vector<8x8xf32>
    %77 = arith.truncf %76 : vector<8x8xf32> to vector<8x8xbf16>
    %78 = vector.extract_strided_slice %11 {offsets = [0, 24], sizes = [8, 8], strides = [1, 1]} : vector<8x32xf32> to vector<8x8xf32>
    %79 = arith.truncf %78 : vector<8x8xf32> to vector<8x8xbf16>
    %80 = vector.extract_strided_slice %12 {offsets = [0, 24], sizes = [8, 8], strides = [1, 1]} : vector<8x32xf32> to vector<8x8xf32>
    %81 = arith.truncf %80 : vector<8x8xf32> to vector<8x8xbf16>
    "tpu.trace_start"() <{level = 10 : i32, message = "qd,kd->qk"}> : () -> ()
    %cst_24 = arith.constant dense<0.000000e+00> : vector<8x8xf32>
    %82 = tpu.matmul %77, %79, %cst_24 {dimension_numbers = #tpu.dot_dimension_numbers<[1], [1], [0], [0], [0, 0, 1, 0], [], []>} : vector<8x8xbf16>, vector<8x8xbf16>, vector<8x8xf32> -> vector<8x8xf32>
    "tpu.trace_stop"() : () -> ()
    %cst_25 = arith.constant 0.353553385 : f32
    %83 = vector.broadcast %cst_25 : f32 to vector<8x8xf32>
    %84 = arith.mulf %82, %83 : vector<8x8xf32>
    %cst_26 = arith.constant dense<0xFF800000> : vector<8xf32>
    %85 = vector.multi_reduction <maximumf>, %84, %cst_26 [1] : vector<8x8xf32> to vector<8xf32>
    %86 = vector.shape_cast %85 : vector<8xf32> to vector<8x1xf32>
    %87 = vector.broadcast %86 : vector<8x1xf32> to vector<8x8xf32>
    %88 = arith.subf %84, %87 : vector<8x8xf32>
    %89 = math.exp %88 : vector<8x8xf32>
    %cst_27 = arith.constant dense<0.000000e+00> : vector<8xf32>
    %90 = vector.multi_reduction <add>, %89, %cst_27 [1] : vector<8x8xf32> to vector<8xf32>
    %91 = vector.shape_cast %90 : vector<8xf32> to vector<8x1xf32>
    %92 = tpu.reciprocal %91 {approx = true} : vector<8x1xf32> -> vector<8x1xf32>
    %93 = vector.broadcast %92 : vector<8x1xf32> to vector<8x8xf32>
    %94 = arith.mulf %89, %93 : vector<8x8xf32>
    %95 = arith.truncf %94 : vector<8x8xf32> to vector<8x8xbf16>
    %cst_28 = arith.constant dense<0.000000e+00> : vector<8x8xf32>
    %96 = tpu.matmul %95, %81, %cst_28 {dimension_numbers = #tpu.dot_dimension_numbers<[1], [0], [0], [1], [0, 0, 1, 1], [], []>} : vector<8x8xbf16>, vector<8x8xbf16>, vector<8x8xf32> -> vector<8x8xf32>
    %97 = tpu.concatenate %33, %54, %75, %96 in 1 : vector<8x8xf32>, vector<8x8xf32>, vector<8x8xf32>, vector<8x8xf32> -> vector<8x32xf32>
    %c0_29 = arith.constant 0 : index
    %c0_30 = arith.constant 0 : index
    %98 = vector.load %arg6[%c0_29, %c0_30] : memref<32x32xbf16, #tpu.memory_space<vmem>>, vector<32x32xbf16>
    %99 = arith.truncf %97 : vector<8x32xf32> to vector<8x32xbf16>
    %cst_31 = arith.constant dense<0.000000e+00> : vector<8x32xf32>
    %100 = tpu.matmul %99, %98, %cst_31 {dimension_numbers = #tpu.dot_dimension_numbers<[1], [0], [0], [1], [0, 0, 1, 1], [], []>} : vector<8x32xbf16>, vector<32x32xbf16>, vector<8x32xf32> -> vector<8x32xf32>
    %101 = arith.addf %1, %100 : vector<8x32xf32>
    %c0_32 = arith.constant 0 : index
    %c0_33 = arith.constant 0 : index
    %102 = vector.load %arg7[%c0_32, %c0_33] : memref<1x32xf32, #tpu.memory_space<vmem>>, vector<1x32xf32>
    %103 = vector.broadcast %102 : vector<1x32xf32> to vector<8x32xf32>
    %104 = arith.addf %101, %103 : vector<8x32xf32>
    %105 = vector.extract_strided_slice %104 {offsets = [0, 0], sizes = [1, 32], strides = [1, 1]} : vector<8x32xf32> to vector<1x32xf32>
    %106 = vector.extract_strided_slice %104 {offsets = [7, 0], sizes = [1, 32], strides = [1, 1]} : vector<8x32xf32> to vector<1x32xf32>
    %107 = tpu.concatenate %105, %105, %104, %106, %106 in 0 : vector<1x32xf32>, vector<1x32xf32>, vector<8x32xf32>, vector<1x32xf32>, vector<1x32xf32> -> vector<12x32xf32>
    %108 = vector.extract_strided_slice %107 {offsets = [0, 0], sizes = [8, 32], strides = [1, 1]} : vector<12x32xf32> to vector<8x32xf32>
    %109 = vector.extract_strided_slice %107 {offsets = [1, 0], sizes = [8, 32], strides = [1, 1]} : vector<12x32xf32> to vector<8x32xf32>
    %110 = arith.addf %108, %109 : vector<8x32xf32>
    %111 = vector.extract_strided_slice %107 {offsets = [2, 0], sizes = [8, 32], strides = [1, 1]} : vector<12x32xf32> to vector<8x32xf32>
    %112 = arith.addf %110, %111 : vector<8x32xf32>
    %113 = vector.extract_strided_slice %107 {offsets = [3, 0], sizes = [8, 32], strides = [1, 1]} : vector<12x32xf32> to vector<8x32xf32>
    %114 = arith.addf %112, %113 : vector<8x32xf32>
    %115 = vector.extract_strided_slice %107 {offsets = [4, 0], sizes = [8, 32], strides = [1, 1]} : vector<12x32xf32> to vector<8x32xf32>
    %116 = arith.addf %114, %115 : vector<8x32xf32>
    %cst_34 = arith.constant 2.000000e-01 : f32
    %117 = vector.broadcast %cst_34 : f32 to vector<8x32xf32>
    %118 = arith.mulf %116, %117 : vector<8x32xf32>
    %119 = arith.subf %104, %118 : vector<8x32xf32>
    %c0_35 = arith.constant 0 : index
    %c0_36 = arith.constant 0 : index
    %120 = vector.load %arg8[%c0_35, %c0_36] : memref<32x32xbf16, #tpu.memory_space<vmem>>, vector<32x32xbf16>
    %121 = arith.truncf %119 : vector<8x32xf32> to vector<8x32xbf16>
    %cst_37 = arith.constant dense<0.000000e+00> : vector<8x32xf32>
    %122 = tpu.matmul %121, %120, %cst_37 {dimension_numbers = #tpu.dot_dimension_numbers<[1], [0], [0], [1], [0, 0, 1, 1], [], []>} : vector<8x32xbf16>, vector<32x32xbf16>, vector<8x32xf32> -> vector<8x32xf32>
    %c0_38 = arith.constant 0 : index
    %c0_39 = arith.constant 0 : index
    %123 = vector.load %arg9[%c0_38, %c0_39] : memref<1x32xf32, #tpu.memory_space<vmem>>, vector<1x32xf32>
    %124 = vector.broadcast %123 : vector<1x32xf32> to vector<8x32xf32>
    %125 = arith.addf %122, %124 : vector<8x32xf32>
    %c0_40 = arith.constant 0 : index
    %c0_41 = arith.constant 0 : index
    %126 = vector.load %arg10[%c0_40, %c0_41] : memref<32x64xbf16, #tpu.memory_space<vmem>>, vector<32x64xbf16>
    %127 = arith.truncf %3 : vector<12x32xf32> to vector<12x32xbf16>
    %cst_42 = arith.constant dense<0.000000e+00> : vector<12x64xf32>
    %128 = tpu.matmul %127, %126, %cst_42 {dimension_numbers = #tpu.dot_dimension_numbers<[1], [0], [0], [1], [0, 0, 1, 1], [], []>} : vector<12x32xbf16>, vector<32x64xbf16>, vector<12x64xf32> -> vector<12x64xf32>
    %c0_43 = arith.constant 0 : index
    %c0_44 = arith.constant 0 : index
    %129 = vector.load %arg11[%c0_43, %c0_44] : memref<1x64xf32, #tpu.memory_space<vmem>>, vector<1x64xf32>
    %130 = vector.broadcast %129 : vector<1x64xf32> to vector<12x64xf32>
    %131 = arith.addf %128, %130 : vector<12x64xf32>
    %132 = vector.extract_strided_slice %131 {offsets = [0, 0], sizes = [12, 32], strides = [1, 1]} : vector<12x64xf32> to vector<12x32xf32>
    %133 = vector.extract_strided_slice %131 {offsets = [0, 32], sizes = [12, 32], strides = [1, 1]} : vector<12x64xf32> to vector<12x32xf32>
    %134 = vector.extract_strided_slice %125 {offsets = [0, 0], sizes = [8, 8], strides = [1, 1]} : vector<8x32xf32> to vector<8x8xf32>
    %135 = arith.truncf %134 : vector<8x8xf32> to vector<8x8xbf16>
    %136 = vector.extract_strided_slice %132 {offsets = [0, 0], sizes = [12, 8], strides = [1, 1]} : vector<12x32xf32> to vector<12x8xf32>
    %137 = arith.truncf %136 : vector<12x8xf32> to vector<12x8xbf16>
    %138 = vector.extract_strided_slice %133 {offsets = [0, 0], sizes = [12, 8], strides = [1, 1]} : vector<12x32xf32> to vector<12x8xf32>
    %139 = arith.truncf %138 : vector<12x8xf32> to vector<12x8xbf16>
    "tpu.trace_start"() <{level = 10 : i32, message = "qd,kd->qk"}> : () -> ()
    %cst_45 = arith.constant dense<0.000000e+00> : vector<8x12xf32>
    %140 = tpu.matmul %135, %137, %cst_45 {dimension_numbers = #tpu.dot_dimension_numbers<[1], [1], [0], [0], [0, 0, 1, 0], [], []>} : vector<8x8xbf16>, vector<12x8xbf16>, vector<8x12xf32> -> vector<8x12xf32>
    "tpu.trace_stop"() : () -> ()
    %cst_46 = arith.constant 0.353553385 : f32
    %141 = vector.broadcast %cst_46 : f32 to vector<8x12xf32>
    %142 = arith.mulf %140, %141 : vector<8x12xf32>
    %cst_47 = arith.constant dense<0xFF800000> : vector<8xf32>
    %143 = vector.multi_reduction <maximumf>, %142, %cst_47 [1] : vector<8x12xf32> to vector<8xf32>
    %144 = vector.shape_cast %143 : vector<8xf32> to vector<8x1xf32>
    %145 = vector.broadcast %144 : vector<8x1xf32> to vector<8x12xf32>
    %146 = arith.subf %142, %145 : vector<8x12xf32>
    %147 = math.exp %146 : vector<8x12xf32>
    %cst_48 = arith.constant dense<0.000000e+00> : vector<8xf32>
    %148 = vector.multi_reduction <add>, %147, %cst_48 [1] : vector<8x12xf32> to vector<8xf32>
    %149 = vector.shape_cast %148 : vector<8xf32> to vector<8x1xf32>
    %150 = tpu.reciprocal %149 {approx = true} : vector<8x1xf32> -> vector<8x1xf32>
    %151 = vector.broadcast %150 : vector<8x1xf32> to vector<8x12xf32>
    %152 = arith.mulf %147, %151 : vector<8x12xf32>
    %153 = arith.truncf %152 : vector<8x12xf32> to vector<8x12xbf16>
    %cst_49 = arith.constant dense<0.000000e+00> : vector<8x8xf32>
    %154 = tpu.matmul %153, %139, %cst_49 {dimension_numbers = #tpu.dot_dimension_numbers<[1], [0], [0], [1], [0, 0, 1, 1], [], []>} : vector<8x12xbf16>, vector<12x8xbf16>, vector<8x8xf32> -> vector<8x8xf32>
    %155 = vector.extract_strided_slice %125 {offsets = [0, 8], sizes = [8, 8], strides = [1, 1]} : vector<8x32xf32> to vector<8x8xf32>
    %156 = arith.truncf %155 : vector<8x8xf32> to vector<8x8xbf16>
    %157 = vector.extract_strided_slice %132 {offsets = [0, 8], sizes = [12, 8], strides = [1, 1]} : vector<12x32xf32> to vector<12x8xf32>
    %158 = arith.truncf %157 : vector<12x8xf32> to vector<12x8xbf16>
    %159 = vector.extract_strided_slice %133 {offsets = [0, 8], sizes = [12, 8], strides = [1, 1]} : vector<12x32xf32> to vector<12x8xf32>
    %160 = arith.truncf %159 : vector<12x8xf32> to vector<12x8xbf16>
    "tpu.trace_start"() <{level = 10 : i32, message = "qd,kd->qk"}> : () -> ()
    %cst_50 = arith.constant dense<0.000000e+00> : vector<8x12xf32>
    %161 = tpu.matmul %156, %158, %cst_50 {dimension_numbers = #tpu.dot_dimension_numbers<[1], [1], [0], [0], [0, 0, 1, 0], [], []>} : vector<8x8xbf16>, vector<12x8xbf16>, vector<8x12xf32> -> vector<8x12xf32>
    "tpu.trace_stop"() : () -> ()
    %cst_51 = arith.constant 0.353553385 : f32
    %162 = vector.broadcast %cst_51 : f32 to vector<8x12xf32>
    %163 = arith.mulf %161, %162 : vector<8x12xf32>
    %cst_52 = arith.constant dense<0xFF800000> : vector<8xf32>
    %164 = vector.multi_reduction <maximumf>, %163, %cst_52 [1] : vector<8x12xf32> to vector<8xf32>
    %165 = vector.shape_cast %164 : vector<8xf32> to vector<8x1xf32>
    %166 = vector.broadcast %165 : vector<8x1xf32> to vector<8x12xf32>
    %167 = arith.subf %163, %166 : vector<8x12xf32>
    %168 = math.exp %167 : vector<8x12xf32>
    %cst_53 = arith.constant dense<0.000000e+00> : vector<8xf32>
    %169 = vector.multi_reduction <add>, %168, %cst_53 [1] : vector<8x12xf32> to vector<8xf32>
    %170 = vector.shape_cast %169 : vector<8xf32> to vector<8x1xf32>
    %171 = tpu.reciprocal %170 {approx = true} : vector<8x1xf32> -> vector<8x1xf32>
    %172 = vector.broadcast %171 : vector<8x1xf32> to vector<8x12xf32>
    %173 = arith.mulf %168, %172 : vector<8x12xf32>
    %174 = arith.truncf %173 : vector<8x12xf32> to vector<8x12xbf16>
    %cst_54 = arith.constant dense<0.000000e+00> : vector<8x8xf32>
    %175 = tpu.matmul %174, %160, %cst_54 {dimension_numbers = #tpu.dot_dimension_numbers<[1], [0], [0], [1], [0, 0, 1, 1], [], []>} : vector<8x12xbf16>, vector<12x8xbf16>, vector<8x8xf32> -> vector<8x8xf32>
    %176 = vector.extract_strided_slice %125 {offsets = [0, 16], sizes = [8, 8], strides = [1, 1]} : vector<8x32xf32> to vector<8x8xf32>
    %177 = arith.truncf %176 : vector<8x8xf32> to vector<8x8xbf16>
    %178 = vector.extract_strided_slice %132 {offsets = [0, 16], sizes = [12, 8], strides = [1, 1]} : vector<12x32xf32> to vector<12x8xf32>
    %179 = arith.truncf %178 : vector<12x8xf32> to vector<12x8xbf16>
    %180 = vector.extract_strided_slice %133 {offsets = [0, 16], sizes = [12, 8], strides = [1, 1]} : vector<12x32xf32> to vector<12x8xf32>
    %181 = arith.truncf %180 : vector<12x8xf32> to vector<12x8xbf16>
    "tpu.trace_start"() <{level = 10 : i32, message = "qd,kd->qk"}> : () -> ()
    %cst_55 = arith.constant dense<0.000000e+00> : vector<8x12xf32>
    %182 = tpu.matmul %177, %179, %cst_55 {dimension_numbers = #tpu.dot_dimension_numbers<[1], [1], [0], [0], [0, 0, 1, 0], [], []>} : vector<8x8xbf16>, vector<12x8xbf16>, vector<8x12xf32> -> vector<8x12xf32>
    "tpu.trace_stop"() : () -> ()
    %cst_56 = arith.constant 0.353553385 : f32
    %183 = vector.broadcast %cst_56 : f32 to vector<8x12xf32>
    %184 = arith.mulf %182, %183 : vector<8x12xf32>
    %cst_57 = arith.constant dense<0xFF800000> : vector<8xf32>
    %185 = vector.multi_reduction <maximumf>, %184, %cst_57 [1] : vector<8x12xf32> to vector<8xf32>
    %186 = vector.shape_cast %185 : vector<8xf32> to vector<8x1xf32>
    %187 = vector.broadcast %186 : vector<8x1xf32> to vector<8x12xf32>
    %188 = arith.subf %184, %187 : vector<8x12xf32>
    %189 = math.exp %188 : vector<8x12xf32>
    %cst_58 = arith.constant dense<0.000000e+00> : vector<8xf32>
    %190 = vector.multi_reduction <add>, %189, %cst_58 [1] : vector<8x12xf32> to vector<8xf32>
    %191 = vector.shape_cast %190 : vector<8xf32> to vector<8x1xf32>
    %192 = tpu.reciprocal %191 {approx = true} : vector<8x1xf32> -> vector<8x1xf32>
    %193 = vector.broadcast %192 : vector<8x1xf32> to vector<8x12xf32>
    %194 = arith.mulf %189, %193 : vector<8x12xf32>
    %195 = arith.truncf %194 : vector<8x12xf32> to vector<8x12xbf16>
    %cst_59 = arith.constant dense<0.000000e+00> : vector<8x8xf32>
    %196 = tpu.matmul %195, %181, %cst_59 {dimension_numbers = #tpu.dot_dimension_numbers<[1], [0], [0], [1], [0, 0, 1, 1], [], []>} : vector<8x12xbf16>, vector<12x8xbf16>, vector<8x8xf32> -> vector<8x8xf32>
    %197 = vector.extract_strided_slice %125 {offsets = [0, 24], sizes = [8, 8], strides = [1, 1]} : vector<8x32xf32> to vector<8x8xf32>
    %198 = arith.truncf %197 : vector<8x8xf32> to vector<8x8xbf16>
    %199 = vector.extract_strided_slice %132 {offsets = [0, 24], sizes = [12, 8], strides = [1, 1]} : vector<12x32xf32> to vector<12x8xf32>
    %200 = arith.truncf %199 : vector<12x8xf32> to vector<12x8xbf16>
    %201 = vector.extract_strided_slice %133 {offsets = [0, 24], sizes = [12, 8], strides = [1, 1]} : vector<12x32xf32> to vector<12x8xf32>
    %202 = arith.truncf %201 : vector<12x8xf32> to vector<12x8xbf16>
    "tpu.trace_start"() <{level = 10 : i32, message = "qd,kd->qk"}> : () -> ()
    %cst_60 = arith.constant dense<0.000000e+00> : vector<8x12xf32>
    %203 = tpu.matmul %198, %200, %cst_60 {dimension_numbers = #tpu.dot_dimension_numbers<[1], [1], [0], [0], [0, 0, 1, 0], [], []>} : vector<8x8xbf16>, vector<12x8xbf16>, vector<8x12xf32> -> vector<8x12xf32>
    "tpu.trace_stop"() : () -> ()
    %cst_61 = arith.constant 0.353553385 : f32
    %204 = vector.broadcast %cst_61 : f32 to vector<8x12xf32>
    %205 = arith.mulf %203, %204 : vector<8x12xf32>
    %cst_62 = arith.constant dense<0xFF800000> : vector<8xf32>
    %206 = vector.multi_reduction <maximumf>, %205, %cst_62 [1] : vector<8x12xf32> to vector<8xf32>
    %207 = vector.shape_cast %206 : vector<8xf32> to vector<8x1xf32>
    %208 = vector.broadcast %207 : vector<8x1xf32> to vector<8x12xf32>
    %209 = arith.subf %205, %208 : vector<8x12xf32>
    %210 = math.exp %209 : vector<8x12xf32>
    %cst_63 = arith.constant dense<0.000000e+00> : vector<8xf32>
    %211 = vector.multi_reduction <add>, %210, %cst_63 [1] : vector<8x12xf32> to vector<8xf32>
    %212 = vector.shape_cast %211 : vector<8xf32> to vector<8x1xf32>
    %213 = tpu.reciprocal %212 {approx = true} : vector<8x1xf32> -> vector<8x1xf32>
    %214 = vector.broadcast %213 : vector<8x1xf32> to vector<8x12xf32>
    %215 = arith.mulf %210, %214 : vector<8x12xf32>
    %216 = arith.truncf %215 : vector<8x12xf32> to vector<8x12xbf16>
    %cst_64 = arith.constant dense<0.000000e+00> : vector<8x8xf32>
    %217 = tpu.matmul %216, %202, %cst_64 {dimension_numbers = #tpu.dot_dimension_numbers<[1], [0], [0], [1], [0, 0, 1, 1], [], []>} : vector<8x12xbf16>, vector<12x8xbf16>, vector<8x8xf32> -> vector<8x8xf32>
    %218 = tpu.concatenate %154, %175, %196, %217 in 1 : vector<8x8xf32>, vector<8x8xf32>, vector<8x8xf32>, vector<8x8xf32> -> vector<8x32xf32>
    %c0_65 = arith.constant 0 : index
    %c0_66 = arith.constant 0 : index
    %219 = vector.load %arg12[%c0_65, %c0_66] : memref<32x32xbf16, #tpu.memory_space<vmem>>, vector<32x32xbf16>
    %220 = arith.truncf %218 : vector<8x32xf32> to vector<8x32xbf16>
    %cst_67 = arith.constant dense<0.000000e+00> : vector<8x32xf32>
    %221 = tpu.matmul %220, %219, %cst_67 {dimension_numbers = #tpu.dot_dimension_numbers<[1], [0], [0], [1], [0, 0, 1, 1], [], []>} : vector<8x32xbf16>, vector<32x32xbf16>, vector<8x32xf32> -> vector<8x32xf32>
    %222 = arith.addf %119, %221 : vector<8x32xf32>
    %c0_68 = arith.constant 0 : index
    %c0_69 = arith.constant 0 : index
    %223 = vector.load %arg13[%c0_68, %c0_69] : memref<1x32xf32, #tpu.memory_space<vmem>>, vector<1x32xf32>
    %224 = vector.broadcast %223 : vector<1x32xf32> to vector<8x32xf32>
    %225 = arith.addf %222, %224 : vector<8x32xf32>
    %226 = vector.extract_strided_slice %225 {offsets = [0, 0], sizes = [1, 32], strides = [1, 1]} : vector<8x32xf32> to vector<1x32xf32>
    %227 = vector.extract_strided_slice %225 {offsets = [7, 0], sizes = [1, 32], strides = [1, 1]} : vector<8x32xf32> to vector<1x32xf32>
    %228 = tpu.concatenate %226, %226, %225, %227, %227 in 0 : vector<1x32xf32>, vector<1x32xf32>, vector<8x32xf32>, vector<1x32xf32>, vector<1x32xf32> -> vector<12x32xf32>
    %229 = vector.extract_strided_slice %228 {offsets = [0, 0], sizes = [8, 32], strides = [1, 1]} : vector<12x32xf32> to vector<8x32xf32>
    %230 = vector.extract_strided_slice %228 {offsets = [1, 0], sizes = [8, 32], strides = [1, 1]} : vector<12x32xf32> to vector<8x32xf32>
    %231 = arith.addf %229, %230 : vector<8x32xf32>
    %232 = vector.extract_strided_slice %228 {offsets = [2, 0], sizes = [8, 32], strides = [1, 1]} : vector<12x32xf32> to vector<8x32xf32>
    %233 = arith.addf %231, %232 : vector<8x32xf32>
    %234 = vector.extract_strided_slice %228 {offsets = [3, 0], sizes = [8, 32], strides = [1, 1]} : vector<12x32xf32> to vector<8x32xf32>
    %235 = arith.addf %233, %234 : vector<8x32xf32>
    %236 = vector.extract_strided_slice %228 {offsets = [4, 0], sizes = [8, 32], strides = [1, 1]} : vector<12x32xf32> to vector<8x32xf32>
    %237 = arith.addf %235, %236 : vector<8x32xf32>
    %cst_70 = arith.constant 2.000000e-01 : f32
    %238 = vector.broadcast %cst_70 : f32 to vector<8x32xf32>
    %239 = arith.mulf %237, %238 : vector<8x32xf32>
    %240 = arith.subf %225, %239 : vector<8x32xf32>
    %c0_71 = arith.constant 0 : index
    %c0_72 = arith.constant 0 : index
    %241 = vector.load %arg14[%c0_71, %c0_72] : memref<32x64xbf16, #tpu.memory_space<vmem>>, vector<32x64xbf16>
    %242 = arith.truncf %240 : vector<8x32xf32> to vector<8x32xbf16>
    %cst_73 = arith.constant dense<0.000000e+00> : vector<8x64xf32>
    %243 = tpu.matmul %242, %241, %cst_73 {dimension_numbers = #tpu.dot_dimension_numbers<[1], [0], [0], [1], [0, 0, 1, 1], [], []>} : vector<8x32xbf16>, vector<32x64xbf16>, vector<8x64xf32> -> vector<8x64xf32>
    %cst_74 = arith.constant 0.000000e+00 : f32
    %244 = vector.broadcast %cst_74 : f32 to vector<8x64xf32>
    %245 = arith.maximumf %243, %244 : vector<8x64xf32>
    %c0_75 = arith.constant 0 : index
    %c0_76 = arith.constant 0 : index
    %246 = vector.load %arg15[%c0_75, %c0_76] : memref<64x32xbf16, #tpu.memory_space<vmem>>, vector<64x32xbf16>
    %247 = arith.truncf %245 : vector<8x64xf32> to vector<8x64xbf16>
    %cst_77 = arith.constant dense<0.000000e+00> : vector<8x32xf32>
    %248 = tpu.matmul %247, %246, %cst_77 {dimension_numbers = #tpu.dot_dimension_numbers<[1], [0], [0], [1], [0, 0, 1, 1], [], []>} : vector<8x64xbf16>, vector<64x32xbf16>, vector<8x32xf32> -> vector<8x32xf32>
    %249 = arith.addf %240, %248 : vector<8x32xf32>
    %250 = vector.extract_strided_slice %249 {offsets = [0, 0], sizes = [1, 32], strides = [1, 1]} : vector<8x32xf32> to vector<1x32xf32>
    %251 = vector.extract_strided_slice %249 {offsets = [7, 0], sizes = [1, 32], strides = [1, 1]} : vector<8x32xf32> to vector<1x32xf32>
    %252 = tpu.concatenate %250, %250, %249, %251, %251 in 0 : vector<1x32xf32>, vector<1x32xf32>, vector<8x32xf32>, vector<1x32xf32>, vector<1x32xf32> -> vector<12x32xf32>
    %253 = vector.extract_strided_slice %252 {offsets = [0, 0], sizes = [8, 32], strides = [1, 1]} : vector<12x32xf32> to vector<8x32xf32>
    %254 = vector.extract_strided_slice %252 {offsets = [1, 0], sizes = [8, 32], strides = [1, 1]} : vector<12x32xf32> to vector<8x32xf32>
    %255 = arith.addf %253, %254 : vector<8x32xf32>
    %256 = vector.extract_strided_slice %252 {offsets = [2, 0], sizes = [8, 32], strides = [1, 1]} : vector<12x32xf32> to vector<8x32xf32>
    %257 = arith.addf %255, %256 : vector<8x32xf32>
    %258 = vector.extract_strided_slice %252 {offsets = [3, 0], sizes = [8, 32], strides = [1, 1]} : vector<12x32xf32> to vector<8x32xf32>
    %259 = arith.addf %257, %258 : vector<8x32xf32>
    %260 = vector.extract_strided_slice %252 {offsets = [4, 0], sizes = [8, 32], strides = [1, 1]} : vector<12x32xf32> to vector<8x32xf32>
    %261 = arith.addf %259, %260 : vector<8x32xf32>
    %cst_78 = arith.constant 2.000000e-01 : f32
    %262 = vector.broadcast %cst_78 : f32 to vector<8x32xf32>
    %263 = arith.mulf %261, %262 : vector<8x32xf32>
    %264 = arith.subf %249, %263 : vector<8x32xf32>
    %265 = arith.addf %118, %239 : vector<8x32xf32>
    %266 = arith.addf %265, %263 : vector<8x32xf32>
    %c0_79 = arith.constant 0 : index
    %c0_80 = arith.constant 0 : index
    %c0_81 = arith.constant 0 : index
    %267 = vector.load %arg16[%c0_79, %c0_80, %c0_81] : memref<3x32x32xbf16, #tpu.memory_space<vmem>>, vector<3x32x32xbf16>
    %268 = vector.extract_strided_slice %266 {offsets = [7, 0], sizes = [1, 32], strides = [1, 1]} : vector<8x32xf32> to vector<1x32xf32>
    %269 = vector.extract_strided_slice %266 {offsets = [0, 0], sizes = [7, 32], strides = [1, 1]} : vector<8x32xf32> to vector<7x32xf32>
    %270 = tpu.concatenate %268, %269 in 0 : vector<1x32xf32>, vector<7x32xf32> -> vector<8x32xf32>
    %271 = vector.extract_strided_slice %266 {offsets = [1, 0], sizes = [7, 32], strides = [1, 1]} : vector<8x32xf32> to vector<7x32xf32>
    %272 = vector.extract_strided_slice %266 {offsets = [0, 0], sizes = [1, 32], strides = [1, 1]} : vector<8x32xf32> to vector<1x32xf32>
    %273 = tpu.concatenate %271, %272 in 0 : vector<7x32xf32>, vector<1x32xf32> -> vector<8x32xf32>
    %274 = vector.extract_strided_slice %267 {offsets = [0, 0, 0], sizes = [1, 32, 32], strides = [1, 1, 1]} : vector<3x32x32xbf16> to vector<1x32x32xbf16>
    %275 = vector.shape_cast %274 : vector<1x32x32xbf16> to vector<32x32xbf16>
    %276 = arith.truncf %270 : vector<8x32xf32> to vector<8x32xbf16>
    %cst_82 = arith.constant dense<0.000000e+00> : vector<8x32xf32>
    %277 = tpu.matmul %276, %275, %cst_82 {dimension_numbers = #tpu.dot_dimension_numbers<[1], [0], [0], [1], [0, 0, 1, 1], [], []>} : vector<8x32xbf16>, vector<32x32xbf16>, vector<8x32xf32> -> vector<8x32xf32>
    %278 = vector.extract_strided_slice %267 {offsets = [1, 0, 0], sizes = [1, 32, 32], strides = [1, 1, 1]} : vector<3x32x32xbf16> to vector<1x32x32xbf16>
    %279 = vector.shape_cast %278 : vector<1x32x32xbf16> to vector<32x32xbf16>
    %280 = arith.truncf %266 : vector<8x32xf32> to vector<8x32xbf16>
    %cst_83 = arith.constant dense<0.000000e+00> : vector<8x32xf32>
    %281 = tpu.matmul %280, %279, %cst_83 {dimension_numbers = #tpu.dot_dimension_numbers<[1], [0], [0], [1], [0, 0, 1, 1], [], []>} : vector<8x32xbf16>, vector<32x32xbf16>, vector<8x32xf32> -> vector<8x32xf32>
    %282 = arith.addf %277, %281 : vector<8x32xf32>
    %283 = vector.extract_strided_slice %267 {offsets = [2, 0, 0], sizes = [1, 32, 32], strides = [1, 1, 1]} : vector<3x32x32xbf16> to vector<1x32x32xbf16>
    %284 = vector.shape_cast %283 : vector<1x32x32xbf16> to vector<32x32xbf16>
    %285 = arith.truncf %273 : vector<8x32xf32> to vector<8x32xbf16>
    %cst_84 = arith.constant dense<0.000000e+00> : vector<8x32xf32>
    %286 = tpu.matmul %285, %284, %cst_84 {dimension_numbers = #tpu.dot_dimension_numbers<[1], [0], [0], [1], [0, 0, 1, 1], [], []>} : vector<8x32xbf16>, vector<32x32xbf16>, vector<8x32xf32> -> vector<8x32xf32>
    %287 = arith.addf %282, %286 : vector<8x32xf32>
    %288 = arith.mulf %287, %287 : vector<8x32xf32>
    %289 = arith.mulf %287, %288 : vector<8x32xf32>
    %cst_85 = arith.constant 4.471500e-02 : f32
    %290 = vector.broadcast %cst_85 : f32 to vector<8x32xf32>
    %291 = arith.mulf %290, %289 : vector<8x32xf32>
    %292 = arith.addf %287, %291 : vector<8x32xf32>
    %cst_86 = arith.constant 0.797884583 : f32
    %293 = vector.broadcast %cst_86 : f32 to vector<8x32xf32>
    %294 = arith.mulf %293, %292 : vector<8x32xf32>
    %295 = math.tanh %294 : vector<8x32xf32>
    %cst_87 = arith.constant 1.000000e+00 : f32
    %296 = vector.broadcast %cst_87 : f32 to vector<8x32xf32>
    %297 = arith.addf %296, %295 : vector<8x32xf32>
    %cst_88 = arith.constant 5.000000e-01 : f32
    %298 = vector.broadcast %cst_88 : f32 to vector<8x32xf32>
    %299 = arith.mulf %298, %297 : vector<8x32xf32>
    %300 = arith.mulf %287, %299 : vector<8x32xf32>
    %c0_89 = arith.constant 0 : index
    %c0_90 = arith.constant 0 : index
    %c0_91 = arith.constant 0 : index
    %301 = vector.load %arg17[%c0_89, %c0_90, %c0_91] : memref<3x32x16xbf16, #tpu.memory_space<vmem>>, vector<3x32x16xbf16>
    %302 = vector.extract_strided_slice %300 {offsets = [7, 0], sizes = [1, 32], strides = [1, 1]} : vector<8x32xf32> to vector<1x32xf32>
    %303 = vector.extract_strided_slice %300 {offsets = [0, 0], sizes = [7, 32], strides = [1, 1]} : vector<8x32xf32> to vector<7x32xf32>
    %304 = tpu.concatenate %302, %303 in 0 : vector<1x32xf32>, vector<7x32xf32> -> vector<8x32xf32>
    %305 = vector.extract_strided_slice %300 {offsets = [1, 0], sizes = [7, 32], strides = [1, 1]} : vector<8x32xf32> to vector<7x32xf32>
    %306 = vector.extract_strided_slice %300 {offsets = [0, 0], sizes = [1, 32], strides = [1, 1]} : vector<8x32xf32> to vector<1x32xf32>
    %307 = tpu.concatenate %305, %306 in 0 : vector<7x32xf32>, vector<1x32xf32> -> vector<8x32xf32>
    %308 = vector.extract_strided_slice %301 {offsets = [0, 0, 0], sizes = [1, 32, 16], strides = [1, 1, 1]} : vector<3x32x16xbf16> to vector<1x32x16xbf16>
    %309 = vector.shape_cast %308 : vector<1x32x16xbf16> to vector<32x16xbf16>
    %310 = arith.truncf %304 : vector<8x32xf32> to vector<8x32xbf16>
    %cst_92 = arith.constant dense<0.000000e+00> : vector<8x16xf32>
    %311 = tpu.matmul %310, %309, %cst_92 {dimension_numbers = #tpu.dot_dimension_numbers<[1], [0], [0], [1], [0, 0, 1, 1], [], []>} : vector<8x32xbf16>, vector<32x16xbf16>, vector<8x16xf32> -> vector<8x16xf32>
    %312 = vector.extract_strided_slice %301 {offsets = [1, 0, 0], sizes = [1, 32, 16], strides = [1, 1, 1]} : vector<3x32x16xbf16> to vector<1x32x16xbf16>
    %313 = vector.shape_cast %312 : vector<1x32x16xbf16> to vector<32x16xbf16>
    %314 = arith.truncf %300 : vector<8x32xf32> to vector<8x32xbf16>
    %cst_93 = arith.constant dense<0.000000e+00> : vector<8x16xf32>
    %315 = tpu.matmul %314, %313, %cst_93 {dimension_numbers = #tpu.dot_dimension_numbers<[1], [0], [0], [1], [0, 0, 1, 1], [], []>} : vector<8x32xbf16>, vector<32x16xbf16>, vector<8x16xf32> -> vector<8x16xf32>
    %316 = arith.addf %311, %315 : vector<8x16xf32>
    %317 = vector.extract_strided_slice %301 {offsets = [2, 0, 0], sizes = [1, 32, 16], strides = [1, 1, 1]} : vector<3x32x16xbf16> to vector<1x32x16xbf16>
    %318 = vector.shape_cast %317 : vector<1x32x16xbf16> to vector<32x16xbf16>
    %319 = arith.truncf %307 : vector<8x32xf32> to vector<8x32xbf16>
    %cst_94 = arith.constant dense<0.000000e+00> : vector<8x16xf32>
    %320 = tpu.matmul %319, %318, %cst_94 {dimension_numbers = #tpu.dot_dimension_numbers<[1], [0], [0], [1], [0, 0, 1, 1], [], []>} : vector<8x32xbf16>, vector<32x16xbf16>, vector<8x16xf32> -> vector<8x16xf32>
    %321 = arith.addf %316, %320 : vector<8x16xf32>
    %c0_95 = arith.constant 0 : index
    %c0_96 = arith.constant 0 : index
    %c0_97 = arith.constant 0 : index
    %322 = vector.load %arg18[%c0_95, %c0_96, %c0_97] : memref<1x8x32xf32, #tpu.memory_space<vmem>>, vector<1x8x32xf32>
    %323 = vector.shape_cast %322 : vector<1x8x32xf32> to vector<8x32xf32>
    %324 = vector.shape_cast %264 : vector<8x32xf32> to vector<1x8x32xf32>
    tpu.vector_store %arg18[%c0_95, %c0_96, %c0_97], %324 {strides = array<i32>} : memref<1x8x32xf32, #tpu.memory_space<vmem>>, vector<1x8x32xf32>,
    %c0_98 = arith.constant 0 : index
    %c0_99 = arith.constant 0 : index
    %c0_100 = arith.constant 0 : index
    %325 = vector.load %arg3[%c0_98, %c0_99, %c0_100] : memref<1x8x16xf32, #tpu.memory_space<vmem>>, vector<1x8x16xf32>
    %326 = vector.shape_cast %325 : vector<1x8x16xf32> to vector<8x16xf32>
    %327 = arith.addf %326, %321 : vector<8x16xf32>
    %c0_101 = arith.constant 0 : index
    %c0_102 = arith.constant 0 : index
    %c0_103 = arith.constant 0 : index
    %328 = vector.load %arg19[%c0_101, %c0_102, %c0_103] : memref<1x8x16xf32, #tpu.memory_space<vmem>>, vector<1x8x16xf32>
    %329 = vector.shape_cast %328 : vector<1x8x16xf32> to vector<8x16xf32>
    %330 = vector.shape_cast %327 : vector<8x16xf32> to vector<1x8x16xf32>
    tpu.vector_store %arg19[%c0_101, %c0_102, %c0_103], %330 {strides = array<i32>} : memref<1x8x16xf32, #tpu.memory_space<vmem>>, vector<1x8x16xf32>,
    return
  }
  func.func @transform_0(%arg0: i32) -> (i32, i32, i32) {
    %c0_i32 = arith.constant 0 : i32
    %c0_i32_0 = arith.constant 0 : i32
    %c0_i32_1 = arith.constant 0 : i32
    return %arg0, %c0_i32, %c0_i32_0 : i32, i32, i32
  }
  func.func @transform_1(%arg0: i32) -> (i32, i32, i32) {
    %c0_i32 = arith.constant 0 : i32
    %c0_i32_0 = arith.constant 0 : i32
    %c0_i32_1 = arith.constant 0 : i32
    return %arg0, %c0_i32, %c0_i32_0 : i32, i32, i32
  }
  func.func @transform_2(%arg0: i32) -> (i32, i32, i32) {
    %c0_i32 = arith.constant 0 : i32
    %c0_i32_0 = arith.constant 0 : i32
    %c0_i32_1 = arith.constant 0 : i32
    return %arg0, %c0_i32, %c0_i32_0 : i32, i32, i32
  }
  func.func @transform_3(%arg0: i32) -> (i32, i32) {
    %c0_i32 = arith.constant 0 : i32
    %c0_i32_0 = arith.constant 0 : i32
    %c0_i32_1 = arith.constant 0 : i32
    return %c0_i32, %c0_i32_0 : i32, i32
  }
  func.func @transform_4(%arg0: i32) -> (i32, i32) {
    %c0_i32 = arith.constant 0 : i32
    %c0_i32_0 = arith.constant 0 : i32
    %c0_i32_1 = arith.constant 0 : i32
    return %c0_i32, %c0_i32_0 : i32, i32
  }
  func.func @transform_5(%arg0: i32) -> (i32, i32) {
    %c0_i32 = arith.constant 0 : i32
    %c0_i32_0 = arith.constant 0 : i32
    %c0_i32_1 = arith.constant 0 : i32
    return %c0_i32, %c0_i32_0 : i32, i32
  }
  func.func @transform_6(%arg0: i32) -> (i32, i32) {
    %c0_i32 = arith.constant 0 : i32
    %c0_i32_0 = arith.constant 0 : i32
    %c0_i32_1 = arith.constant 0 : i32
    return %c0_i32, %c0_i32_0 : i32, i32
  }
  func.func @transform_7(%arg0: i32) -> (i32, i32) {
    %c0_i32 = arith.constant 0 : i32
    %c0_i32_0 = arith.constant 0 : i32
    %c0_i32_1 = arith.constant 0 : i32
    return %c0_i32, %c0_i32_0 : i32, i32
  }
  func.func @transform_8(%arg0: i32) -> (i32, i32) {
    %c0_i32 = arith.constant 0 : i32
    %c0_i32_0 = arith.constant 0 : i32
    %c0_i32_1 = arith.constant 0 : i32
    return %c0_i32, %c0_i32_0 : i32, i32
  }
  func.func @transform_9(%arg0: i32) -> (i32, i32) {
    %c0_i32 = arith.constant 0 : i32
    %c0_i32_0 = arith.constant 0 : i32
    %c0_i32_1 = arith.constant 0 : i32
    return %c0_i32, %c0_i32_0 : i32, i32
  }
  func.func @transform_10(%arg0: i32) -> (i32, i32) {
    %c0_i32 = arith.constant 0 : i32
    %c0_i32_0 = arith.constant 0 : i32
    %c0_i32_1 = arith.constant 0 : i32
    return %c0_i32, %c0_i32_0 : i32, i32
  }
  func.func @transform_11(%arg0: i32) -> (i32, i32) {
    %c0_i32 = arith.constant 0 : i32
    %c0_i32_0 = arith.constant 0 : i32
    %c0_i32_1 = arith.constant 0 : i32
    return %c0_i32, %c0_i32_0 : i32, i32
  }
  func.func @transform_12(%arg0: i32) -> (i32, i32) {
    %c0_i32 = arith.constant 0 : i32
    %c0_i32_0 = arith.constant 0 : i32
    %c0_i32_1 = arith.constant 0 : i32
    return %c0_i32, %c0_i32_0 : i32, i32
  }
  func.func @transform_13(%arg0: i32) -> (i32, i32) {
    %c0_i32 = arith.constant 0 : i32
    %c0_i32_0 = arith.constant 0 : i32
    %c0_i32_1 = arith.constant 0 : i32
    return %c0_i32, %c0_i32_0 : i32, i32
  }
  func.func @transform_14(%arg0: i32) -> (i32, i32) {
    %c0_i32 = arith.constant 0 : i32
    %c0_i32_0 = arith.constant 0 : i32
    %c0_i32_1 = arith.constant 0 : i32
    return %c0_i32, %c0_i32_0 : i32, i32
  }
  func.func @transform_15(%arg0: i32) -> (i32, i32, i32) {
    %c0_i32 = arith.constant 0 : i32
    %c0_i32_0 = arith.constant 0 : i32
    %c0_i32_1 = arith.constant 0 : i32
    %c0_i32_2 = arith.constant 0 : i32
    return %c0_i32, %c0_i32_0, %c0_i32_1 : i32, i32, i32
  }
  func.func @transform_16(%arg0: i32) -> (i32, i32, i32) {
    %c0_i32 = arith.constant 0 : i32
    %c0_i32_0 = arith.constant 0 : i32
    %c0_i32_1 = arith.constant 0 : i32
    %c0_i32_2 = arith.constant 0 : i32
    return %c0_i32, %c0_i32_0, %c0_i32_1 : i32, i32, i32
  }
  func.func @transform_17(%arg0: i32) -> (i32, i32, i32) {
    %c0_i32 = arith.constant 0 : i32
    %c0_i32_0 = arith.constant 0 : i32
    %c0_i32_1 = arith.constant 0 : i32
    return %arg0, %c0_i32, %c0_i32_0 : i32, i32, i32
  }
  func.func @transform_18(%arg0: i32) -> (i32, i32, i32) {
    %c0_i32 = arith.constant 0 : i32
    %c0_i32_0 = arith.constant 0 : i32
    %c0_i32_1 = arith.constant 0 : i32
    return %arg0, %c0_i32, %c0_i32_0 : i32, i32, i32
  }
}

</mosaic_0001>

<bundles_post_ra>
// kernel: enhanced_decoder_forward.5
= control target key start
LH: loop header
LB: loop body
LE: loop exit
PB: predicated region body
PF: predicated region fallthrough
CT: control target
= control target key end

     0   :  { %s1513_s0 = inlined_call_operand.vmem [shape: f32[2,8,32], index: 0, kind: input, shape index: {}]   ;;  %s1514_s1 = inlined_call_operand.vmem [shape: f32[2,8,16], index: 1, kind: input, shape index: {}]   ;;  %s1515_s2 = inlined_call_operand.vmem [shape: f32[2,8,16], index: 2, kind: input, shape index: {}]   ;;  %s1516_s3 = inlined_call_operand.vmem [shape: f32[1,32], index: 3, kind: input, shape index: {}]   ;;  %s1517_s4 = inlined_call_operand.vmem [shape: f32[1,32], index: 4, kind: input, shape index: {}]   ;;  %s1518_s5 = inlined_call_operand.vmem [shape: bf16[32,16], index: 5, kind: input, shape index: {}]   ;;  %s1519_s6 = inlined_call_operand.hbm [shape: f32[1,16], index: 6, kind: input, shape index: {}]   ;;  %s1520_s7 = inlined_call_operand.vmem [shape: bf16[16,16], index: 7, kind: input, shape index: {}]   ;;  %s1521_s8 = inlined_call_operand.hbm [shape: f32[1,16], index: 8, kind: input, shape index: {}]   ;;  %s1522_s9 = inlined_call_operand.hbm [shape: bf16[16,16], index: 9, kind: input, shape index: {}]   ;;  %s1523_s10 = inlined_call_operand.hbm [shape: f32[1,16], index: 10, kind: input, shape index: {}]   ;;  %s1524_s11 = inlined_call_operand.hbm [shape: f32[2,8,16], index: 11, kind: output, shape index: {0}]   ;;  %s1525_s12 = inlined_call_operand.hbm [shape: f32[2,8,16], index: 12, kind: output, shape index: {1}]  }
   0x1   :  { %1532 = sst [smem:[#allocation24_spill]] %s1519_s6 }
   0x2   :  { %1533 = sst [smem:[#allocation25_spill]] %s1521_s8 }
   0x3   :  { %18 = vsyncpa [#allocation3], 0 }
   0x4   :  { %19 = vsyncpa [#allocation6], 0 }
   0x5   :  { %20 = vsyncpa [#allocation9], 0 }
   0x6   :  { %21 = vsyncpa [#allocation4], 0 }
   0x7   :  { %23 = vsyncpa [#allocation4 + $0x1], 0 }
   0x8   :  { %24 = vsyncpa [#allocation12], 0 }
   0x9   :  { %26 = vsyncpa [#allocation12 + $0x1], 0  ;;  %s1317_s21 = smov 0   ;;  %s1319_s22 = smov 0  }
   0xa   :  { %s1321_s23 = smov 0   ;;  %s1323_s24 = smov 0  }
   0xb LB: > { %1534 = sst [smem:[#allocation18_spill]] %s1230_s21  ;;  %s1338_s25 = sadd.s32 4294967295, %s1242_s24   ;;  %s1242_s24 = sphi %s1323_s24, %s1549_s24   ;;  %s1238_s23 = sphi %s1321_s23, %s1551_s23   ;;  %s1234_s22 = sphi %s1319_s22, %s1553_s22   ;;  %s1230_s21 = sphi %s1317_s21, %s1552_s21  }
   0xc   : > { %1535 = sst [smem:[#allocation19_spill]] %s1238_s23  ;;  %s870_s26 = sadd.s32 4294967294, %s1242_s24  }
   0xd   : > { %1536 = sst [smem:[#allocation20_spill]] %s1242_s24  ;;  %s1342_s27 = sadd.s32 1, %s1242_s24  }
   0xe   : > { %1537 = sst [smem:[#allocation21_spill]] %s1342_s27  ;;  %s285_s28 = sadd.s32 1, %s1238_s23 }
   0xf   : > { %s282_s29 = ssub.s32 %s1242_s24, %s1342_s27  ;;  %p295_p0 = scmp.ne.s32.totalorder %s1238_s23, %s1234_s22 }
  0x10   : > { %p283_p1 = scmp.eq.s32.totalorder %s282_s29, 0  ;;  %p296_p2 = scmp.eq.s32.totalorder %s1338_s25, 1 }
  0x11   : > { %p301_p3 = scmp.ne.s32.totalorder %s1234_s22, %s1230_s21  ;;  %p302_p4 = scmp.eq.s32.totalorder %s870_s26, 1 }
  0x12   : > { %s1353_s30 = scalar_select %p283_p1, %s1238_s23, %s285_s28  }
  0x13   : > { %p1355_p5 = por %p296_p2, %p295_p0  ;;  %p1359_p6 = por %p302_p4, %p301_p3 }
  0x14   : > { %1538 = sst [smem:[#allocation22_spill]] %s1353_s30  ;;  %p871_p7 = scmp.ge.s32.totalorder %s1242_s24, 1 }
  0x15   : > { %s1540_s14 = scalar_select %p1359_p6, 1, 0 }
  0x16   : > { %p335_p8 = scmp.lt.s32.totalorder %s1242_s24, 3  ;;  %p956_p9 = scmp.eq.s32.totalorder %s1338_s25, 0 }
  0x17   : > { %1541 = sst [smem:[#allocation23_spill]] %s1540_s14  ;;  %s1244_s19 = smov [#allocation5]  }
  0x18   : > { %p1366_p10 = pnand %p871_p7, %p335_p8  ;;  %s1543_s8 = sld [smem:[#allocation25_spill]] }
  0x19   : > { %s373_s20 = sshll.u32 %s1244_s19, 4  ;;  %s1544_s6 = sld [smem:[#allocation24_spill]]  ;;  %s374_s20 = int_to_ptr.vmem [resolvable:$true] %s373_s20 }
  0x1a   : > { %p936_p11 = pneg %p1366_p10  ;;  %s1245_s23 = smov [#allocation2]  }
  0x1b   : > { %s358_s19 = sshll.u32 %s1245_s23, 4  ;;  %s1246_s26 = smov [#allocation7]   ;;  %s359_s19 = int_to_ptr.vmem [resolvable:$true] %s358_s19 }
  0x1c   : > { %p1380_p12 = pnand %p956_p9, %p936_p11  ;;  %s384_s28 = sshll.u32 %s1246_s26, 4  ;;  %s385_s28 = int_to_ptr.vmem [resolvable:$true] %s384_s28 }
  0x1d   : > { %s397_s14 = sshll.u32 %s1523_s10, 4  ;;  %s1247_s21 = smov 64   ;;  %s398_s14 = int_to_ptr.hbm [resolvable:$true] %s397_s14 }
  0x1e   : > { %s371_s18 = sshll.u32 %s1543_s8, 4  ;;  %s382_s8 = sshll.u32 %s1522_s9, 4  ;;  %s372_s18 = int_to_ptr.hbm [resolvable:$true] %s371_s18  ;;  %s383_s8 = int_to_ptr.hbm [resolvable:$true] %s382_s8 }
  0x1f   : > { %s356_s29 = sshll.u32 %s1544_s6, 4  ;;  %s1248_s24 = smov 4   ;;  %s357_s29 = int_to_ptr.hbm [resolvable:$true] %s356_s29 }
  0x20   : > { %942 = dma.hbm_to_vmem [thread:$0]  (!%p1380_p12), %s372_s18, 16, %s374_s20, [#allocation6]  }
  0x21   : > { %939 = dma.hbm_to_vmem [thread:$0]  (!%p1380_p12), %s357_s29, 16, %s359_s19, [#allocation3]  }
  0x22   : > { %945 = dma.hbm_to_vmem [thread:$0]  (!%p1380_p12), %s383_s8, 128, %s385_s28, [#allocation6], %s1247_s21, %s1247_s21, %s1248_s24  }
  0x23   : > { %s1249_s23 = smov [#allocation8]   ;;  %433 = sbr.rel (%p1366_p10) target bundleno = 479 (0x1df), region = 64 }
  0x24   : > { %s399_s16 = sshll.u32 %s1249_s23, 4  ;;  %s400_s16 = int_to_ptr.vmem [resolvable:$true] %s399_s16 }
  0x25   : > { %948 = dma.hbm_to_vmem [thread:$0]  (!%p1380_p12), %s398_s14, 16, %s400_s16, [#allocation9]  }
  0x28   : > { %1209 = dma.done.wait (%p956_p9), [#allocation3], 16  }
  0x29   : > { %1211 = vsyncadd (%p956_p9), [#allocation3], 4294967280 }
  0x2a   : > { %1213 = dma.done.wait (%p956_p9), [#allocation6], 144  }
  0x2b   : > { %1215 = vsyncadd (%p956_p9), [#allocation6], 4294967152 }
  0x2c   : > { %1217 = dma.done.wait (%p956_p9), [#allocation9], 16  }
  0x2d   : > { %1219 = vsyncadd (%p956_p9), [#allocation9], 4294967280  ;;  %p503_p13 = scmp.lt.s32.totalorder %s1338_s25, 1  ;;  %vm583_vm0 = vcmask 261120   ;;  %v1250_v2 = vmov 32.0   ;;  %v912_v3 = vld [vmem:[%s1520_s7] sm:$0xff] }
  0x2e   : > { %1010 = vrcp.f32 %v1250_v2  ;;  %545 = vmatpush.bf16.msra.mxu0 %v912_v3  ;;  %vm534_vm1 = vcmask 130048   ;;  %v1005_v18 = vld [vmem:[#allocation5] ss:$0 sm:$0xff]  ;;  %v915_v20 = vld [vmem:[%s1518_s5 + $0x8] sm:$0xff]  ;;  %v1251_v33 = vmov 8.0   ;;  %s1453_s30 = sand.u32 1, %s1234_s22  }
  0x2f   : > { %s504_s6 = scalar_select %p503_p13, %s1338_s25, 1  ;;  %v913_v21 = vld [vmem:[#allocation7] sm:$0xff]  ;;  %669 = vmatpush.bf16.msra.mxu2 %v915_v20  ;;  %v1006_v38 = vld [vmem:[%s1516_s3] ss:$0 sm:$0xff]  ;;  %v1008_v61 = vld [vmem:[#allocation8] ss:$0 sm:$0xff] }
  0x30   : > { %571 = vmatpush.bf16.msra.mxu1 %v913_v21  ;;  %v914_v23 = vld [vmem:[%s1518_s5] sm:$0xff]  ;;  %s908_s14 = sshll.u32 %s1338_s25, 3  ;;  %s684_s26 = scalar_lea.sflag [#allocation12], %s1453_s30 }
  0x31   : > { %s1414_s8 = sshll.u32 %s504_s6, 3  ;;  %v1007_v41 = vld [vmem:[%s1517_s4] ss:$0 sm:$0xff]  ;;  %s708_s29 = scalar_lea.hbm %s1525_s12, %s908_s14 }
  0x32   : > { %s506_s27 = scalar_lea.vmem %s1513_s0, %s1414_s8  ;;  %s514_s15 = scalar_lea.vmem %s1515_s2, %s1414_s8 }
  0x33   : > { %v516_v0 = vld [vmem:[%s506_s27] sm:$0xff]  ;;  %670 = vmatpush.bf16.msra.mxu2 %v914_v23  ;;  %s510_s27 = scalar_lea.vmem %s1514_s1, %s1414_s8  ;;  %s712_s19 = sshll.u32 %s708_s29, 4  ;;  %s713_s19 = int_to_ptr.hbm [resolvable:$true] %s712_s19 }
  0x34   : > { %v584_v1 = vsel %vm583_vm0, %v516_v0, 0.0  ;;  %v1428_v4 = vld [vmem:[%s514_s15] sm:$0xff]  ;;  %v1011_v6 = vpop.eup %1010  ;;  %s882_s15 = sshll.u32 %s1453_s30, 3  ;;  %s1150_s28 = sshra.s32 %s713_s19, 4  ;;  %s1151_s28 = int_to_ptr.hbm [resolvable:$true] %s1150_s28 }
  0x35   : > { %585 = vadd.xlane.f32.xlu0 %v584_v1  ;;  %v520_v5 = vmul.f32 0.5, %v1428_v4  ;;  %v588_v8 = vmul.f32 32.0, %v1011_v6  ;;  %vm592_vm2 = vweird.f32 %v1011_v6  ;;  %v517_v59 = vld [vmem:[%s510_s27] sm:$0xff]  ;;  %s502_s8 = scalar_lea.vmem [#allocation11], %s882_s15  ;;  %s1152_s23 = scalar_lea.hbm %s1151_s28, 8 }
  0x36   : > { %v519_v60 = vadd.f32 %v1428_v4, %v517_v59  ;;  %s710_s17 = sshll.u32 %s502_s8, 4  ;;  %p1153_p0 = scmp.ne.s32.totalorder %s1151_s28, %s1152_s23  ;;  %s711_s17 = int_to_ptr.vmem [resolvable:$true] %s710_s17 }
  0x37   : > { %v523_v7 = vpack.c.bf16 %v520_v5, %v520_v5  ;;  %v589_v9 = vsub.f32 1.0, %v588_v8  ;;  %s1156_s21 = scalar_lea.hbm %s1525_s12, 16  ;;  %p1157_p3 = scmp.lt.s32.totalorder %s1151_s28, %s1525_s12 }
  0x38   : > { %p1154_p1 = pnand %p1153_p0, %p1355_p5  ;;  %p1158_p4 = scmp.lt.s32.totalorder %s1156_s21, %s1152_s23 }
  0x39   : > { %891 = vmatmul.msk.bf16.vlgmr.msra.gmra.mxu0 %vm534_vm1, %v523_v7  ;;  %v590_v10 = vmul.f32 %v1011_v6, %v589_v9 }
  0x3a   : > { %p1155_p2 = pneg %p1154_p1  ;;  %p1159_p7 = por %p1158_p4, %p1157_p3 }
  0x3b   : > { %v591_v11 = vadd.f32 %v1011_v6, %v590_v10 }
  0x3c   : > { %p1160_p8 = pnand %p1159_p7, %p1155_p2 }
  0x3d   : > { %v593_v12 = vsel %vm592_vm2, %v1011_v6, %v591_v11 }
  0xa8   : > { %v586_v13 = vpop.xlane.xlu0 %585 }
  0xa9   : > { %v594_v14 = vmul.f32 %v593_v12, %v586_v13 }
  0xab   : > { %v595_v15 = vsub.f32 %v516_v0, %v594_v14 }
  0xad   : > { %v596_v16 = vmul.f32 %v595_v15, %v595_v15 }
  0xaf   : > { %v597_v17 = vsel %vm583_vm0, %v596_v16, 0.0 }
  0xb0   : > { %598 = vadd.xlane.f32.xlu0 %v597_v17 }
  0xb6   : > { %v547_v19 = vpop.f32.mrf.mxu0 }
  0xb7   : > { %v548_v22 = vadd.f32 %v1005_v18, %v547_v19 }
  0xb9   : > { %v551_v24 = vmax.f32 %v548_v22, 0.0 }
  0xbb   : > { %v554_v25 = vpack.c.bf16 %v551_v24, %v551_v24 }
  0xbd   : > { %896 = vmatmul.msk.bf16.vlgmr.msra.gmra.mxu1 %vm534_vm1, %v554_v25 }
  0xbe   : > { %v549_v26 = vpop.f32.mrf.mxu0 }
 0x123   : > { %v599_v27 = vpop.xlane.xlu0 %598 }
 0x124   : > { %v600_v28 = vmul.f32 %v599_v27, %v593_v12 }
 0x126   : > { %v601_v29 = vadd.f32 1e-05, %v600_v28 }
 0x128   : > { %1012 = vrsqrt.f32 %v601_v29  ;;  %vm608_vm4 = vweird.f32 %v601_v29 }
 0x129   : > { %1014 = vrcp.f32 %v1251_v33 }
 0x12e   : > { %v1013_v30 = vpop.eup %1012 }
 0x12f   : > { %v603_v31 = vmul.f32 %v1013_v30, %v601_v29  ;;  %vm609_vm3 = vweird.f32 %v1013_v30  ;;  %v1015_v36 = vpop.eup %1014 }
 0x130   : > { %vm610_vm5 = vmor %vm608_vm4, %vm609_vm3  ;;  %v631_v42 = vmul.f32 8.0, %v1015_v36  ;;  %vm635_vm6 = vweird.f32 %v1015_v36 }
 0x131   : > { %v604_v32 = vmul.f32 %v1013_v30, %v603_v31 }
 0x132   : > { %v632_v45 = vsub.f32 1.0, %v631_v42 }
 0x133   : > { %v605_v34 = vmul.f32 0.5, %v604_v32 }
 0x134   : > { %v633_v48 = vmul.f32 %v1015_v36, %v632_v45 }
 0x135   : > { %v606_v35 = vsub.f32 1.5, %v605_v34 }
 0x136   : > { %v634_v51 = vadd.f32 %v1015_v36, %v633_v48 }
 0x137   : > { %v607_v37 = vmul.f32 %v1013_v30, %v606_v35 }
 0x138   : > { %v636_v54 = vsel %vm635_vm6, %v1015_v36, %v634_v51 }
 0x139   : > { %v611_v39 = vsel %vm610_vm5, %v1013_v30, %v607_v37 }
 0x13a   : > { %v612_v40 = vmul.f32 %v611_v39, %v595_v15  ;;  %v573_v62 = vpop.f32.mrf.mxu1 }
 0x13b   : > { %v577_v63 = vadd.f32 %v573_v62, %v519_v60 }
 0x13c   : > { %v617_v43 = vmul.f32 %v1006_v38, %v612_v40 }
 0x13d   : > { %v582_v0 = vadd.f32 %v1008_v61, %v577_v63 }
 0x13e   : > { %v622_v44 = vadd.f32 %v1007_v41, %v617_v43 }
 0x13f   : > { %677 = vst.msk [vmem:[%s502_s8] sm:$0xff] %vm534_vm1, %v582_v0 }
 0x140   : > { %v623_v46 = vsel %vm583_vm0, %v622_v44, 0.0 }
 0x141   : > { %v624_v47 = vrot.slane %v623_v46, 4 }
 0x143   : > { %v625_v49 = vadd.f32 %v624_v47, %v623_v46 }
 0x145   : > { %v626_v50 = vrot.slane %v625_v49, 2 }
 0x147   : > { %v627_v52 = vadd.f32 %v626_v50, %v625_v49 }
 0x149   : > { %v628_v53 = vrot.slane %v627_v52, 1 }
 0x14b   : > { %v629_v55 = vadd.f32 %v628_v53, %v627_v52 }
 0x14d   : > { %v637_v56 = vmul.f32 %v636_v54, %v629_v55 }
 0x14f   : > { %v638_v57 = vsub.f32 %v622_v44, %v637_v56 }
 0x151   : > { %v643_v58 = vpack.c.bf16 %v638_v57, %v638_v57 }
 0x153   : > { %905 = vmatmul.msk.bf16.vlgmr.msra.gmra.mxu2 %vm583_vm0, %v643_v58 }
 0x154   : > { %1163 = shalt.err (!%p1160_p8)
}
 0x155   : > { %933 = dma.vmem_to_hbm [thread:$0]  (%p1355_p5), %s711_s17, 128, %s713_s19, %s684_s26   ;;  %v575_v1 = vpop.f32.mrf.mxu1  ;;  %v1009_v2 = vld [vmem:[#allocation2] ss:$0 sm:$0xff] }
 0x156   : > { %s694_s29 = scalar_lea.hbm %s1524_s11, %s908_s14  ;;  %s495_s8 = scalar_lea.vmem [#allocation10], %s882_s15 }
 0x157   : > { %s696_s28 = sshll.u32 %s495_s8, 4  ;;  %s698_s23 = sshll.u32 %s694_s29, 4  ;;  %s697_s28 = int_to_ptr.vmem [resolvable:$true] %s696_s28  ;;  %s699_s23 = int_to_ptr.hbm [resolvable:$true] %s698_s23 }
 0x158   : > { %s679_s16 = scalar_lea.sflag [#allocation4], %s1453_s30  ;;  %s1178_s17 = sshra.s32 %s699_s23, 4  ;;  %s1179_s17 = int_to_ptr.hbm [resolvable:$true] %s1178_s17 }
 0x159   : > { %s1180_s25 = scalar_lea.hbm %s1179_s17, 8  ;;  %s1184_s15 = scalar_lea.hbm %s1524_s11, 16 }
 0x15a   : > { %p1181_p9 = scmp.ne.s32.totalorder %s1179_s17, %s1180_s25  ;;  %p1185_p12 = scmp.lt.s32.totalorder %s1179_s17, %s1524_s11 }
 0x15b   : > { %p1186_p13 = scmp.lt.s32.totalorder %s1184_s15, %s1180_s25 }
 0x15c   : > { %p1182_p10 = pnand %p1181_p9, %p1355_p5 }
 0x15d   : > { %p1187_p0 = por %p1186_p13, %p1185_p12 }
 0x15e   : > { %p1183_p11 = pneg %p1182_p10 }
 0x160   : > { %p1188_p1 = pnand %p1187_p0, %p1183_p11 }
 0x1d6   : > { %v672_v3 = vpop.f32.mrf.mxu2 }
 0x1d7   : > { %v673_v4 = vadd.f32 %v1009_v2, %v672_v3 }
 0x1d9   : > { %676 = vst.msk [vmem:[%s495_s8] sm:$0xff] %vm534_vm1, %v673_v4 }
 0x1da   : > { %1191 = shalt.err (!%p1188_p1)
}
 0x1db   : > { %932 = dma.vmem_to_hbm [thread:$0]  (%p1355_p5), %s697_s28, 128, %s699_s23, %s679_s16  }
 0x1de   : > { %v674_v5 = vpop.f32.mrf.mxu2 }
 0x1df PF: > { %s1546_s30 = sld [smem:[#allocation20_spill]] }
 0x1e0   : > { %s1547_s21 = sld [smem:[#allocation18_spill]] }
 0x1e5   : > { %p964_p2 = scmp.ge.s32.totalorder %s1546_s30, 2 }
 0x1e6   : > { %s724_s27 = sand.u32 1, %s1547_s21  }
 0x1e7   : > { %p950_p3 = pnand %p964_p2, %p1359_p6  ;;  %s725_s18 = scalar_lea.sflag [#allocation4], %s724_s27 }
 0x1e9   : > { %p951_p4 = pneg %p950_p3 }
 0x1eb   : > { %1221 = dma.done.wait (%p951_p4), %s725_s18, 128  }
 0x1ec   : > { %1223 = vsyncadd (%p951_p4), %s725_s18, 4294967168  ;;  %s735_s20 = scalar_lea.sflag [#allocation12], %s724_s27 }
 0x1ed   : > { %1225 = dma.done.wait (%p951_p4), %s735_s20, 128  }
 0x1ee   : > { %1227 = vsyncadd (%p951_p4), %s735_s20, 4294967168  ;;  %s1549_s24 = sld [smem:[#allocation21_spill]]  ;;  %s1552_s21 = smov %s1234_s22 }
 0x1ef   : > { %s1550_s13 = sld [smem:[#allocation19_spill]] }
 0x1f0   : > { %s1551_s23 = sld [smem:[#allocation22_spill]] }
 0x1f4   : > { %p29_p5 = scmp.ge.s32.totalorder %s1549_s24, 4  }
 0x1f5   : > { %s1553_s22 = smov %s1550_s13 }
 0x1f6   :  { %31 = sbr.rel (!%p29_p5) target bundleno = 11 (0xb), region = 139 }
 0x1fb   :  { %741 = vsyncpa [#allocation3], 1 }
 0x1fc   :  { %743 = vsyncpa [#allocation3 + $0x1], 1 }
 0x1fd   :  { %744 = vsyncpa [#allocation6], 1 }
 0x1fe   :  { %745 = vsyncpa [#allocation9], 1 }
 0x1ff   :  { %746 = vsyncpa [#allocation4], 1 }
 0x200   :  { %748 = vsyncpa [#allocation4 + $0x1], 1 }
 0x201   :  { %749 = vsyncpa [#allocation12], 1 }
 0x202   :  { %751 = vsyncpa [#allocation12 + $0x1], 1 }

// kernel: enhanced_decoder_forward.4
= control target key start
LH: loop header
LB: loop body
LE: loop exit
PB: predicated region body
PF: predicated region fallthrough
CT: control target
= control target key end

     0   :  { %s2730_s0 = inlined_call_operand.vmem [shape: f32[2,8,32], index: 0, kind: input, shape index: {}]   ;;  %s2731_s1 = inlined_call_operand.vmem [shape: f32[2,12,32], index: 1, kind: input, shape index: {}]   ;;  %s2732_s2 = inlined_call_operand.vmem [shape: f32[2,8,16], index: 2, kind: input, shape index: {}]   ;;  %s2733_s3 = inlined_call_operand.vmem [shape: bf16[32,96], index: 3, kind: input, shape index: {}]   ;;  %s2734_s4 = inlined_call_operand.vmem [shape: f32[1,96], index: 4, kind: input, shape index: {}]   ;;  %s2735_s5 = inlined_call_operand.vmem [shape: bf16[32,32], index: 5, kind: input, shape index: {}]   ;;  %s2736_s6 = inlined_call_operand.vmem [shape: f32[1,32], index: 6, kind: input, shape index: {}]   ;;  %s2737_s7 = inlined_call_operand.vmem [shape: bf16[32,32], index: 7, kind: input, shape index: {}]   ;;  %s2738_s8 = inlined_call_operand.vmem [shape: f32[1,32], index: 8, kind: input, shape index: {}]   ;;  %s2739_s9 = inlined_call_operand.hbm [shape: bf16[32,64], index: 9, kind: input, shape index: {}]   ;;  %s2740_s10 = inlined_call_operand.vmem [shape: f32[1,64], index: 10, kind: input, shape index: {}]   ;;  %s2741_s11 = inlined_call_operand.hbm [shape: bf16[32,32], index: 11, kind: input, shape index: {}]   ;;  %s2742_s12 = inlined_call_operand.vmem [shape: f32[1,32], index: 12, kind: input, shape index: {}]   ;;  %s2743_s13 = inlined_call_operand.hbm [shape: bf16[32,64], index: 13, kind: input, shape index: {}]   ;;  %s2744_s14 = inlined_call_operand.vmem [shape: bf16[64,32], index: 14, kind: input, shape index: {}]   ;;  %s2745_s15 = inlined_call_operand.vmem [shape: bf16[3,32,32], index: 15, kind: input, shape index: {}]   ;;  %s2746_s16 = inlined_call_operand.vmem [shape: bf16[3,32,16], index: 16, kind: input, shape index: {}]   ;;  %s2747_s17 = inlined_call_operand.vmem [shape: f32[2,8,32], index: 17, kind: output, shape index: {0}]   ;;  %s2748_s18 = inlined_call_operand.vmem [shape: f32[2,8,16], index: 18, kind: output, shape index: {1}]  }
   0x1   :  { %2755 = sst [smem:[#allocation9_spill]] %s2730_s0 }
   0x2   :  { %2756 = sst [smem:[#allocation10_spill]] %s2731_s1 }
   0x3   :  { %2757 = sst [smem:[#allocation11_spill]] %s2732_s2 }
   0x4   :  { %2758 = sst [smem:[#allocation12_spill]] %s2741_s11 }
   0x5   :  { %24 = vsyncpa [#allocation3], 0 }
   0x6   :  { %25 = vsyncpa [#allocation5], 0  ;;  %s2428_s27 = smov 0  }
   0x7 LB: > { %s2434_s28 = sadd.s32 4294967295, %s2312_s27   ;;  %p1927_p0 = scmp.ge.s32.totalorder %s2312_s27, 1  ;;  %s2312_s27 = sphi %s2428_s27, %s31_s27  }
   0x8   : > { %p460_p1 = scmp.lt.s32.totalorder %s2312_s27, 3  ;;  %p2136_p2 = scmp.eq.s32.totalorder %s2434_s28, 0 }
   0x9   : > { %s2759_s11 = sld [smem:[#allocation12_spill]]  ;;  %s489_s21 = sshll.u32 %s2739_s9, 4  ;;  %s490_s21 = int_to_ptr.hbm [resolvable:$true] %s489_s21 }
   0xa   : > { %p2442_p3 = pnand %p1927_p0, %p460_p1  ;;  %s2314_s22 = smov [#allocation4]  }
   0xb   : > { %s508_s2 = sshll.u32 %s2314_s22, 4  ;;  %s2315_s23 = smov [#allocation2]   ;;  %s509_s2 = int_to_ptr.vmem [resolvable:$true] %s508_s2 }
   0xc   : > { %p2126_p4 = pneg %p2442_p3  ;;  %s491_s24 = sshll.u32 %s2315_s23, 4  ;;  %s492_s24 = int_to_ptr.vmem [resolvable:$true] %s491_s24 }
   0xd   : > { %s523_s29 = sshll.u32 %s2743_s13, 4  ;;  %s2316_s30 = smov 64   ;;  %s524_s29 = int_to_ptr.hbm [resolvable:$true] %s523_s29 }
   0xe   : > { %p2127_p5 = pnand %p2136_p2, %p2126_p4  ;;  %s2318_s1 = smov [#allocation6]  }
   0xf   : > { %s506_s0 = sshll.u32 %s2759_s11, 4  ;;  %s2317_s11 = smov 4   ;;  %s507_s0 = int_to_ptr.hbm [resolvable:$true] %s506_s0 }
  0x10   : > { %2132 = dma.hbm_to_vmem [thread:$0]  (!%p2127_p5), %s507_s0, 256, %s509_s2, [#allocation5], %s2316_s30, %s2316_s30, %s2317_s11  }
  0x11   : > { %2129 = dma.hbm_to_vmem [thread:$0]  (!%p2127_p5), %s490_s21, 256, %s492_s24, [#allocation3], %s2316_s30, %s2316_s30, %s2317_s11  }
  0x12   : > { %s525_s20 = sshll.u32 %s2318_s1, 4  ;;  %572 = sbr.rel (%p2442_p3) target bundleno = 2776 (0xad8), region = 88  ;;  %s526_s20 = int_to_ptr.vmem [resolvable:$true] %s525_s20 }
  0x13   : > { %2135 = dma.hbm_to_vmem [thread:$0]  (!%p2127_p5), %s524_s29, 256, %s526_s20, [#allocation5], %s2316_s30, %s2316_s30, %s2317_s11  }
  0x17   : > { %2303 = dma.done.wait (%p2136_p2), [#allocation3], 256  }
  0x18   : > { %2305 = vsyncadd (%p2136_p2), [#allocation3], 4294967040 }
  0x19   : > { %2307 = dma.done.wait (%p2136_p2), [#allocation5], 512  }
  0x1a   : > { %2309 = vsyncadd (%p2136_p2), [#allocation5], 4294966784  ;;  %p648_p6 = scmp.lt.s32.totalorder %s2434_s28, 1  ;;  %s2761_s21 = sld [smem:[#allocation9_spill]]  ;;  %v2087_v0 = vld [vmem:[%s2733_s3 + $0x8] sm:$0xff]  ;;  %v2086_v1 = vld [vmem:[%s2733_s3] sm:$0xff] }
  0x1b   : > { %704 = vmatpush.bf16.msra.mxu0 %v2087_v0  ;;  %vm694_vm0 = vcmask 261120   ;;  %v2169_v4 = vld [vmem:[%s2734_s4] ss:$0 sm:$0xff]  ;;  %s2319_s30 = smov 104   ;;  %s2320_s1 = smov 120   ;;  %vm715_vm1 = vcmask 64512  }
  0x1c   : > { %s2771_s28 = smov (!%p648_p6, %s2434_s28), 1  ;;  %s2751_s20 = smov 96   ;;  %vm753_vm2 = vcmask 1043456   ;;  %vm954_vm3 = vcmask 130048   ;;  %vm956_vm4 = vcmask 195584   ;;  %vm1006_vm5 = vcmask 1040384  }
  0x1d   : > { %s2471_s11 = sshll.u32 %s2771_s28, 3  ;;  %s2752_s0 = smov 80   ;;  %vm1008_vm6 = vcmask 1041408   ;;  %vm1011_vm7 = vcmask 1042432   ;;  %vm1015_vm8 = vcmask 1046528   ;;  %vm1021_vm9 = vcmask 1045504  }
  0x1e   : > { %s2749_s19 = smov 72   ;;  %s2326_s2 = smov 64   ;;  %vm1027_vm10 = vcmask 1044480   ;;  %vm1137_vm11 = vcmask 97280   ;;  %vm1502_vm12 = vcmask 523264  }
  0x1f   : > { %705 = vmatpush.bf16.msra.mxu0 %v2086_v1  ;;  %s2327_s23 = smov 40   ;;  %s2328_s24 = smov 56  }
  0x20   : > { %s651_s22 = scalar_lea.vmem %s2761_s21, %s2471_s11  ;;  %s2754_s21 = smov 88  }
  0x21   : > { %v2483_v2 = vld [vmem:[%s651_s22] sm:$0xff]  ;;  %s2325_s22 = smov 112   ;;  %s2329_s25 = smov 48  }
  0x22   : > { %v677_v3 = vpack.c.bf16 %v2483_v2, %v2483_v2  ;;  %s2750_s26 = smov 8   ;;  %s2753_s29 = smov 16  }
  0x24   : > { %1950 = vmatmul.msk.bf16.vlgmr.msra.gmra.mxu0 %vm694_vm0, %v677_v3 }
  0xa1   : > { %v707_v5 = vpop.f32.mrf.mxu0 }
  0xa2   : > { %v708_v6 = vadd.f32 %v2169_v4, %v707_v5 }
  0xa4   : > { %v2491_v7 = vpack.c.bf16 %v708_v6, %v708_v6 }
  0xa6   : > { %884 = vrot.lane.b32.xlu2 %v2491_v7, %s2319_s30  ;;  %770 = vrot.lane.b32.xlu1 %v2491_v7, %s2320_s1 }
  0xa7   : > { %713 = vrot.lane.b32.xlu0 %v2491_v7, %s2751_s20  ;;  %s2767_s20 = smov 8  }
  0xa9   : > { %v709_v8 = vpop.f32.mrf.mxu0 }
  0xae   : > { %829 = vrot.lane.b32.xlu2 %v2491_v7, %s2752_s0  ;;  %886 = vrot.lane.b32.xlu1 %v2491_v7, %s2749_s19  ;;  %s2768_s0 = smov 16   ;;  %s668_s19 = scalar_lea.vmem %s2748_s18, %s2471_s11 }
  0xaf   : > { %772 = vrot.lane.b32.xlu0 %v2491_v7, %s2754_s21 }
  0xb7   : > { %827 = vrot.lane.b32.xlu0 %v2491_v7, %s2325_s22 }
 0x100   : > { %v885_v9 = vpop.permute.xlu2 %884 }
 0x108   : > { %v830_v10 = vpop.permute.xlu2 %829 }
 0x109   : > { %v835_v11 = vsel %vm715_vm1, %v830_v10, 0 }
 0x10a   : > { %844 = vmatpush.bf16.xpose.msrb.mxu0 %v835_v11 }
 0x118   : > { %v771_v12 = vpop.permute.xlu1 %770 }
 0x119   : > { %v714_v13 = vpop.permute.xlu0 %713 }
 0x11a   : > { %v720_v14 = vsel %vm715_vm1, %v714_v13, 0 }
 0x11b   : > { %729 = vmatpush.bf16.xpose.msra.mxu1 %v720_v14 }
 0x120   : > { %v887_v15 = vpop.permute.xlu1 %886 }
 0x121   : > { %v773_v16 = vpop.permute.xlu0 %772  ;;  %v892_v17 = vsel %vm715_vm1, %v887_v15, 0 }
 0x122   : > { %1951 = vmatmul.msk.bf16.vlgmr.msra.gmra.mxu1 %vm715_vm1, %v2491_v7  ;;  %v778_v18 = vsel %vm715_vm1, %v773_v16, 0 }
 0x123   : > { %787 = vmatpush.bf16.xpose.msra.mxu3 %v778_v18 }
 0x129   : > { %v828_v19 = vpop.permute.xlu0 %827 }
 0x12a   : > { %1953 = vmatmul.msk.bf16.vlgmr.msra.gmra.mxu3 %vm715_vm1, %v771_v12  ;;  %1955 = vmatmul.msk.bf16.vlgmr.msrb.gmra.mxu0 %vm715_vm1, %v828_v19 }
 0x12b   : > { %901 = vmatpush.bf16.xpose.msrb.mxu3 %v892_v17 }
 0x13a   : > { %1957 = vmatmul.msk.bf16.vlgmr.msrb.gmra.mxu3 %vm715_vm1, %v885_v9 }
 0x19f   : > { %v731_v20 = vpop.f32.mrf.mxu1 }
 0x1a0   : > { %v735_v21 = vmul.f32 0.35355338, %v731_v20 }
 0x1a2   : > { %v736_v22 = vsel %vm715_vm1, %v735_v21, -inf }
 0x1a3   : > { %737 = vmax.xlane.f32.xlu1 %v736_v22 }
 0x1a7   : > { %v733_v23 = vpop.f32.mrf.mxu1  ;;  %v846_v24 = vpop.f32.mrf.mxu0 }
 0x1a8   : > { %v850_v29 = vmul.f32 0.35355338, %v846_v24 }
 0x1aa   : > { %v851_v31 = vsel %vm715_vm1, %v850_v29, -inf }
 0x1ad   : > { %v789_v25 = vpop.f32.mrf.mxu3 }
 0x1ae   : > { %v793_v26 = vmul.f32 0.35355338, %v789_v25  ;;  %v2089_v25 = vld [vmem:[%s2735_s5 + $0x8] sm:$0xff] }
 0x1af   : > { %v848_v27 = vpop.f32.mrf.mxu0  ;;  %984 = vmatpush.bf16.msra.mxu0 %v2089_v25 }
 0x1b0   : > { %v794_v28 = vsel %vm715_vm1, %v793_v26, -inf  ;;  %v2093_v27 = vld [vmem:[#allocation2 + $0x8] sm:$0xff] }
 0x1b1   : > { %795 = vmax.xlane.f32.xlu2 %v794_v28  ;;  %1107 = vmatpush.bf16.msra.mxu3 %v2093_v27  ;;  %v2092_v28 = vld [vmem:[#allocation2] sm:$0xff] }
 0x1b5   : > { %v791_v30 = vpop.f32.mrf.mxu3  ;;  %1108 = vmatpush.bf16.msra.mxu3 %v2092_v28 }
 0x1b9   : > { %852 = vmax.xlane.f32.xlu2 %v851_v31 }
 0x1bd   : > { %v903_v32 = vpop.f32.mrf.mxu3 }
 0x1be   : > { %v907_v33 = vmul.f32 0.35355338, %v903_v32 }
 0x1c0   : > { %v908_v34 = vsel %vm715_vm1, %v907_v33, -inf }
 0x1c1   : > { %909 = vmax.xlane.f32.xlu0 %v908_v34 }
 0x1c5   : > { %v905_v35 = vpop.f32.mrf.mxu3 }
 0x1d1   : > { %748 = vrot.lane.b32.xlu2 %v2491_v7, %s2326_s2  ;;  %s2332_s2 = smov 24  }
 0x1d9   : > { %920 = vrot.lane.b32.xlu2 %v2491_v7, %s2327_s23 }
 0x216   : > { %v738_v36 = vpop.xlane.xlu1 %737 }
 0x217   : > { %v739_v37 = vsub.f32 %v735_v21, %v738_v36 }
 0x219   : > { %v740_v38 = vmul.f32 1.442695, %v739_v37 }
 0x21b   : > { %2174 = vpow2.f32 %v740_v38 }
 0x221   : > { %v2175_v39 = vpop.eup %2174 }
 0x222   : > { %v742_v40 = vsel %vm715_vm1, %v2175_v39, 0.0 }
 0x223   : > { %743 = vadd.xlane.f32.xlu1 %v742_v40  ;;  %v2090_v40 = vld [vmem:[%s2737_s7] sm:$0xff] }
 0x224   : > { %v796_v41 = vpop.xlane.xlu2 %795 }
 0x225   : > { %v797_v44 = vsub.f32 %v793_v26, %v796_v41  ;;  %v2088_v26 = vld [vmem:[%s2735_s5] sm:$0xff] }
 0x226   : > { %985 = vmatpush.bf16.msra.mxu0 %v2088_v26 }
 0x227   : > { %v798_v46 = vmul.f32 1.442695, %v797_v44 }
 0x22c   : > { %v853_v42 = vpop.xlane.xlu2 %852 }
 0x22d   : > { %v854_v43 = vsub.f32 %v850_v29, %v853_v42  ;;  %v2171_v42 = vld [vmem:[%s2740_s10] ss:$0 sm:$0xff] }
 0x22f   : > { %v855_v45 = vmul.f32 1.442695, %v854_v43  ;;  %v2170_v43 = vld [vmem:[%s2736_s6] ss:$0 sm:$0xff] }
 0x231   : > { %2176 = vpow2.f32 %v855_v45 }
 0x232   : > { %2178 = vpow2.f32 %v798_v46 }
 0x234   : > { %v749_v47 = vpop.permute.xlu2 %748  ;;  %v910_v48 = vpop.xlane.xlu0 %909 }
 0x235   : > { %v755_v49 = vsel %vm753_vm2, %v749_v47, 0  ;;  %v911_v51 = vsub.f32 %v907_v33, %v910_v48 }
 0x236   : > { %764 = vmatpush.bf16.msra.mxu2 %v755_v49 }
 0x237   : > { %v2177_v50 = vpop.eup %2176  ;;  %v912_v53 = vmul.f32 1.442695, %v911_v51 }
 0x238   : > { %v857_v52 = vsel %vm715_vm1, %v2177_v50, 0.0  ;;  %v2179_v54 = vpop.eup %2178 }
 0x239   : > { %858 = vadd.xlane.f32.xlu0 %v857_v52  ;;  %2180 = vpow2.f32 %v912_v53  ;;  %v800_v55 = vsel %vm715_vm1, %v2179_v54, 0.0 }
 0x23c   : > { %806 = vrot.lane.b32.xlu1 %v2491_v7, %s2328_s24  ;;  %v921_v63 = vpop.permute.xlu2 %920 }
 0x23d   : > { %v926_v3 = vsel %vm753_vm2, %v921_v63, 0 }
 0x23f   : > { %v2181_v56 = vpop.eup %2180 }
 0x240   : > { %v914_v57 = vsel %vm715_vm1, %v2181_v56, 0.0 }
 0x241   : > { %801 = vadd.xlane.f32.xlu0 %v800_v55 }
 0x249   : > { %915 = vadd.xlane.f32.xlu0 %v914_v57 }
 0x25d   : > { %863 = vrot.lane.b32.xlu0 %v2491_v7, %s2329_s25 }
 0x296   : > { %v744_v58 = vpop.xlane.xlu1 %743 }
 0x297   : > { %2182 = vrcp.f32 %v744_v58 }
 0x29d   : > { %v2183_v59 = vpop.eup %2182 }
 0x29e   : > { %v746_v60 = vmul.f32 %v2183_v59, %v2175_v39  ;;  %v2091_v39 = vld [vmem:[%s2737_s7 + $0x8] sm:$0xff] }
 0x2a0   : > { %v747_v61 = vpack.c.bf16 %v746_v60, %v746_v60 }
 0x2a2   : > { %1952 = vmatmul.msk.bf16.vlgmr.msra.gmra.mxu2 %vm715_vm1, %v747_v61 }
 0x2ac   : > { %v859_v62 = vpop.xlane.xlu0 %858 }
 0x2ae   : > { %v807_v0 = vpop.permute.xlu1 %806 }
 0x2af   : > { %v812_v1 = vsel %vm753_vm2, %v807_v0, 0 }
 0x2b0   : > { %821 = vmatpush.bf16.msrb.mxu2 %v812_v1 }
 0x2b4   : > { %935 = vmatpush.bf16.msra.mxu2 %v926_v3  ;;  %v802_v4 = vpop.xlane.xlu0 %801 }
 0x2b5   : > { %2184 = vrcp.f32 %v802_v4 }
 0x2bb   : > { %v2185_v5 = vpop.eup %2184 }
 0x2bc   : > { %v804_v6 = vmul.f32 %v2185_v5, %v2179_v54  ;;  %v916_v7 = vpop.xlane.xlu0 %915 }
 0x2bd   : > { %2186 = vrcp.f32 %v916_v7 }
 0x2be   : > { %v805_v8 = vpack.c.bf16 %v804_v6, %v804_v6  ;;  %2188 = vrcp.f32 %v859_v62 }
 0x2c0   : > { %1954 = vmatmul.msk.bf16.vlgmr.msrb.gmra.mxu2 %vm715_vm1, %v805_v8 }
 0x2c3   : > { %v2187_v9 = vpop.eup %2186 }
 0x2c4   : > { %v918_v10 = vmul.f32 %v2187_v9, %v2181_v56  ;;  %v2189_v11 = vpop.eup %2188 }
 0x2c5   : > { %v861_v12 = vmul.f32 %v2189_v11, %v2177_v50 }
 0x2c6   : > { %v919_v13 = vpack.c.bf16 %v918_v10, %v918_v10 }
 0x2c7   : > { %v862_v16 = vpack.c.bf16 %v861_v12, %v861_v12 }
 0x2cf   : > { %v864_v14 = vpop.permute.xlu0 %863 }
 0x2d0   : > { %1958 = vmatmul.msk.bf16.vlgmr.msra.gmra.mxu2 %vm715_vm1, %v919_v13  ;;  %v869_v15 = vsel %vm753_vm2, %v864_v14, 0 }
 0x2d1   : > { %878 = vmatpush.bf16.msrb.mxu1 %v869_v15 }
 0x2d4   : > { %1956 = vmatmul.msk.bf16.vlgmr.msrb.gmra.mxu1 %vm715_vm1, %v862_v16 }
 0x2d5   : > { %1070 = vmatpush.bf16.msra.mxu1 %v2091_v39 }
 0x2d9   : > { %1071 = vmatpush.bf16.msra.mxu1 %v2090_v40 }
 0x325   : > { %v766_v17 = vpop.f32.mrf.mxu2 }
 0x32d   : > { %v768_v18 = vpop.f32.mrf.mxu2 }
 0x343   : > { %v823_v19 = vpop.f32.mrf.mxu2 }
 0x344   : > { %942 = vrot.lane.b32.xlu1 %v823_v19, %s2750_s26  ;;  %s2085_s26 = sshll.u32 %s2771_s28, 4  ;;  %s2766_s28 = smov 72  }
 0x34b   : > { %v825_v20 = vpop.f32.mrf.mxu2 }
 0x351   : > { %v880_v21 = vpop.f32.mrf.mxu1 }
 0x352   : > { %946 = vrot.lane.b32.xlu2 %v880_v21, %s2753_s29  ;;  %s2762_s29 = sld [smem:[#allocation10_spill]] }
 0x353   : > { %v937_v22 = vpop.f32.mrf.mxu2 }
 0x354   : > { %950 = vrot.lane.b32.xlu1 %v937_v22, %s2332_s2  ;;  %v2172_v22 = vld [vmem:[%s2738_s8] ss:$0 sm:$0xff] }
 0x358   : > { %s656_s21 = scalar_lea.vmem %s2762_s29, %s2085_s26 }
 0x359   : > { %v882_v23 = vpop.f32.mrf.mxu1  ;;  %v671_v29 = vld [vmem:[%s656_s21] sm:$0xff]  ;;  %v672_v30 = vld [vmem:[%s656_s21 + $0x8] sm:$0xf] }
 0x35a   : > { %v1081_v31 = vpack.c.bf16 %v672_v30, %v671_v29 }
 0x35b   : > { %v939_v24 = vpop.f32.mrf.mxu2 }
 0x35c   : > { %1985 = vmatmul.msk.bf16.vlgmr.msra.gmra.mxu3 %vm694_vm0, %v1081_v31 }
 0x3ac   : > { %v947_v34 = vpop.permute.xlu2 %946 }
 0x3b6   : > { %v943_v32 = vpop.permute.xlu1 %942 }
 0x3b7   : > { %v953_v33 = vsel %vm715_vm1, %v766_v17, %v943_v32 }
 0x3b8   : > { %v955_v36 = vsel %vm954_vm3, %v953_v33, %v947_v34 }
 0x3c6   : > { %v951_v35 = vpop.permute.xlu1 %950 }
 0x3c7   : > { %v957_v37 = vsel %vm956_vm4, %v955_v36, %v951_v35 }
 0x3c8   : > { %v962_v38 = vpack.c.bf16 %v957_v37, %v957_v37 }
 0x3ca   : > { %1967 = vmatmul.msk.bf16.vlgmr.msra.gmra.mxu0 %vm694_vm0, %v962_v38 }
 0x3df   : > { %v1110_v41 = vpop.f32.mrf.mxu3 }
 0x3e0   : > { %v1111_v46 = vadd.f32 %v2171_v42, %v1110_v41 }
 0x3e7   : > { %v1112_v47 = vpop.f32.mrf.mxu3 }
 0x3e8   : > { %v1113_v49 = vadd.f32 %v2171_v42, %v1112_v47 }
 0x3ea   : > { %v2567_v54 = vpack.c.bf16 %v1113_v49, %v1111_v46 }
 0x3ec   : > { %1175 = vrot.lane.b32.xlu2 %v2567_v54, %s2320_s1  ;;  %1232 = vrot.lane.b32.xlu0 %v2567_v54, %s2325_s22  ;;  %v1121_v59 = vsel %vm715_vm1, %v2567_v54, 0 }
 0x3ed   : > { %1130 = vmatpush.bf16.xpose.msrb.mxu2 %v1121_v59 }
 0x3f4   : > { %1289 = vrot.lane.b32.xlu2 %v2567_v54, %s2319_s30 }
 0x446   : > { %v1176_v16 = vpop.permute.xlu2 %1175 }
 0x447   : > { %v987_v44 = vpop.f32.mrf.mxu0  ;;  %v1181_v18 = vsel %vm715_vm1, %v1176_v16, 0 }
 0x448   : > { %v991_v45 = vadd.f32 %v987_v44, %v2483_v2  ;;  %1190 = vmatpush.bf16.xpose.msrb.mxu1 %v1181_v18 }
 0x44a   : > { %v996_v48 = vadd.f32 %v2170_v43, %v991_v45 }
 0x44c   : > { %v998_v50 = vrot.slane %v996_v48, 7  ;;  %v1000_v51 = vrot.slane %v996_v48, 6  ;;  %v1002_v52 = vrot.slane %v996_v48, 5  ;;  %v1004_v53 = vrot.slane %v996_v48, 4 }
 0x44e   : > { %v1007_v55 = vsel %vm1006_vm5, %v996_v48, %v998_v50  ;;  %v1010_v56 = vsel %vm1008_vm6, %v1000_v51, %v1002_v52  ;;  %v1290_v20 = vpop.permute.xlu2 %1289 }
 0x44f   : > { %v1009_v57 = vsel %vm1008_vm6, %v1007_v55, %v1000_v51  ;;  %v1012_v2 = vsel %vm1011_vm7, %v1010_v56, %v1004_v53  ;;  %v989_v58 = vpop.f32.mrf.mxu0  ;;  %v1295_v21 = vsel %vm715_vm1, %v1290_v20, 0 }
 0x450   : > { %v1016_v60 = vrot.slane %v1009_v57, 1  ;;  %v1017_v61 = vrot.slane %v1012_v2, 1  ;;  %v1022_v62 = vrot.slane %v1009_v57, 2  ;;  %v1023_v63 = vrot.slane %v1012_v2, 2 }
 0x451   : > { %v1028_v1 = vrot.slane %v1009_v57, 3  ;;  %v1029_v3 = vrot.slane %v1012_v2, 3  ;;  %v1033_v6 = vrot.slane %v1009_v57, 4  ;;  %v1034_v7 = vrot.slane %v1012_v2, 4 }
 0x452   : > { %v1018_v0 = vsel %vm1015_vm8, %v1016_v60, %v1017_v61  ;;  %v1024_v5 = vsel %vm1021_vm9, %v1022_v62, %v1023_v63 }
 0x453   : > { %v1020_v4 = vadd.f32 %v1018_v0, %v1009_v57  ;;  %v1030_v9 = vsel %vm1027_vm10, %v1028_v1, %v1029_v3  ;;  %v1035_v11 = vsel %vm753_vm2, %v1033_v6, %v1034_v7 }
 0x455   : > { %v1026_v8 = vadd.f32 %v1024_v5, %v1020_v4 }
 0x457   : > { %v1032_v10 = vadd.f32 %v1030_v9, %v1026_v8 }
 0x459   : > { %v1037_v12 = vadd.f32 %v1035_v11, %v1032_v10 }
 0x45b   : > { %v2585_v13 = vmul.f32 0.2, %v1037_v12 }
 0x45d   : > { %v2588_v14 = vsub.f32 %v996_v48, %v2585_v13 }
 0x45e   : > { %v1233_v17 = vpop.permute.xlu0 %1232 }
 0x45f   : > { %v1044_v15 = vpack.c.bf16 %v2588_v14, %v2588_v14  ;;  %v1238_v19 = vsel %vm715_vm1, %v1233_v17, 0 }
 0x460   : > { %1247 = vmatpush.bf16.xpose.msra.mxu2 %v1238_v19 }
 0x461   : > { %1976 = vmatmul.msk.bf16.vlgmr.msra.gmra.mxu1 %vm694_vm0, %v1044_v15 }
 0x462   : > { %1304 = vmatpush.bf16.xpose.msra.mxu1 %v1295_v21 }
 0x4de   : > { %v1073_v23 = vpop.f32.mrf.mxu1 }
 0x4df   : > { %v1074_v24 = vadd.f32 %v2172_v22, %v1073_v23 }
 0x4e1   : > { %v1115_v25 = vpack.c.bf16 %v1074_v24, %v1074_v24 }
 0x4e3   : > { %1287 = vrot.lane.b32.xlu0 %v1115_v25, %s2319_s30  ;;  %1173 = vrot.lane.b32.xlu1 %v1115_v25, %s2320_s1  ;;  %s2763_s30 = smov 88   ;;  %s2764_s1 = smov 80  }
 0x4e4   : > { %1986 = vmatmul.msk.bf16.vlgmr.msrb.gmra.mxu2 %vm715_vm1, %v1115_v25 }
 0x4e6   : > { %v1075_v26 = vpop.f32.mrf.mxu1 }
 0x4eb   : > { %1230 = vrot.lane.b32.xlu1 %v1115_v25, %s2325_s22  ;;  %s2765_s22 = smov 96  }
 0x555   : > { %v1174_v27 = vpop.permute.xlu1 %1173  ;;  %v1288_v29 = vpop.permute.xlu0 %1287 }
 0x556   : > { %1988 = vmatmul.msk.bf16.vlgmr.msrb.gmra.mxu1 %vm715_vm1, %v1174_v27 }
 0x55d   : > { %v1231_v28 = vpop.permute.xlu1 %1230 }
 0x55e   : > { %1990 = vmatmul.msk.bf16.vlgmr.msra.gmra.mxu2 %vm715_vm1, %v1231_v28 }
 0x566   : > { %1992 = vmatmul.msk.bf16.vlgmr.msra.gmra.mxu1 %vm715_vm1, %v1288_v29 }
 0x567   : > { %v1132_v30 = vpop.f32.mrf.mxu2 }
 0x568   : > { %v1136_v31 = vmul.f32 0.35355338, %v1132_v30 }
 0x56a   : > { %v1138_v32 = vsel %vm1137_vm11, %v1136_v31, -inf }
 0x56b   : > { %1139 = vmax.xlane.f32.xlu1 %v1138_v32 }
 0x56f   : > { %v1134_v33 = vpop.f32.mrf.mxu2 }
 0x5d3   : > { %v1192_v34 = vpop.f32.mrf.mxu1 }
 0x5d4   : > { %v1196_v35 = vmul.f32 0.35355338, %v1192_v34 }
 0x5d6   : > { %v1197_v36 = vsel %vm1137_vm11, %v1196_v35, -inf }
 0x5d7   : > { %1198 = vmax.xlane.f32.xlu2 %v1197_v36  ;;  %v2095_v36 = vld [vmem:[#allocation4 + $0x8] sm:$0xff] }
 0x5d8   : > { %1385 = vmatpush.bf16.msrb.mxu2 %v2095_v36 }
 0x5db   : > { %v1194_v37 = vpop.f32.mrf.mxu1 }
 0x5dc   : > { %v2094_v37 = vld [vmem:[#allocation4] sm:$0xff] }
 0x5dd   : > { %1386 = vmatpush.bf16.msrb.mxu2 %v2094_v37 }
 0x5de   : > { %v1140_v38 = vpop.xlane.xlu1 %1139 }
 0x5df   : > { %v1141_v39 = vsub.f32 %v1136_v31, %v1140_v38 }
 0x5e1   : > { %v1142_v40 = vmul.f32 1.442695, %v1141_v39  ;;  %v1249_v41 = vpop.f32.mrf.mxu2 }
 0x5e2   : > { %v1253_v42 = vmul.f32 0.35355338, %v1249_v41 }
 0x5e3   : > { %v1306_v43 = vpop.f32.mrf.mxu1  ;;  %2190 = vpow2.f32 %v1142_v40 }
 0x5e4   : > { %v1310_v44 = vmul.f32 0.35355338, %v1306_v43  ;;  %v1254_v45 = vsel %vm1137_vm11, %v1253_v42, -inf }
 0x5e5   : > { %1255 = vmax.xlane.f32.xlu2 %v1254_v45  ;;  %v2097_v45 = vld [vmem:[#allocation6 + $0x8] sm:$0xff] }
 0x5e6   : > { %v1311_v46 = vsel %vm1137_vm11, %v1310_v44, -inf }
 0x5e7   : > { %1312 = vmax.xlane.f32.xlu0 %v1311_v46  ;;  %v2096_v46 = vld [vmem:[#allocation6] sm:$0xff] }
 0x5e9   : > { %v1251_v47 = vpop.f32.mrf.mxu2  ;;  %v2191_v48 = vpop.eup %2190 }
 0x5ea   : > { %v1144_v50 = vsel %vm1137_vm11, %v2191_v48, 0.0  ;;  %v2101_v47 = vld [vmem:[%s2744_s14 + $0x18] sm:$0xff] }
 0x5eb   : > { %v1308_v49 = vpop.f32.mrf.mxu1  ;;  %1510 = vmatpush.bf16.msrb.mxu1 %v2101_v47 }
 0x5ec   : > { %v2173_v49 = vld [vmem:[%s2742_s12] ss:$0 sm:$0xff] }
 0x5ef   : > { %1145 = vadd.xlane.f32.xlu0 %v1144_v50 }
 0x5fd   : > { %1209 = vrot.lane.b32.xlu2 %v2567_v54, %s2763_s30 }
 0x605   : > { %1266 = vrot.lane.b32.xlu2 %v2567_v54, %s2764_s1 }
 0x64a   : > { %v1199_v51 = vpop.xlane.xlu2 %1198 }
 0x64b   : > { %v1200_v52 = vsub.f32 %v1196_v35, %v1199_v51  ;;  %v2099_v51 = vld [vmem:[%s2744_s14 + $0x8] sm:$0xff] }
 0x64d   : > { %v1201_v53 = vmul.f32 1.442695, %v1200_v52 }
 0x64f   : > { %2192 = vpow2.f32 %v1201_v53 }
 0x655   : > { %v2193_v55 = vpop.eup %2192 }
 0x656   : > { %v1203_v56 = vsel %vm1137_vm11, %v2193_v55, 0.0 }
 0x657   : > { %1204 = vadd.xlane.f32.xlu1 %v1203_v56 }
 0x658   : > { %v1256_v57 = vpop.xlane.xlu2 %1255 }
 0x659   : > { %v1257_v2 = vsub.f32 %v1253_v42, %v1256_v57 }
 0x65a   : > { %v1313_v58 = vpop.xlane.xlu0 %1312 }
 0x65b   : > { %v1258_v59 = vmul.f32 1.442695, %v1257_v2  ;;  %v1314_v60 = vsub.f32 %v1310_v44, %v1313_v58 }
 0x65d   : > { %2194 = vpow2.f32 %v1258_v59  ;;  %v1315_v61 = vmul.f32 1.442695, %v1314_v60 }
 0x65f   : > { %2196 = vpow2.f32 %v1315_v61 }
 0x660   : > { %v1210_v62 = vpop.permute.xlu2 %1209 }
 0x661   : > { %v1215_v63 = vsel %vm1021_vm9, %v1210_v62, 0 }
 0x662   : > { %1224 = vmatpush.bf16.msrb.mxu3 %v1215_v63  ;;  %v1146_v8 = vpop.xlane.xlu0 %1145 }
 0x663   : > { %v2195_v0 = vpop.eup %2194 }
 0x664   : > { %v1260_v1 = vsel %vm1137_vm11, %v2195_v0, 0.0 }
 0x665   : > { %1261 = vadd.xlane.f32.xlu0 %v1260_v1  ;;  %v2197_v3 = vpop.eup %2196 }
 0x666   : > { %v1317_v4 = vsel %vm1137_vm11, %v2197_v3, 0.0 }
 0x668   : > { %v1267_v15 = vpop.permute.xlu2 %1266 }
 0x669   : > { %v1272_v18 = vsel %vm1021_vm9, %v1267_v15, 0 }
 0x66d   : > { %1318 = vadd.xlane.f32.xlu0 %v1317_v4 }
 0x670   : > { %1151 = vrot.lane.b32.xlu1 %v2567_v54, %s2765_s22  ;;  %s664_s22 = scalar_lea.vmem %s2747_s17, %s2471_s11 }
 0x681   : > { %1323 = vrot.lane.b32.xlu0 %v2567_v54, %s2766_s28  ;;  %s2769_s28 = sld [smem:[#allocation11_spill]] }
 0x6ca   : > { %v1205_v5 = vpop.xlane.xlu1 %1204 }
 0x6cb   : > { %2198 = vrcp.f32 %v1205_v5 }
 0x6cc   : > { %2200 = vrcp.f32 %v1146_v8 }
 0x6d1   : > { %v2199_v6 = vpop.eup %2198 }
 0x6d2   : > { %v1207_v7 = vmul.f32 %v2199_v6, %v2193_v55  ;;  %v2201_v11 = vpop.eup %2200 }
 0x6d3   : > { %v1148_v12 = vmul.f32 %v2201_v11, %v2191_v48  ;;  %v2100_v48 = vld [vmem:[%s2744_s14 + $0x10] sm:$0xff] }
 0x6d4   : > { %v1208_v9 = vpack.c.bf16 %v1207_v7, %v1207_v7  ;;  %1511 = vmatpush.bf16.msrb.mxu1 %v2100_v48 }
 0x6d5   : > { %v1149_v54 = vpack.c.bf16 %v1148_v12, %v1148_v12 }
 0x6d6   : > { %1989 = vmatmul.msk.bf16.vlgmr.msrb.gmra.mxu3 %vm1137_vm11, %v1208_v9 }
 0x6d8   : > { %v1262_v10 = vpop.xlane.xlu0 %1261  ;;  %1512 = vmatpush.bf16.msrb.mxu1 %v2099_v51 }
 0x6d9   : > { %2202 = vrcp.f32 %v1262_v10 }
 0x6df   : > { %v2203_v20 = vpop.eup %2202 }
 0x6e0   : > { %v1319_v19 = vpop.xlane.xlu0 %1318  ;;  %v1264_v22 = vmul.f32 %v2203_v20, %v2195_v0 }
 0x6e1   : > { %2204 = vrcp.f32 %v1319_v19  ;;  %v2098_v19 = vld [vmem:[%s2744_s14] sm:$0xff] }
 0x6e2   : > { %v1152_v16 = vpop.permute.xlu1 %1151  ;;  %v1265_v26 = vpack.c.bf16 %v1264_v22, %v1264_v22  ;;  %1513 = vmatpush.bf16.msrb.mxu1 %v2098_v19 }
 0x6e3   : > { %v1157_v17 = vsel %vm1021_vm9, %v1152_v16, 0 }
 0x6e4   : > { %1166 = vmatpush.bf16.msrb.mxu0 %v1157_v17 }
 0x6e7   : > { %1987 = vmatmul.msk.bf16.vlgmr.msrb.gmra.mxu0 %vm1137_vm11, %v1149_v54  ;;  %v2205_v21 = vpop.eup %2204 }
 0x6e8   : > { %1281 = vmatpush.bf16.msra.mxu0 %v1272_v18  ;;  %v1321_v23 = vmul.f32 %v2205_v21, %v2197_v3 }
 0x6ea   : > { %v1322_v27 = vpack.c.bf16 %v1321_v23, %v1321_v23 }
 0x6ec   : > { %1461 = vmatpush.bf16.msrb.mxu0 %v2097_v45 }
 0x6f0   : > { %1462 = vmatpush.bf16.msrb.mxu0 %v2096_v46 }
 0x6f3   : > { %v1324_v24 = vpop.permute.xlu0 %1323 }
 0x6f4   : > { %v1329_v25 = vsel %vm1021_vm9, %v1324_v24, 0  ;;  %v2105_v24 = vld [vmem:[%s2745_s15 + $0x18] sm:$0xff] }
 0x6f5   : > { %1338 = vmatpush.bf16.msra.mxu3 %v1329_v25  ;;  %v2103_v25 = vld [vmem:[%s2745_s15 + $0x8] sm:$0xff] }
 0x6f6   : > { %1629 = vmatpush.bf16.msra.mxu2 %v2103_v25 }
 0x6f7   : > { %1991 = vmatmul.msk.bf16.vlgmr.msra.gmra.mxu0 %vm1137_vm11, %v1265_v26  ;;  %v2107_v26 = vld [vmem:[%s2745_s15 + $0x28] sm:$0xff] }
 0x6f8   : > { %1993 = vmatmul.msk.bf16.vlgmr.msra.gmra.mxu3 %vm1137_vm11, %v1322_v27  ;;  %1658 = vmatpush.bf16.msra.mxu0 %v2107_v26  ;;  %v2104_v27 = vld [vmem:[%s2745_s15 + $0x10] sm:$0xff] }
 0x6f9   : > { %1601 = vmatpush.bf16.msrb.mxu3 %v2105_v24 }
 0x6fd   : > { %1602 = vmatpush.bf16.msrb.mxu3 %v2104_v27 }
 0x759   : > { %v1226_v28 = vpop.f32.mrf.mxu3 }
 0x75a   : > { %1345 = vrot.lane.b32.xlu1 %v1226_v28, %s2767_s20  ;;  %v2102_v28 = vld [vmem:[%s2745_s15] sm:$0xff]  ;;  %s660_s20 = scalar_lea.vmem %s2769_s28, %s2471_s11 }
 0x75b   : > { %1630 = vmatpush.bf16.msra.mxu2 %v2102_v28 }
 0x761   : > { %v1228_v29 = vpop.f32.mrf.mxu3 }
 0x762   : > { %v2106_v29 = vld [vmem:[%s2745_s15 + $0x20] sm:$0xff] }
 0x763   : > { %1659 = vmatpush.bf16.msra.mxu0 %v2106_v29 }
 0x764   : > { %v1168_v30 = vpop.f32.mrf.mxu0 }
 0x76c   : > { %v1170_v31 = vpop.f32.mrf.mxu0 }
 0x774   : > { %v1283_v32 = vpop.f32.mrf.mxu0 }
 0x775   : > { %1349 = vrot.lane.b32.xlu2 %v1283_v32, %s2768_s0 }
 0x77b   : > { %v1340_v33 = vpop.f32.mrf.mxu3 }
 0x77c   : > { %v1285_v34 = vpop.f32.mrf.mxu0  ;;  %1353 = vrot.lane.b32.xlu1 %v1340_v33, %s2332_s2 }
 0x783   : > { %v1342_v35 = vpop.f32.mrf.mxu3 }
 0x7cc   : > { %v1346_v38 = vpop.permute.xlu1 %1345 }
 0x7cd   : > { %v1356_v40 = vsel %vm715_vm1, %v1168_v30, %v1346_v38 }
 0x7cf   : > { %v1350_v39 = vpop.permute.xlu2 %1349 }
 0x7d0   : > { %v1357_v41 = vsel %vm954_vm3, %v1356_v40, %v1350_v39 }
 0x7ee   : > { %v1354_v42 = vpop.permute.xlu1 %1353 }
 0x7ef   : > { %v1358_v43 = vsel %vm956_vm4, %v1357_v41, %v1354_v42 }
 0x7f0   : > { %v1363_v44 = vpack.c.bf16 %v1358_v43, %v1358_v43 }
 0x7f2   : > { %2002 = vmatmul.msk.bf16.vlgmr.msrb.gmra.mxu2 %vm694_vm0, %v1363_v44 }
 0x875   : > { %v1388_v50 = vpop.f32.mrf.mxu2 }
 0x876   : > { %v1392_v52 = vadd.f32 %v1388_v50, %v2588_v14 }
 0x878   : > { %v1397_v53 = vadd.f32 %v2173_v49, %v1392_v52 }
 0x87a   : > { %v1399_v55 = vrot.slane %v1397_v53, 7  ;;  %v1401_v56 = vrot.slane %v1397_v53, 6  ;;  %v1403_v57 = vrot.slane %v1397_v53, 5  ;;  %v1405_v2 = vrot.slane %v1397_v53, 4 }
 0x87c   : > { %v1407_v58 = vsel %vm1006_vm5, %v1397_v53, %v1399_v55  ;;  %v1409_v59 = vsel %vm1008_vm6, %v1401_v56, %v1403_v57 }
 0x87d   : > { %v1408_v60 = vsel %vm1008_vm6, %v1407_v58, %v1401_v56  ;;  %v1410_v61 = vsel %vm1011_vm7, %v1409_v59, %v1405_v2  ;;  %v1390_v62 = vpop.f32.mrf.mxu2 }
 0x87e   : > { %v1413_v63 = vrot.slane %v1408_v60, 1  ;;  %v1414_v0 = vrot.slane %v1410_v61, 1  ;;  %v1418_v1 = vrot.slane %v1408_v60, 2  ;;  %v1419_v3 = vrot.slane %v1410_v61, 2 }
 0x87f   : > { %v1423_v4 = vrot.slane %v1408_v60, 3  ;;  %v1424_v5 = vrot.slane %v1410_v61, 3  ;;  %v1428_v8 = vrot.slane %v1408_v60, 4  ;;  %v1429_v9 = vrot.slane %v1410_v61, 4 }
 0x880   : > { %v1415_v14 = vsel %vm1015_vm8, %v1413_v63, %v1414_v0  ;;  %v1420_v7 = vsel %vm1021_vm9, %v1418_v1, %v1419_v3  ;;  %v2109_v3 = vld [vmem:[%s2746_s16 + $0x8] sm:$0xff] }
 0x881   : > { %v1417_v6 = vadd.f32 %v1415_v14, %v1408_v60  ;;  %v1425_v11 = vsel %vm1027_vm10, %v1423_v4, %v1424_v5  ;;  %v1430_v15 = vsel %vm753_vm2, %v1428_v8, %v1429_v9  ;;  %v2113_v14 = vld [vmem:[%s2746_s16 + $0x28] sm:$0xff]  ;;  %1745 = vmatpush.bf16.msra.mxu3 %v2109_v3  ;;  %v2110_v5 = vld [vmem:[%s2746_s16 + $0x10] sm:$0xff] }
 0x882   : > { %1774 = vmatpush.bf16.msrb.mxu2 %v2113_v14 }
 0x883   : > { %v1422_v10 = vadd.f32 %v1420_v7, %v1417_v6  ;;  %v2108_v6 = vld [vmem:[%s2746_s16] sm:$0xff] }
 0x884   : > { %v2112_v7 = vld [vmem:[%s2746_s16 + $0x20] sm:$0xff] }
 0x885   : > { %v1427_v12 = vadd.f32 %v1425_v11, %v1422_v10  ;;  %1746 = vmatpush.bf16.msra.mxu3 %v2108_v6 }
 0x886   : > { %1775 = vmatpush.bf16.msrb.mxu2 %v2112_v7 }
 0x887   : > { %v1432_v16 = vadd.f32 %v1430_v15, %v1427_v12 }
 0x889   : > { %v1433_v17 = vmul.f32 0.2, %v1432_v16 }
 0x88b   : > { %v1434_v18 = vsub.f32 %v1397_v53, %v1433_v17  ;;  %v1557_v2 = vadd.f32 %v1433_v17, %v2585_v13  ;;  %v2111_v13 = vld [vmem:[%s2746_s16 + $0x18] sm:$0xff] }
 0x88c   : > { %1717 = vmatpush.bf16.msra.mxu1 %v2111_v13 }
 0x88d   : > { %v1439_v54 = vpack.c.bf16 %v1434_v18, %v1434_v18 }
 0x88f   : > { %2011 = vmatmul.msk.bf16.vlgmr.msrb.gmra.mxu0 %vm694_vm0, %v1439_v54 }
 0x890   : > { %1718 = vmatpush.bf16.msra.mxu1 %v2110_v5 }
 0x90c   : > { %v1464_v20 = vpop.f32.mrf.mxu0 }
 0x90d   : > { %v1468_v21 = vmax.f32 %v1464_v20, 0.0 }
 0x90f   : > { %v1477_v22 = vpack.c.bf16 %v1468_v21, %v1468_v21 }
 0x911   : > { %2028 = vmatmul.msk.bf16.vlgmr.msrb.gmra.mxu1 %vm1502_vm12, %v1477_v22 }
 0x914   : > { %v1466_v23 = vpop.f32.mrf.mxu0 }
 0x98e   : > { %v1515_v30 = vpop.f32.mrf.mxu1 }
 0x98f   : > { %v1519_v31 = vadd.f32 %v1515_v30, %v1434_v18 }
 0x991   : > { %v1521_v32 = vrot.slane %v1519_v31, 7  ;;  %v1523_v33 = vrot.slane %v1519_v31, 6  ;;  %v1525_v34 = vrot.slane %v1519_v31, 5  ;;  %v1527_v35 = vrot.slane %v1519_v31, 4 }
 0x993   : > { %v1529_v36 = vsel %vm1006_vm5, %v1519_v31, %v1521_v32  ;;  %v1531_v37 = vsel %vm1008_vm6, %v1523_v33, %v1525_v34 }
 0x994   : > { %v1530_v38 = vsel %vm1008_vm6, %v1529_v36, %v1523_v33  ;;  %v1532_v39 = vsel %vm1011_vm7, %v1531_v37, %v1527_v35  ;;  %v1783_v35 = vld [vmem:[%s660_s20] sm:$0xff] }
 0x995   : > { %v1535_v40 = vrot.slane %v1530_v38, 1  ;;  %v1536_v41 = vrot.slane %v1532_v39, 1  ;;  %v1540_v42 = vrot.slane %v1530_v38, 2  ;;  %v1541_v43 = vrot.slane %v1532_v39, 2 }
 0x996   : > { %v1517_v44 = vpop.f32.mrf.mxu1  ;;  %v1545_v46 = vrot.slane %v1530_v38, 3  ;;  %v1546_v47 = vrot.slane %v1532_v39, 3  ;;  %v1550_v50 = vrot.slane %v1530_v38, 4  ;;  %v1551_v51 = vrot.slane %v1532_v39, 4 }
 0x997   : > { %v1537_v45 = vsel %vm1015_vm8, %v1535_v40, %v1536_v41  ;;  %v1542_v49 = vsel %vm1021_vm9, %v1540_v42, %v1541_v43 }
 0x998   : > { %v1539_v48 = vadd.f32 %v1537_v45, %v1530_v38  ;;  %v1547_v53 = vsel %vm1027_vm10, %v1545_v46, %v1546_v47  ;;  %v1552_v56 = vsel %vm753_vm2, %v1550_v50, %v1551_v51 }
 0x99a   : > { %v1544_v52 = vadd.f32 %v1542_v49, %v1539_v48 }
 0x99c   : > { %v1549_v55 = vadd.f32 %v1547_v53, %v1544_v52 }
 0x99e   : > { %v1554_v57 = vadd.f32 %v1552_v56, %v1549_v55 }
 0x9a0   : > { %v1555_v58 = vmul.f32 0.2, %v1554_v57 }
 0x9a2   : > { %v1556_v59 = vsub.f32 %v1519_v31, %v1555_v58  ;;  %v1558_v60 = vadd.f32 %v1557_v2, %v1555_v58 }
 0x9a4   : > { %1782 = vst.msk [vmem:[%s664_s22] sm:$0xff] %vm694_vm0, %v1556_v59  ;;  %v1579_v61 = vpack.c.bf16 %v1558_v60, %v1558_v60  ;;  %v1572_v62 = vrot.slane %v1558_v60, 7  ;;  %v1575_v63 = vrot.slane %v1558_v60, 1 }
 0x9a6   : > { %2037 = vmatmul.msk.bf16.vlgmr.msrb.gmra.mxu3 %vm694_vm0, %v1579_v61  ;;  %v1578_v0 = vpack.c.bf16 %v1572_v62, %v1572_v62  ;;  %v1636_v1 = vpack.c.bf16 %v1575_v63, %v1575_v63 }
 0x9a8   : > { %2046 = vmatmul.msk.bf16.vlgmr.msra.gmra.mxu2 %vm694_vm0, %v1578_v0  ;;  %2055 = vmatmul.msk.bf16.vlgmr.msra.gmra.mxu0 %vm694_vm0, %v1636_v1 }
 0xa25   : > { %v1661_v4 = vpop.f32.mrf.mxu0 }
 0xa29   : > { %v1604_v8 = vpop.f32.mrf.mxu3 }
 0xa2b   : > { %v1632_v9 = vpop.f32.mrf.mxu2 }
 0xa2c   : > { %v1633_v10 = vadd.f32 %v1632_v9, %v1604_v8 }
 0xa2d   : > { %v1663_v11 = vpop.f32.mrf.mxu0 }
 0xa2e   : > { %v1665_v12 = vadd.f32 %v1661_v4, %v1633_v10 }
 0xa30   : > { %v1666_v15 = vmul.f32 %v1665_v12, %v1665_v12 }
 0xa31   : > { %v1606_v16 = vpop.f32.mrf.mxu3 }
 0xa32   : > { %v1667_v17 = vmul.f32 %v1666_v15, %v1665_v12 }
 0xa33   : > { %v1634_v18 = vpop.f32.mrf.mxu2 }
 0xa34   : > { %v1668_v54 = vmul.f32 0.044715, %v1667_v17 }
 0xa36   : > { %v1669_v19 = vadd.f32 %v1668_v54, %v1665_v12 }
 0xa38   : > { %v1670_v20 = vmul.f32 0.7978846, %v1669_v19 }
 0xa3a   : > { %2206 = vtanh.f32 %v1670_v20 }
 0xa40   : > { %v2207_v21 = vpop.eup %2206 }
 0xa41   : > { %v1672_v22 = vadd.f32 1.0, %v2207_v21 }
 0xa43   : > { %v1673_v23 = vmul.f32 0.5, %v1672_v22 }
 0xa45   : > { %v1674_v24 = vmul.f32 %v1673_v23, %v1665_v12 }
 0xa47   : > { %v1695_v25 = vpack.c.bf16 %v1674_v24, %v1674_v24  ;;  %v1688_v26 = vrot.slane %v1674_v24, 7  ;;  %v1691_v27 = vrot.slane %v1674_v24, 1 }
 0xa49   : > { %2064 = vmatmul.msk.bf16.vlgmr.msra.gmra.mxu1 %vm694_vm0, %v1695_v25  ;;  %v1694_v28 = vpack.c.bf16 %v1688_v26, %v1688_v26  ;;  %v1752_v29 = vpack.c.bf16 %v1691_v27, %v1691_v27 }
 0xa4b   : > { %2073 = vmatmul.msk.bf16.vlgmr.msra.gmra.mxu3 %vm694_vm0, %v1694_v28  ;;  %2082 = vmatmul.msk.bf16.vlgmr.msrb.gmra.mxu2 %vm694_vm0, %v1752_v29 }
 0xac6   : > { %v1720_v30 = vpop.f32.mrf.mxu1 }
 0xace   : > { %v1722_v31 = vpop.f32.mrf.mxu1  ;;  %v1748_v32 = vpop.f32.mrf.mxu3 }
 0xacf   : > { %v1749_v33 = vadd.f32 %v1748_v32, %v1720_v30  ;;  %v1777_v34 = vpop.f32.mrf.mxu2 }
 0xad1   : > { %v1781_v36 = vadd.f32 %v1777_v34, %v1749_v33 }
 0xad3   : > { %v1784_v37 = vadd.f32 %v1783_v35, %v1781_v36 }
 0xad5   : > { %1785 = vst.msk [vmem:[%s668_s19] sm:$0xff] %vm954_vm3, %v1784_v37 }
 0xad6   : > { %v1750_v38 = vpop.f32.mrf.mxu3 }
 0xad7   : > { %v1779_v39 = vpop.f32.mrf.mxu2 }
 0xad8 PF: > { %s31_s27 = sadd.s32 1, %s2312_s27  }
 0xad9   : > { %p28_p7 = scmp.ge.s32.totalorder %s31_s27, 4  }
 0xadb   :  { %30 = sbr.rel (!%p28_p7) target bundleno = 7 (0x7), region = 149 }
 0xae0   :  { %1819 = vsyncpa [#allocation3], 1 }
 0xae1   :  { %1821 = vsyncpa [#allocation3 + $0x1], 1 }
 0xae2   :  { %1822 = vsyncpa [#allocation5], 1 }

// kernel: enhanced_decoder_forward.3
= control target key start
LH: loop header
LB: loop body
LE: loop exit
PB: predicated region body
PF: predicated region fallthrough
CT: control target
= control target key end

     0   :  { %s2655_s0 = inlined_call_operand.vmem [shape: f32[2,8,32], index: 0, kind: input, shape index: {}]   ;;  %s2656_s1 = inlined_call_operand.vmem [shape: f32[2,12,32], index: 1, kind: input, shape index: {}]   ;;  %s2657_s2 = inlined_call_operand.vmem [shape: f32[2,8,16], index: 2, kind: input, shape index: {}]   ;;  %s2658_s3 = inlined_call_operand.vmem [shape: bf16[32,96], index: 3, kind: input, shape index: {}]   ;;  %s2659_s4 = inlined_call_operand.vmem [shape: f32[1,96], index: 4, kind: input, shape index: {}]   ;;  %s2660_s5 = inlined_call_operand.vmem [shape: bf16[32,32], index: 5, kind: input, shape index: {}]   ;;  %s2661_s6 = inlined_call_operand.vmem [shape: f32[1,32], index: 6, kind: input, shape index: {}]   ;;  %s2662_s7 = inlined_call_operand.vmem [shape: bf16[32,32], index: 7, kind: input, shape index: {}]   ;;  %s2663_s8 = inlined_call_operand.vmem [shape: f32[1,32], index: 8, kind: input, shape index: {}]   ;;  %s2664_s9 = inlined_call_operand.vmem [shape: bf16[32,64], index: 9, kind: input, shape index: {}]   ;;  %s2665_s10 = inlined_call_operand.vmem [shape: f32[1,64], index: 10, kind: input, shape index: {}]   ;;  %s2666_s11 = inlined_call_operand.hbm [shape: bf16[32,32], index: 11, kind: input, shape index: {}]   ;;  %s2667_s12 = inlined_call_operand.vmem [shape: f32[1,32], index: 12, kind: input, shape index: {}]   ;;  %s2668_s13 = inlined_call_operand.hbm [shape: bf16[32,64], index: 13, kind: input, shape index: {}]   ;;  %s2669_s14 = inlined_call_operand.vmem [shape: bf16[64,32], index: 14, kind: input, shape index: {}]   ;;  %s2670_s15 = inlined_call_operand.vmem [shape: bf16[3,32,32], index: 15, kind: input, shape index: {}]   ;;  %s2671_s16 = inlined_call_operand.vmem [shape: bf16[3,32,16], index: 16, kind: input, shape index: {}]   ;;  %s2672_s17 = inlined_call_operand.vmem [shape: f32[2,8,32], index: 17, kind: output, shape index: {0}]   ;;  %s2673_s18 = inlined_call_operand.vmem [shape: f32[2,8,16], index: 18, kind: output, shape index: {1}]  }
   0x1   :  { %2687 = sst [smem:[#allocation8_spill]] %s2655_s0 }
   0x2   :  { %2688 = sst [smem:[#allocation9_spill]] %s2656_s1 }
   0x3   :  { %2689 = sst [smem:[#allocation10_spill]] %s2657_s2 }
   0x4   :  { %2690 = sst [smem:[#allocation11_spill]] %s2658_s3 }
   0x5   :  { %24 = vsyncpa [#allocation3], 0 }
   0x6   :  { %25 = vsyncpa [#allocation5], 0  ;;  %s2360_s27 = smov 0  }
   0x7 LB: > { %s495_s30 = sshll.u32 %s2666_s11, 4  ;;  %s1900_s0 = sadd.s32 4294967295, %s2245_s27   ;;  %s2245_s27 = sphi %s2360_s27, %s31_s27   ;;  %s496_s30 = int_to_ptr.hbm [resolvable:$true] %s495_s30 }
   0x8   : > { %p1902_p0 = scmp.ge.s32.totalorder %s2245_s27, 1  ;;  %p460_p1 = scmp.lt.s32.totalorder %s2245_s27, 3 }
   0x9   : > { %p2102_p2 = scmp.eq.s32.totalorder %s1900_s0, 0  ;;  %s2247_s1 = smov [#allocation2]  }
   0xa   : > { %p2371_p3 = pnand %p1902_p0, %p460_p1  ;;  %s497_s20 = sshll.u32 %s2247_s1, 4  ;;  %s498_s20 = int_to_ptr.vmem [resolvable:$true] %s497_s20 }
   0xb   : > { %s512_s2 = sshll.u32 %s2668_s13, 4  ;;  %s2248_s23 = smov [#allocation4]   ;;  %s513_s2 = int_to_ptr.hbm [resolvable:$true] %s512_s2 }
   0xc   : > { %p2095_p4 = pneg %p2371_p3  ;;  %s514_s24 = sshll.u32 %s2248_s23, 4  ;;  %s515_s24 = int_to_ptr.vmem [resolvable:$true] %s514_s24 }
   0xd   : > { %s2249_s25 = smov 64   ;;  %s2250_s26 = smov 4  }
   0xe   : > { %p2096_p5 = pnand %p2102_p2, %p2095_p4  ;;  %561 = sbr.rel (%p2371_p3) target bundleno = 2777 (0xad9), region = 88 }
  0x10   : > { %2098 = dma.hbm_to_vmem [thread:$0]  (!%p2096_p5), %s496_s30, 256, %s498_s20, [#allocation3], %s2249_s25, %s2249_s25, %s2250_s26  }
  0x11   : > { %2101 = dma.hbm_to_vmem [thread:$0]  (!%p2096_p5), %s513_s2, 256, %s515_s24, [#allocation5], %s2249_s25, %s2249_s25, %s2250_s26  }
  0x13   : > { %2236 = dma.done.wait (%p2102_p2), [#allocation3], 256  }
  0x14   : > { %2238 = vsyncadd (%p2102_p2), [#allocation3], 4294967040 }
  0x15   : > { %2240 = dma.done.wait (%p2102_p2), [#allocation5], 256  }
  0x16   : > { %2242 = vsyncadd (%p2102_p2), [#allocation5], 4294967040  ;;  %p632_p6 = scmp.lt.s32.totalorder %s1900_s0, 1  ;;  %s2692_s1 = sld [smem:[#allocation8_spill]]  ;;  %vm678_vm0 = vcmask 261120   ;;  %vm699_vm1 = vcmask 64512  }
  0x17   : > { %s2693_s3 = sld [smem:[#allocation11_spill]]  ;;  %v2132_v4 = vld [vmem:[%s2659_s4] ss:$0 sm:$0xff]  ;;  %s2680_s25 = smov 104   ;;  %vm737_vm2 = vcmask 1043456   ;;  %vm938_vm3 = vcmask 130048  }
  0x18   : > { %s2707_s0 = smov (!%p632_p6, %s1900_s0), 1  ;;  %s2684_s26 = smov 120   ;;  %vm940_vm4 = vcmask 195584   ;;  %vm990_vm5 = vcmask 1040384   ;;  %vm992_vm6 = vcmask 1041408   ;;  %vm995_vm7 = vcmask 1042432  }
  0x19   : > { %s2390_s28 = sshll.u32 %s2707_s0, 3  ;;  %s2675_s29 = smov 96   ;;  %vm999_vm8 = vcmask 1046528   ;;  %vm1005_vm9 = vcmask 1045504   ;;  %vm1011_vm10 = vcmask 1044480   ;;  %vm1121_vm11 = vcmask 97280  }
  0x1a   : > { %s2677_s30 = smov 80   ;;  %s2682_s20 = smov 112   ;;  %vm1486_vm12 = vcmask 523264  }
  0x1b   : > { %s2258_s21 = smov 64   ;;  %s2259_s22 = smov 40  }
  0x1c   : > { %s635_s19 = scalar_lea.vmem %s2692_s1, %s2390_s28  ;;  %s2674_s1 = smov 72  }
  0x1d   : > { %v2060_v0 = vld [vmem:[%s2693_s3 + $0x8] sm:$0xff]  ;;  %v2059_v1 = vld [vmem:[%s2693_s3] sm:$0xff]  ;;  %s2260_s2 = smov 56   ;;  %s2261_s23 = smov 48  }
  0x1e   : > { %v2402_v2 = vld [vmem:[%s635_s19] sm:$0xff]  ;;  %688 = vmatpush.bf16.msra.mxu0 %v2060_v0  ;;  %s2678_s19 = smov 88   ;;  %s2676_s24 = smov 8  }
  0x1f   : > { %v661_v3 = vpack.c.bf16 %v2402_v2, %v2402_v2  ;;  %s2699_s3 = smov 80  }
  0x22   : > { %689 = vmatpush.bf16.msra.mxu0 %v2059_v1 }
  0x25   : > { %1923 = vmatmul.msk.bf16.vlgmr.msra.gmra.mxu0 %vm678_vm0, %v661_v3 }
  0xa2   : > { %v691_v5 = vpop.f32.mrf.mxu0 }
  0xa3   : > { %v692_v6 = vadd.f32 %v2132_v4, %v691_v5 }
  0xa5   : > { %v2410_v7 = vpack.c.bf16 %v692_v6, %v692_v6 }
  0xa7   : > { %868 = vrot.lane.b32.xlu2 %v2410_v7, %s2680_s25  ;;  %754 = vrot.lane.b32.xlu1 %v2410_v7, %s2684_s26  ;;  %s2702_s26 = smov 8  }
  0xa8   : > { %697 = vrot.lane.b32.xlu0 %v2410_v7, %s2675_s29  ;;  %s2703_s29 = smov 16  }
  0xaa   : > { %v693_v8 = vpop.f32.mrf.mxu0 }
  0xaf   : > { %813 = vrot.lane.b32.xlu2 %v2410_v7, %s2677_s30  ;;  %870 = vrot.lane.b32.xlu1 %v2410_v7, %s2674_s1  ;;  %s2704_s30 = smov 24  }
  0xb0   : > { %756 = vrot.lane.b32.xlu0 %v2410_v7, %s2678_s19  ;;  %s652_s19 = scalar_lea.vmem %s2673_s18, %s2390_s28 }
  0xb8   : > { %811 = vrot.lane.b32.xlu0 %v2410_v7, %s2682_s20  ;;  %s2695_s20 = smov 120  }
 0x101   : > { %v869_v9 = vpop.permute.xlu2 %868 }
 0x109   : > { %v814_v10 = vpop.permute.xlu2 %813 }
 0x10a   : > { %v819_v11 = vsel %vm699_vm1, %v814_v10, 0 }
 0x10b   : > { %828 = vmatpush.bf16.xpose.msrb.mxu0 %v819_v11 }
 0x119   : > { %v755_v12 = vpop.permute.xlu1 %754 }
 0x11a   : > { %v698_v13 = vpop.permute.xlu0 %697 }
 0x11b   : > { %v704_v14 = vsel %vm699_vm1, %v698_v13, 0 }
 0x11c   : > { %713 = vmatpush.bf16.xpose.msra.mxu1 %v704_v14 }
 0x121   : > { %v871_v15 = vpop.permute.xlu1 %870 }
 0x122   : > { %v757_v16 = vpop.permute.xlu0 %756  ;;  %v876_v17 = vsel %vm699_vm1, %v871_v15, 0 }
 0x123   : > { %1924 = vmatmul.msk.bf16.vlgmr.msra.gmra.mxu1 %vm699_vm1, %v2410_v7  ;;  %v762_v18 = vsel %vm699_vm1, %v757_v16, 0 }
 0x124   : > { %771 = vmatpush.bf16.xpose.msra.mxu3 %v762_v18 }
 0x12a   : > { %v812_v19 = vpop.permute.xlu0 %811 }
 0x12b   : > { %1926 = vmatmul.msk.bf16.vlgmr.msra.gmra.mxu3 %vm699_vm1, %v755_v12  ;;  %1928 = vmatmul.msk.bf16.vlgmr.msrb.gmra.mxu0 %vm699_vm1, %v812_v19 }
 0x12c   : > { %885 = vmatpush.bf16.xpose.msrb.mxu3 %v876_v17 }
 0x13b   : > { %1930 = vmatmul.msk.bf16.vlgmr.msrb.gmra.mxu3 %vm699_vm1, %v869_v9 }
 0x1a0   : > { %v715_v20 = vpop.f32.mrf.mxu1 }
 0x1a1   : > { %v719_v21 = vmul.f32 0.35355338, %v715_v20 }
 0x1a3   : > { %v720_v22 = vsel %vm699_vm1, %v719_v21, -inf }
 0x1a4   : > { %721 = vmax.xlane.f32.xlu1 %v720_v22 }
 0x1a8   : > { %v717_v23 = vpop.f32.mrf.mxu1  ;;  %v830_v24 = vpop.f32.mrf.mxu0 }
 0x1a9   : > { %v834_v29 = vmul.f32 0.35355338, %v830_v24 }
 0x1ab   : > { %v835_v31 = vsel %vm699_vm1, %v834_v29, -inf }
 0x1ae   : > { %v773_v25 = vpop.f32.mrf.mxu3 }
 0x1af   : > { %v777_v26 = vmul.f32 0.35355338, %v773_v25  ;;  %v2062_v25 = vld [vmem:[%s2660_s5 + $0x8] sm:$0xff] }
 0x1b0   : > { %v832_v27 = vpop.f32.mrf.mxu0  ;;  %968 = vmatpush.bf16.msra.mxu0 %v2062_v25 }
 0x1b1   : > { %v778_v28 = vsel %vm699_vm1, %v777_v26, -inf  ;;  %v2066_v27 = vld [vmem:[%s2664_s9 + $0x8] sm:$0xff] }
 0x1b2   : > { %779 = vmax.xlane.f32.xlu2 %v778_v28  ;;  %1091 = vmatpush.bf16.msra.mxu3 %v2066_v27  ;;  %v2065_v28 = vld [vmem:[%s2664_s9] sm:$0xff] }
 0x1b6   : > { %v775_v30 = vpop.f32.mrf.mxu3  ;;  %1092 = vmatpush.bf16.msra.mxu3 %v2065_v28 }
 0x1ba   : > { %836 = vmax.xlane.f32.xlu2 %v835_v31 }
 0x1be   : > { %v887_v32 = vpop.f32.mrf.mxu3 }
 0x1bf   : > { %v891_v33 = vmul.f32 0.35355338, %v887_v32 }
 0x1c1   : > { %v892_v34 = vsel %vm699_vm1, %v891_v33, -inf }
 0x1c2   : > { %893 = vmax.xlane.f32.xlu0 %v892_v34 }
 0x1c6   : > { %v889_v35 = vpop.f32.mrf.mxu3 }
 0x1d2   : > { %732 = vrot.lane.b32.xlu2 %v2410_v7, %s2258_s21  ;;  %s2679_s21 = smov 16  }
 0x1da   : > { %904 = vrot.lane.b32.xlu2 %v2410_v7, %s2259_s22  ;;  %s2686_s22 = smov 24  }
 0x217   : > { %v722_v36 = vpop.xlane.xlu1 %721 }
 0x218   : > { %v723_v37 = vsub.f32 %v719_v21, %v722_v36 }
 0x21a   : > { %v724_v38 = vmul.f32 1.442695, %v723_v37 }
 0x21c   : > { %2137 = vpow2.f32 %v724_v38 }
 0x222   : > { %v2138_v39 = vpop.eup %2137 }
 0x223   : > { %v726_v40 = vsel %vm699_vm1, %v2138_v39, 0.0 }
 0x224   : > { %727 = vadd.xlane.f32.xlu1 %v726_v40  ;;  %v2063_v40 = vld [vmem:[%s2662_s7] sm:$0xff] }
 0x225   : > { %v780_v41 = vpop.xlane.xlu2 %779 }
 0x226   : > { %v781_v44 = vsub.f32 %v777_v26, %v780_v41  ;;  %v2061_v26 = vld [vmem:[%s2660_s5] sm:$0xff] }
 0x227   : > { %969 = vmatpush.bf16.msra.mxu0 %v2061_v26 }
 0x228   : > { %v782_v46 = vmul.f32 1.442695, %v781_v44 }
 0x22d   : > { %v837_v42 = vpop.xlane.xlu2 %836 }
 0x22e   : > { %v838_v43 = vsub.f32 %v834_v29, %v837_v42  ;;  %v2134_v42 = vld [vmem:[%s2665_s10] ss:$0 sm:$0xff] }
 0x230   : > { %v839_v45 = vmul.f32 1.442695, %v838_v43  ;;  %v2133_v43 = vld [vmem:[%s2661_s6] ss:$0 sm:$0xff] }
 0x232   : > { %2139 = vpow2.f32 %v839_v45 }
 0x233   : > { %2141 = vpow2.f32 %v782_v46 }
 0x235   : > { %v733_v47 = vpop.permute.xlu2 %732  ;;  %v894_v48 = vpop.xlane.xlu0 %893 }
 0x236   : > { %v739_v49 = vsel %vm737_vm2, %v733_v47, 0  ;;  %v895_v51 = vsub.f32 %v891_v33, %v894_v48 }
 0x237   : > { %748 = vmatpush.bf16.msra.mxu2 %v739_v49 }
 0x238   : > { %v2140_v50 = vpop.eup %2139  ;;  %v896_v53 = vmul.f32 1.442695, %v895_v51 }
 0x239   : > { %v841_v52 = vsel %vm699_vm1, %v2140_v50, 0.0  ;;  %v2142_v54 = vpop.eup %2141 }
 0x23a   : > { %842 = vadd.xlane.f32.xlu0 %v841_v52  ;;  %2143 = vpow2.f32 %v896_v53  ;;  %v784_v55 = vsel %vm699_vm1, %v2142_v54, 0.0 }
 0x23d   : > { %790 = vrot.lane.b32.xlu1 %v2410_v7, %s2260_s2  ;;  %v905_v63 = vpop.permute.xlu2 %904 }
 0x23e   : > { %v910_v3 = vsel %vm737_vm2, %v905_v63, 0 }
 0x240   : > { %v2144_v56 = vpop.eup %2143 }
 0x241   : > { %v898_v57 = vsel %vm699_vm1, %v2144_v56, 0.0 }
 0x242   : > { %785 = vadd.xlane.f32.xlu0 %v784_v55 }
 0x24a   : > { %899 = vadd.xlane.f32.xlu0 %v898_v57 }
 0x25e   : > { %847 = vrot.lane.b32.xlu0 %v2410_v7, %s2261_s23  ;;  %s2698_s23 = smov 88  }
 0x297   : > { %v728_v58 = vpop.xlane.xlu1 %727 }
 0x298   : > { %2145 = vrcp.f32 %v728_v58 }
 0x29e   : > { %v2146_v59 = vpop.eup %2145 }
 0x29f   : > { %v730_v60 = vmul.f32 %v2146_v59, %v2138_v39  ;;  %v2064_v39 = vld [vmem:[%s2662_s7 + $0x8] sm:$0xff] }
 0x2a1   : > { %v731_v61 = vpack.c.bf16 %v730_v60, %v730_v60 }
 0x2a3   : > { %1925 = vmatmul.msk.bf16.vlgmr.msra.gmra.mxu2 %vm699_vm1, %v731_v61 }
 0x2ad   : > { %v843_v62 = vpop.xlane.xlu0 %842 }
 0x2af   : > { %v791_v0 = vpop.permute.xlu1 %790 }
 0x2b0   : > { %v796_v1 = vsel %vm737_vm2, %v791_v0, 0 }
 0x2b1   : > { %805 = vmatpush.bf16.msrb.mxu2 %v796_v1 }
 0x2b5   : > { %919 = vmatpush.bf16.msra.mxu2 %v910_v3  ;;  %v786_v4 = vpop.xlane.xlu0 %785 }
 0x2b6   : > { %2147 = vrcp.f32 %v786_v4 }
 0x2bc   : > { %v2148_v5 = vpop.eup %2147 }
 0x2bd   : > { %v788_v6 = vmul.f32 %v2148_v5, %v2142_v54  ;;  %v900_v7 = vpop.xlane.xlu0 %899 }
 0x2be   : > { %2149 = vrcp.f32 %v900_v7 }
 0x2bf   : > { %v789_v8 = vpack.c.bf16 %v788_v6, %v788_v6  ;;  %2151 = vrcp.f32 %v843_v62 }
 0x2c1   : > { %1927 = vmatmul.msk.bf16.vlgmr.msrb.gmra.mxu2 %vm699_vm1, %v789_v8 }
 0x2c4   : > { %v2150_v9 = vpop.eup %2149 }
 0x2c5   : > { %v902_v10 = vmul.f32 %v2150_v9, %v2144_v56  ;;  %v2152_v11 = vpop.eup %2151 }
 0x2c6   : > { %v845_v12 = vmul.f32 %v2152_v11, %v2140_v50 }
 0x2c7   : > { %v903_v13 = vpack.c.bf16 %v902_v10, %v902_v10 }
 0x2c8   : > { %v846_v16 = vpack.c.bf16 %v845_v12, %v845_v12 }
 0x2d0   : > { %v848_v14 = vpop.permute.xlu0 %847 }
 0x2d1   : > { %1931 = vmatmul.msk.bf16.vlgmr.msra.gmra.mxu2 %vm699_vm1, %v903_v13  ;;  %v853_v15 = vsel %vm737_vm2, %v848_v14, 0 }
 0x2d2   : > { %862 = vmatpush.bf16.msrb.mxu1 %v853_v15 }
 0x2d5   : > { %1929 = vmatmul.msk.bf16.vlgmr.msrb.gmra.mxu1 %vm699_vm1, %v846_v16 }
 0x2d6   : > { %1054 = vmatpush.bf16.msra.mxu1 %v2064_v39 }
 0x2da   : > { %1055 = vmatpush.bf16.msra.mxu1 %v2063_v40 }
 0x326   : > { %v750_v17 = vpop.f32.mrf.mxu2 }
 0x32e   : > { %v752_v18 = vpop.f32.mrf.mxu2 }
 0x344   : > { %v807_v19 = vpop.f32.mrf.mxu2 }
 0x345   : > { %926 = vrot.lane.b32.xlu1 %v807_v19, %s2676_s24  ;;  %s2058_s24 = sshll.u32 %s2707_s0, 4  ;;  %s2700_s0 = smov 96  }
 0x34c   : > { %v809_v20 = vpop.f32.mrf.mxu2 }
 0x352   : > { %v864_v21 = vpop.f32.mrf.mxu1 }
 0x353   : > { %930 = vrot.lane.b32.xlu2 %v864_v21, %s2679_s21  ;;  %s2694_s21 = sld [smem:[#allocation9_spill]] }
 0x354   : > { %v921_v22 = vpop.f32.mrf.mxu2 }
 0x355   : > { %934 = vrot.lane.b32.xlu1 %v921_v22, %s2686_s22  ;;  %v2135_v22 = vld [vmem:[%s2663_s8] ss:$0 sm:$0xff] }
 0x359   : > { %s640_s25 = scalar_lea.vmem %s2694_s21, %s2058_s24  ;;  %s2696_s24 = smov 112  }
 0x35a   : > { %v866_v23 = vpop.f32.mrf.mxu1  ;;  %v655_v29 = vld [vmem:[%s640_s25] sm:$0xff]  ;;  %v656_v30 = vld [vmem:[%s640_s25 + $0x8] sm:$0xf]  ;;  %s2697_s21 = smov 104   ;;  %s2701_s25 = smov 72  }
 0x35b   : > { %v1065_v31 = vpack.c.bf16 %v656_v30, %v655_v29 }
 0x35c   : > { %v923_v24 = vpop.f32.mrf.mxu2 }
 0x35d   : > { %1958 = vmatmul.msk.bf16.vlgmr.msra.gmra.mxu3 %vm678_vm0, %v1065_v31 }
 0x3ad   : > { %v931_v34 = vpop.permute.xlu2 %930 }
 0x3b7   : > { %v927_v32 = vpop.permute.xlu1 %926 }
 0x3b8   : > { %v937_v33 = vsel %vm699_vm1, %v750_v17, %v927_v32 }
 0x3b9   : > { %v939_v36 = vsel %vm938_vm3, %v937_v33, %v931_v34 }
 0x3c7   : > { %v935_v35 = vpop.permute.xlu1 %934 }
 0x3c8   : > { %v941_v37 = vsel %vm940_vm4, %v939_v36, %v935_v35 }
 0x3c9   : > { %v946_v38 = vpack.c.bf16 %v941_v37, %v941_v37 }
 0x3cb   : > { %1940 = vmatmul.msk.bf16.vlgmr.msra.gmra.mxu0 %vm678_vm0, %v946_v38 }
 0x3e0   : > { %v1094_v41 = vpop.f32.mrf.mxu3 }
 0x3e1   : > { %v1095_v46 = vadd.f32 %v2134_v42, %v1094_v41 }
 0x3e8   : > { %v1096_v47 = vpop.f32.mrf.mxu3 }
 0x3e9   : > { %v1097_v49 = vadd.f32 %v2134_v42, %v1096_v47 }
 0x3eb   : > { %v2492_v54 = vpack.c.bf16 %v1097_v49, %v1095_v46 }
 0x3ed   : > { %1159 = vrot.lane.b32.xlu2 %v2492_v54, %s2695_s20  ;;  %1216 = vrot.lane.b32.xlu0 %v2492_v54, %s2696_s24  ;;  %v1105_v59 = vsel %vm699_vm1, %v2492_v54, 0 }
 0x3ee   : > { %1114 = vmatpush.bf16.xpose.msrb.mxu2 %v1105_v59 }
 0x3f5   : > { %1273 = vrot.lane.b32.xlu2 %v2492_v54, %s2697_s21 }
 0x447   : > { %v1160_v16 = vpop.permute.xlu2 %1159 }
 0x448   : > { %v971_v44 = vpop.f32.mrf.mxu0  ;;  %v1165_v18 = vsel %vm699_vm1, %v1160_v16, 0 }
 0x449   : > { %v975_v45 = vadd.f32 %v971_v44, %v2402_v2  ;;  %1174 = vmatpush.bf16.xpose.msrb.mxu1 %v1165_v18 }
 0x44b   : > { %v980_v48 = vadd.f32 %v2133_v43, %v975_v45 }
 0x44d   : > { %v982_v50 = vrot.slane %v980_v48, 7  ;;  %v984_v51 = vrot.slane %v980_v48, 6  ;;  %v986_v52 = vrot.slane %v980_v48, 5  ;;  %v988_v53 = vrot.slane %v980_v48, 4 }
 0x44f   : > { %v991_v55 = vsel %vm990_vm5, %v980_v48, %v982_v50  ;;  %v994_v56 = vsel %vm992_vm6, %v984_v51, %v986_v52  ;;  %v1274_v20 = vpop.permute.xlu2 %1273 }
 0x450   : > { %v993_v57 = vsel %vm992_vm6, %v991_v55, %v984_v51  ;;  %v996_v2 = vsel %vm995_vm7, %v994_v56, %v988_v53  ;;  %v973_v58 = vpop.f32.mrf.mxu0  ;;  %v1279_v21 = vsel %vm699_vm1, %v1274_v20, 0 }
 0x451   : > { %v1000_v60 = vrot.slane %v993_v57, 1  ;;  %v1001_v61 = vrot.slane %v996_v2, 1  ;;  %v1006_v62 = vrot.slane %v993_v57, 2  ;;  %v1007_v63 = vrot.slane %v996_v2, 2 }
 0x452   : > { %v1012_v1 = vrot.slane %v993_v57, 3  ;;  %v1013_v3 = vrot.slane %v996_v2, 3  ;;  %v1017_v6 = vrot.slane %v993_v57, 4  ;;  %v1018_v7 = vrot.slane %v996_v2, 4 }
 0x453   : > { %v1002_v0 = vsel %vm999_vm8, %v1000_v60, %v1001_v61  ;;  %v1008_v5 = vsel %vm1005_vm9, %v1006_v62, %v1007_v63 }
 0x454   : > { %v1004_v4 = vadd.f32 %v1002_v0, %v993_v57  ;;  %v1014_v9 = vsel %vm1011_vm10, %v1012_v1, %v1013_v3  ;;  %v1019_v11 = vsel %vm737_vm2, %v1017_v6, %v1018_v7 }
 0x456   : > { %v1010_v8 = vadd.f32 %v1008_v5, %v1004_v4 }
 0x458   : > { %v1016_v10 = vadd.f32 %v1014_v9, %v1010_v8 }
 0x45a   : > { %v1021_v12 = vadd.f32 %v1019_v11, %v1016_v10 }
 0x45c   : > { %v2510_v13 = vmul.f32 0.2, %v1021_v12 }
 0x45e   : > { %v2513_v14 = vsub.f32 %v980_v48, %v2510_v13 }
 0x45f   : > { %v1217_v17 = vpop.permute.xlu0 %1216 }
 0x460   : > { %v1028_v15 = vpack.c.bf16 %v2513_v14, %v2513_v14  ;;  %v1222_v19 = vsel %vm699_vm1, %v1217_v17, 0 }
 0x461   : > { %1231 = vmatpush.bf16.xpose.msra.mxu2 %v1222_v19 }
 0x462   : > { %1949 = vmatmul.msk.bf16.vlgmr.msra.gmra.mxu1 %vm678_vm0, %v1028_v15 }
 0x463   : > { %1288 = vmatpush.bf16.xpose.msra.mxu1 %v1279_v21 }
 0x4df   : > { %v1057_v23 = vpop.f32.mrf.mxu1 }
 0x4e0   : > { %v1058_v24 = vadd.f32 %v2135_v22, %v1057_v23 }
 0x4e2   : > { %v1099_v25 = vpack.c.bf16 %v1058_v24, %v1058_v24 }
 0x4e4   : > { %1271 = vrot.lane.b32.xlu0 %v1099_v25, %s2697_s21  ;;  %1157 = vrot.lane.b32.xlu1 %v1099_v25, %s2695_s20 }
 0x4e5   : > { %1959 = vmatmul.msk.bf16.vlgmr.msrb.gmra.mxu2 %vm699_vm1, %v1099_v25 }
 0x4e7   : > { %v1059_v26 = vpop.f32.mrf.mxu1 }
 0x4ec   : > { %1214 = vrot.lane.b32.xlu1 %v1099_v25, %s2696_s24 }
 0x556   : > { %v1158_v27 = vpop.permute.xlu1 %1157  ;;  %v1272_v29 = vpop.permute.xlu0 %1271 }
 0x557   : > { %1961 = vmatmul.msk.bf16.vlgmr.msrb.gmra.mxu1 %vm699_vm1, %v1158_v27 }
 0x55e   : > { %v1215_v28 = vpop.permute.xlu1 %1214 }
 0x55f   : > { %1963 = vmatmul.msk.bf16.vlgmr.msra.gmra.mxu2 %vm699_vm1, %v1215_v28 }
 0x567   : > { %1965 = vmatmul.msk.bf16.vlgmr.msra.gmra.mxu1 %vm699_vm1, %v1272_v29 }
 0x568   : > { %v1116_v30 = vpop.f32.mrf.mxu2 }
 0x569   : > { %v1120_v31 = vmul.f32 0.35355338, %v1116_v30 }
 0x56b   : > { %v1122_v32 = vsel %vm1121_vm11, %v1120_v31, -inf }
 0x56c   : > { %1123 = vmax.xlane.f32.xlu1 %v1122_v32 }
 0x570   : > { %v1118_v33 = vpop.f32.mrf.mxu2 }
 0x5d4   : > { %v1176_v34 = vpop.f32.mrf.mxu1 }
 0x5d5   : > { %v1180_v35 = vmul.f32 0.35355338, %v1176_v34 }
 0x5d7   : > { %v1181_v36 = vsel %vm1121_vm11, %v1180_v35, -inf }
 0x5d8   : > { %1182 = vmax.xlane.f32.xlu2 %v1181_v36  ;;  %v2068_v36 = vld [vmem:[#allocation2 + $0x8] sm:$0xff] }
 0x5d9   : > { %1369 = vmatpush.bf16.msrb.mxu2 %v2068_v36 }
 0x5dc   : > { %v1178_v37 = vpop.f32.mrf.mxu1 }
 0x5dd   : > { %v2067_v37 = vld [vmem:[#allocation2] sm:$0xff] }
 0x5de   : > { %1370 = vmatpush.bf16.msrb.mxu2 %v2067_v37 }
 0x5df   : > { %v1124_v38 = vpop.xlane.xlu1 %1123 }
 0x5e0   : > { %v1125_v39 = vsub.f32 %v1120_v31, %v1124_v38 }
 0x5e2   : > { %v1126_v40 = vmul.f32 1.442695, %v1125_v39  ;;  %v1233_v41 = vpop.f32.mrf.mxu2 }
 0x5e3   : > { %v1237_v42 = vmul.f32 0.35355338, %v1233_v41 }
 0x5e4   : > { %v1290_v43 = vpop.f32.mrf.mxu1  ;;  %2153 = vpow2.f32 %v1126_v40 }
 0x5e5   : > { %v1294_v44 = vmul.f32 0.35355338, %v1290_v43  ;;  %v1238_v45 = vsel %vm1121_vm11, %v1237_v42, -inf }
 0x5e6   : > { %1239 = vmax.xlane.f32.xlu2 %v1238_v45  ;;  %v2070_v45 = vld [vmem:[#allocation4 + $0x8] sm:$0xff] }
 0x5e7   : > { %v1295_v46 = vsel %vm1121_vm11, %v1294_v44, -inf }
 0x5e8   : > { %1296 = vmax.xlane.f32.xlu0 %v1295_v46  ;;  %v2069_v46 = vld [vmem:[#allocation4] sm:$0xff] }
 0x5ea   : > { %v1235_v47 = vpop.f32.mrf.mxu2  ;;  %v2154_v48 = vpop.eup %2153 }
 0x5eb   : > { %v1128_v50 = vsel %vm1121_vm11, %v2154_v48, 0.0  ;;  %v2074_v47 = vld [vmem:[%s2669_s14 + $0x18] sm:$0xff] }
 0x5ec   : > { %v1292_v49 = vpop.f32.mrf.mxu1  ;;  %1494 = vmatpush.bf16.msrb.mxu1 %v2074_v47 }
 0x5ed   : > { %v2136_v49 = vld [vmem:[%s2667_s12] ss:$0 sm:$0xff] }
 0x5f0   : > { %1129 = vadd.xlane.f32.xlu0 %v1128_v50 }
 0x5fe   : > { %1193 = vrot.lane.b32.xlu2 %v2492_v54, %s2698_s23 }
 0x606   : > { %1250 = vrot.lane.b32.xlu2 %v2492_v54, %s2699_s3 }
 0x64b   : > { %v1183_v51 = vpop.xlane.xlu2 %1182 }
 0x64c   : > { %v1184_v52 = vsub.f32 %v1180_v35, %v1183_v51  ;;  %v2072_v51 = vld [vmem:[%s2669_s14 + $0x8] sm:$0xff] }
 0x64e   : > { %v1185_v53 = vmul.f32 1.442695, %v1184_v52 }
 0x650   : > { %2155 = vpow2.f32 %v1185_v53 }
 0x656   : > { %v2156_v55 = vpop.eup %2155 }
 0x657   : > { %v1187_v56 = vsel %vm1121_vm11, %v2156_v55, 0.0 }
 0x658   : > { %1188 = vadd.xlane.f32.xlu1 %v1187_v56 }
 0x659   : > { %v1240_v57 = vpop.xlane.xlu2 %1239 }
 0x65a   : > { %v1241_v2 = vsub.f32 %v1237_v42, %v1240_v57 }
 0x65b   : > { %v1297_v58 = vpop.xlane.xlu0 %1296 }
 0x65c   : > { %v1242_v59 = vmul.f32 1.442695, %v1241_v2  ;;  %v1298_v60 = vsub.f32 %v1294_v44, %v1297_v58 }
 0x65e   : > { %2157 = vpow2.f32 %v1242_v59  ;;  %v1299_v61 = vmul.f32 1.442695, %v1298_v60 }
 0x660   : > { %2159 = vpow2.f32 %v1299_v61 }
 0x661   : > { %v1194_v62 = vpop.permute.xlu2 %1193 }
 0x662   : > { %v1199_v63 = vsel %vm1005_vm9, %v1194_v62, 0 }
 0x663   : > { %1208 = vmatpush.bf16.msrb.mxu3 %v1199_v63  ;;  %v1130_v8 = vpop.xlane.xlu0 %1129 }
 0x664   : > { %v2158_v0 = vpop.eup %2157 }
 0x665   : > { %v1244_v1 = vsel %vm1121_vm11, %v2158_v0, 0.0 }
 0x666   : > { %1245 = vadd.xlane.f32.xlu0 %v1244_v1  ;;  %v2160_v3 = vpop.eup %2159 }
 0x667   : > { %v1301_v4 = vsel %vm1121_vm11, %v2160_v3, 0.0 }
 0x669   : > { %v1251_v15 = vpop.permute.xlu2 %1250 }
 0x66a   : > { %v1256_v18 = vsel %vm1005_vm9, %v1251_v15, 0 }
 0x66e   : > { %1302 = vadd.xlane.f32.xlu0 %v1301_v4 }
 0x671   : > { %1135 = vrot.lane.b32.xlu1 %v2492_v54, %s2700_s0 }
 0x682   : > { %1307 = vrot.lane.b32.xlu0 %v2492_v54, %s2701_s25  ;;  %s648_s25 = scalar_lea.vmem %s2672_s17, %s2390_s28 }
 0x6cb   : > { %v1189_v5 = vpop.xlane.xlu1 %1188 }
 0x6cc   : > { %2161 = vrcp.f32 %v1189_v5 }
 0x6cd   : > { %2163 = vrcp.f32 %v1130_v8 }
 0x6d2   : > { %v2162_v6 = vpop.eup %2161 }
 0x6d3   : > { %v1191_v7 = vmul.f32 %v2162_v6, %v2156_v55  ;;  %v2164_v11 = vpop.eup %2163 }
 0x6d4   : > { %v1132_v12 = vmul.f32 %v2164_v11, %v2154_v48  ;;  %v2073_v48 = vld [vmem:[%s2669_s14 + $0x10] sm:$0xff] }
 0x6d5   : > { %v1192_v9 = vpack.c.bf16 %v1191_v7, %v1191_v7  ;;  %1495 = vmatpush.bf16.msrb.mxu1 %v2073_v48 }
 0x6d6   : > { %v1133_v54 = vpack.c.bf16 %v1132_v12, %v1132_v12 }
 0x6d7   : > { %1962 = vmatmul.msk.bf16.vlgmr.msrb.gmra.mxu3 %vm1121_vm11, %v1192_v9 }
 0x6d9   : > { %v1246_v10 = vpop.xlane.xlu0 %1245  ;;  %1496 = vmatpush.bf16.msrb.mxu1 %v2072_v51 }
 0x6da   : > { %2165 = vrcp.f32 %v1246_v10 }
 0x6e0   : > { %v2166_v20 = vpop.eup %2165 }
 0x6e1   : > { %v1303_v19 = vpop.xlane.xlu0 %1302  ;;  %v1248_v22 = vmul.f32 %v2166_v20, %v2158_v0 }
 0x6e2   : > { %2167 = vrcp.f32 %v1303_v19  ;;  %v2071_v19 = vld [vmem:[%s2669_s14] sm:$0xff] }
 0x6e3   : > { %v1136_v16 = vpop.permute.xlu1 %1135  ;;  %v1249_v26 = vpack.c.bf16 %v1248_v22, %v1248_v22  ;;  %1497 = vmatpush.bf16.msrb.mxu1 %v2071_v19 }
 0x6e4   : > { %v1141_v17 = vsel %vm1005_vm9, %v1136_v16, 0 }
 0x6e5   : > { %1150 = vmatpush.bf16.msrb.mxu0 %v1141_v17 }
 0x6e8   : > { %1960 = vmatmul.msk.bf16.vlgmr.msrb.gmra.mxu0 %vm1121_vm11, %v1133_v54  ;;  %v2168_v21 = vpop.eup %2167 }
 0x6e9   : > { %1265 = vmatpush.bf16.msra.mxu0 %v1256_v18  ;;  %v1305_v23 = vmul.f32 %v2168_v21, %v2160_v3 }
 0x6eb   : > { %v1306_v27 = vpack.c.bf16 %v1305_v23, %v1305_v23 }
 0x6ed   : > { %1445 = vmatpush.bf16.msrb.mxu0 %v2070_v45 }
 0x6f1   : > { %1446 = vmatpush.bf16.msrb.mxu0 %v2069_v46 }
 0x6f4   : > { %v1308_v24 = vpop.permute.xlu0 %1307 }
 0x6f5   : > { %v1313_v25 = vsel %vm1005_vm9, %v1308_v24, 0  ;;  %v2078_v24 = vld [vmem:[%s2670_s15 + $0x18] sm:$0xff] }
 0x6f6   : > { %1322 = vmatpush.bf16.msra.mxu3 %v1313_v25  ;;  %v2076_v25 = vld [vmem:[%s2670_s15 + $0x8] sm:$0xff] }
 0x6f7   : > { %1613 = vmatpush.bf16.msra.mxu2 %v2076_v25 }
 0x6f8   : > { %1964 = vmatmul.msk.bf16.vlgmr.msra.gmra.mxu0 %vm1121_vm11, %v1249_v26  ;;  %v2080_v26 = vld [vmem:[%s2670_s15 + $0x28] sm:$0xff] }
 0x6f9   : > { %1966 = vmatmul.msk.bf16.vlgmr.msra.gmra.mxu3 %vm1121_vm11, %v1306_v27  ;;  %1642 = vmatpush.bf16.msra.mxu0 %v2080_v26  ;;  %v2077_v27 = vld [vmem:[%s2670_s15 + $0x10] sm:$0xff] }
 0x6fa   : > { %1585 = vmatpush.bf16.msrb.mxu3 %v2078_v24 }
 0x6fe   : > { %1586 = vmatpush.bf16.msrb.mxu3 %v2077_v27 }
 0x75a   : > { %v1210_v28 = vpop.f32.mrf.mxu3 }
 0x75b   : > { %1329 = vrot.lane.b32.xlu1 %v1210_v28, %s2702_s26  ;;  %v2075_v28 = vld [vmem:[%s2670_s15] sm:$0xff]  ;;  %s2705_s26 = sld [smem:[#allocation10_spill]] }
 0x75c   : > { %1614 = vmatpush.bf16.msra.mxu2 %v2075_v28 }
 0x762   : > { %v1212_v29 = vpop.f32.mrf.mxu3 }
 0x763   : > { %v2079_v29 = vld [vmem:[%s2670_s15 + $0x20] sm:$0xff] }
 0x764   : > { %1643 = vmatpush.bf16.msra.mxu0 %v2079_v29 }
 0x765   : > { %v1152_v30 = vpop.f32.mrf.mxu0 }
 0x76d   : > { %v1154_v31 = vpop.f32.mrf.mxu0 }
 0x775   : > { %v1267_v32 = vpop.f32.mrf.mxu0 }
 0x776   : > { %1333 = vrot.lane.b32.xlu2 %v1267_v32, %s2703_s29  ;;  %s644_s29 = scalar_lea.vmem %s2705_s26, %s2390_s28 }
 0x77c   : > { %v1324_v33 = vpop.f32.mrf.mxu3 }
 0x77d   : > { %v1269_v34 = vpop.f32.mrf.mxu0  ;;  %1337 = vrot.lane.b32.xlu1 %v1324_v33, %s2704_s30 }
 0x784   : > { %v1326_v35 = vpop.f32.mrf.mxu3 }
 0x7cd   : > { %v1330_v38 = vpop.permute.xlu1 %1329 }
 0x7ce   : > { %v1340_v40 = vsel %vm699_vm1, %v1152_v30, %v1330_v38 }
 0x7d0   : > { %v1334_v39 = vpop.permute.xlu2 %1333 }
 0x7d1   : > { %v1341_v41 = vsel %vm938_vm3, %v1340_v40, %v1334_v39 }
 0x7ef   : > { %v1338_v42 = vpop.permute.xlu1 %1337 }
 0x7f0   : > { %v1342_v43 = vsel %vm940_vm4, %v1341_v41, %v1338_v42 }
 0x7f1   : > { %v1347_v44 = vpack.c.bf16 %v1342_v43, %v1342_v43 }
 0x7f3   : > { %1975 = vmatmul.msk.bf16.vlgmr.msrb.gmra.mxu2 %vm678_vm0, %v1347_v44 }
 0x876   : > { %v1372_v50 = vpop.f32.mrf.mxu2 }
 0x877   : > { %v1376_v52 = vadd.f32 %v1372_v50, %v2513_v14 }
 0x879   : > { %v1381_v53 = vadd.f32 %v2136_v49, %v1376_v52 }
 0x87b   : > { %v1383_v55 = vrot.slane %v1381_v53, 7  ;;  %v1385_v56 = vrot.slane %v1381_v53, 6  ;;  %v1387_v57 = vrot.slane %v1381_v53, 5  ;;  %v1389_v2 = vrot.slane %v1381_v53, 4 }
 0x87d   : > { %v1391_v58 = vsel %vm990_vm5, %v1381_v53, %v1383_v55  ;;  %v1393_v59 = vsel %vm992_vm6, %v1385_v56, %v1387_v57 }
 0x87e   : > { %v1392_v60 = vsel %vm992_vm6, %v1391_v58, %v1385_v56  ;;  %v1394_v61 = vsel %vm995_vm7, %v1393_v59, %v1389_v2  ;;  %v1374_v62 = vpop.f32.mrf.mxu2 }
 0x87f   : > { %v1397_v63 = vrot.slane %v1392_v60, 1  ;;  %v1398_v0 = vrot.slane %v1394_v61, 1  ;;  %v1402_v1 = vrot.slane %v1392_v60, 2  ;;  %v1403_v3 = vrot.slane %v1394_v61, 2 }
 0x880   : > { %v1407_v4 = vrot.slane %v1392_v60, 3  ;;  %v1408_v5 = vrot.slane %v1394_v61, 3  ;;  %v1412_v8 = vrot.slane %v1392_v60, 4  ;;  %v1413_v9 = vrot.slane %v1394_v61, 4 }
 0x881   : > { %v1399_v14 = vsel %vm999_vm8, %v1397_v63, %v1398_v0  ;;  %v1404_v7 = vsel %vm1005_vm9, %v1402_v1, %v1403_v3  ;;  %v2082_v3 = vld [vmem:[%s2671_s16 + $0x8] sm:$0xff] }
 0x882   : > { %v1401_v6 = vadd.f32 %v1399_v14, %v1392_v60  ;;  %v1409_v11 = vsel %vm1011_vm10, %v1407_v4, %v1408_v5  ;;  %v1414_v15 = vsel %vm737_vm2, %v1412_v8, %v1413_v9  ;;  %v2086_v14 = vld [vmem:[%s2671_s16 + $0x28] sm:$0xff]  ;;  %1729 = vmatpush.bf16.msra.mxu3 %v2082_v3  ;;  %v2083_v5 = vld [vmem:[%s2671_s16 + $0x10] sm:$0xff] }
 0x883   : > { %1758 = vmatpush.bf16.msrb.mxu2 %v2086_v14 }
 0x884   : > { %v1406_v10 = vadd.f32 %v1404_v7, %v1401_v6  ;;  %v2081_v6 = vld [vmem:[%s2671_s16] sm:$0xff] }
 0x885   : > { %v2085_v7 = vld [vmem:[%s2671_s16 + $0x20] sm:$0xff] }
 0x886   : > { %v1411_v12 = vadd.f32 %v1409_v11, %v1406_v10  ;;  %1730 = vmatpush.bf16.msra.mxu3 %v2081_v6 }
 0x887   : > { %1759 = vmatpush.bf16.msrb.mxu2 %v2085_v7 }
 0x888   : > { %v1416_v16 = vadd.f32 %v1414_v15, %v1411_v12 }
 0x88a   : > { %v1417_v17 = vmul.f32 0.2, %v1416_v16 }
 0x88c   : > { %v1418_v18 = vsub.f32 %v1381_v53, %v1417_v17  ;;  %v1541_v2 = vadd.f32 %v1417_v17, %v2510_v13  ;;  %v2084_v13 = vld [vmem:[%s2671_s16 + $0x18] sm:$0xff] }
 0x88d   : > { %1701 = vmatpush.bf16.msra.mxu1 %v2084_v13 }
 0x88e   : > { %v1423_v54 = vpack.c.bf16 %v1418_v18, %v1418_v18 }
 0x890   : > { %1984 = vmatmul.msk.bf16.vlgmr.msrb.gmra.mxu0 %vm678_vm0, %v1423_v54 }
 0x891   : > { %1702 = vmatpush.bf16.msra.mxu1 %v2083_v5 }
 0x90d   : > { %v1448_v20 = vpop.f32.mrf.mxu0 }
 0x90e   : > { %v1452_v21 = vmax.f32 %v1448_v20, 0.0 }
 0x910   : > { %v1461_v22 = vpack.c.bf16 %v1452_v21, %v1452_v21 }
 0x912   : > { %2001 = vmatmul.msk.bf16.vlgmr.msrb.gmra.mxu1 %vm1486_vm12, %v1461_v22 }
 0x915   : > { %v1450_v23 = vpop.f32.mrf.mxu0 }
 0x98f   : > { %v1499_v30 = vpop.f32.mrf.mxu1 }
 0x990   : > { %v1503_v31 = vadd.f32 %v1499_v30, %v1418_v18 }
 0x992   : > { %v1505_v32 = vrot.slane %v1503_v31, 7  ;;  %v1507_v33 = vrot.slane %v1503_v31, 6  ;;  %v1509_v34 = vrot.slane %v1503_v31, 5  ;;  %v1511_v35 = vrot.slane %v1503_v31, 4 }
 0x994   : > { %v1513_v36 = vsel %vm990_vm5, %v1503_v31, %v1505_v32  ;;  %v1515_v37 = vsel %vm992_vm6, %v1507_v33, %v1509_v34 }
 0x995   : > { %v1514_v38 = vsel %vm992_vm6, %v1513_v36, %v1507_v33  ;;  %v1516_v39 = vsel %vm995_vm7, %v1515_v37, %v1511_v35  ;;  %v1767_v35 = vld [vmem:[%s644_s29] sm:$0xff] }
 0x996   : > { %v1519_v40 = vrot.slane %v1514_v38, 1  ;;  %v1520_v41 = vrot.slane %v1516_v39, 1  ;;  %v1524_v42 = vrot.slane %v1514_v38, 2  ;;  %v1525_v43 = vrot.slane %v1516_v39, 2 }
 0x997   : > { %v1501_v44 = vpop.f32.mrf.mxu1  ;;  %v1529_v46 = vrot.slane %v1514_v38, 3  ;;  %v1530_v47 = vrot.slane %v1516_v39, 3  ;;  %v1534_v50 = vrot.slane %v1514_v38, 4  ;;  %v1535_v51 = vrot.slane %v1516_v39, 4 }
 0x998   : > { %v1521_v45 = vsel %vm999_vm8, %v1519_v40, %v1520_v41  ;;  %v1526_v49 = vsel %vm1005_vm9, %v1524_v42, %v1525_v43 }
 0x999   : > { %v1523_v48 = vadd.f32 %v1521_v45, %v1514_v38  ;;  %v1531_v53 = vsel %vm1011_vm10, %v1529_v46, %v1530_v47  ;;  %v1536_v56 = vsel %vm737_vm2, %v1534_v50, %v1535_v51 }
 0x99b   : > { %v1528_v52 = vadd.f32 %v1526_v49, %v1523_v48 }
 0x99d   : > { %v1533_v55 = vadd.f32 %v1531_v53, %v1528_v52 }
 0x99f   : > { %v1538_v57 = vadd.f32 %v1536_v56, %v1533_v55 }
 0x9a1   : > { %v1539_v58 = vmul.f32 0.2, %v1538_v57 }
 0x9a3   : > { %v1540_v59 = vsub.f32 %v1503_v31, %v1539_v58  ;;  %v1542_v60 = vadd.f32 %v1541_v2, %v1539_v58 }
 0x9a5   : > { %1766 = vst.msk [vmem:[%s648_s25] sm:$0xff] %vm678_vm0, %v1540_v59  ;;  %v1563_v61 = vpack.c.bf16 %v1542_v60, %v1542_v60  ;;  %v1556_v62 = vrot.slane %v1542_v60, 7  ;;  %v1559_v63 = vrot.slane %v1542_v60, 1 }
 0x9a7   : > { %2010 = vmatmul.msk.bf16.vlgmr.msrb.gmra.mxu3 %vm678_vm0, %v1563_v61  ;;  %v1562_v0 = vpack.c.bf16 %v1556_v62, %v1556_v62  ;;  %v1620_v1 = vpack.c.bf16 %v1559_v63, %v1559_v63 }
 0x9a9   : > { %2019 = vmatmul.msk.bf16.vlgmr.msra.gmra.mxu2 %vm678_vm0, %v1562_v0  ;;  %2028 = vmatmul.msk.bf16.vlgmr.msra.gmra.mxu0 %vm678_vm0, %v1620_v1 }
 0xa26   : > { %v1645_v4 = vpop.f32.mrf.mxu0 }
 0xa2a   : > { %v1588_v8 = vpop.f32.mrf.mxu3 }
 0xa2c   : > { %v1616_v9 = vpop.f32.mrf.mxu2 }
 0xa2d   : > { %v1617_v10 = vadd.f32 %v1616_v9, %v1588_v8 }
 0xa2e   : > { %v1647_v11 = vpop.f32.mrf.mxu0 }
 0xa2f   : > { %v1649_v12 = vadd.f32 %v1645_v4, %v1617_v10 }
 0xa31   : > { %v1650_v15 = vmul.f32 %v1649_v12, %v1649_v12 }
 0xa32   : > { %v1590_v16 = vpop.f32.mrf.mxu3 }
 0xa33   : > { %v1651_v17 = vmul.f32 %v1650_v15, %v1649_v12 }
 0xa34   : > { %v1618_v18 = vpop.f32.mrf.mxu2 }
 0xa35   : > { %v1652_v54 = vmul.f32 0.044715, %v1651_v17 }
 0xa37   : > { %v1653_v19 = vadd.f32 %v1652_v54, %v1649_v12 }
 0xa39   : > { %v1654_v20 = vmul.f32 0.7978846, %v1653_v19 }
 0xa3b   : > { %2169 = vtanh.f32 %v1654_v20 }
 0xa41   : > { %v2170_v21 = vpop.eup %2169 }
 0xa42   : > { %v1656_v22 = vadd.f32 1.0, %v2170_v21 }
 0xa44   : > { %v1657_v23 = vmul.f32 0.5, %v1656_v22 }
 0xa46   : > { %v1658_v24 = vmul.f32 %v1657_v23, %v1649_v12 }
 0xa48   : > { %v1679_v25 = vpack.c.bf16 %v1658_v24, %v1658_v24  ;;  %v1672_v26 = vrot.slane %v1658_v24, 7  ;;  %v1675_v27 = vrot.slane %v1658_v24, 1 }
 0xa4a   : > { %2037 = vmatmul.msk.bf16.vlgmr.msra.gmra.mxu1 %vm678_vm0, %v1679_v25  ;;  %v1678_v28 = vpack.c.bf16 %v1672_v26, %v1672_v26  ;;  %v1736_v29 = vpack.c.bf16 %v1675_v27, %v1675_v27 }
 0xa4c   : > { %2046 = vmatmul.msk.bf16.vlgmr.msra.gmra.mxu3 %vm678_vm0, %v1678_v28  ;;  %2055 = vmatmul.msk.bf16.vlgmr.msrb.gmra.mxu2 %vm678_vm0, %v1736_v29 }
 0xac7   : > { %v1704_v30 = vpop.f32.mrf.mxu1 }
 0xacf   : > { %v1706_v31 = vpop.f32.mrf.mxu1  ;;  %v1732_v32 = vpop.f32.mrf.mxu3 }
 0xad0   : > { %v1733_v33 = vadd.f32 %v1732_v32, %v1704_v30  ;;  %v1761_v34 = vpop.f32.mrf.mxu2 }
 0xad2   : > { %v1765_v36 = vadd.f32 %v1761_v34, %v1733_v33 }
 0xad4   : > { %v1768_v37 = vadd.f32 %v1767_v35, %v1765_v36 }
 0xad6   : > { %1769 = vst.msk [vmem:[%s652_s19] sm:$0xff] %vm938_vm3, %v1768_v37 }
 0xad7   : > { %v1734_v38 = vpop.f32.mrf.mxu3 }
 0xad8   : > { %v1763_v39 = vpop.f32.mrf.mxu2 }
 0xad9 PF: > { %s31_s27 = sadd.s32 1, %s2245_s27  }
 0xada   : > { %p28_p7 = scmp.ge.s32.totalorder %s31_s27, 4  }
 0xadc   :  { %30 = sbr.rel (!%p28_p7) target bundleno = 7 (0x7), region = 145 }
 0xae1   :  { %1803 = vsyncpa [#allocation3], 1 }
 0xae2   :  { %1805 = vsyncpa [#allocation3 + $0x1], 1 }
 0xae3   :  { %1806 = vsyncpa [#allocation5], 1 }

</bundles_post_ra>
